<compile_context>
chip_gen: v7x
topology: tpu7x:2x2x1
jax: 0.10.0
libtpu: 0.0.40
codegen_flags: <defaults>
</compile_context>

<pallas_src>
import numpy as np
import jax
import jax.numpy as jnp
from jax.experimental import pallas as pl
from jax.experimental.pallas import tpu as pltpu


# ----------------------------------------------------------------------------
# helpers
# ----------------------------------------------------------------------------
def _round_up(x, q):
    return ((x + q - 1) // q) * q


def _pick_tile(n, cap, quantum):
    """Largest tile <= cap that divides n and is quantum-aligned, else n."""
    if n <= cap:
        return n
    t = (cap // quantum) * quantum
    while t >= quantum:
        if n % t == 0:
            return t
        t -= quantum
    return n


def _padded_bytes(shape, itemsize):
    """Bytes of a VMEM buffer after (8,128) layout padding of the minor dims."""
    s = list(shape)
    if len(s) == 1:
        s = [1] + s
    s[-1] = _round_up(s[-1], 128)
    s[-2] = _round_up(s[-2], 8)
    n = 1
    for d in s:
        n *= d
    return n * itemsize


def quantize_adj(adj):
    """Per-row symmetric int8 quantization of the dense adjacency.

    Halves the dominant HBM stream of the GNN stack (vs bf16).  De-quantization
    is done by folding the per-row scale into the accumulated A_q @ X, so the
    MXU still runs bf16 x bf16 -> f32 and the kernel works on every generation.
    """
    amax = jnp.max(jnp.abs(adj), axis=1, keepdims=True)
    scale = jnp.maximum(amax, 1e-30) / 127.0
    q = jnp.clip(jnp.round(adj / scale), -127.0, 127.0).astype(jnp.int8)
    return q, scale.astype(jnp.float32)


# ----------------------------------------------------------------------------
# Kernel 1: fused scalar-feature MLP banks (node bank + pair bank in one call)
#   per feature f:  h_f = Lin(1,D) -> ReLU -> Lin(D,D) -> ReLU -> Lin(D,D)
#   concat_f(h_f) -> Lin(F*D, D) -> ReLU
# Per-feature weights are packed at init into a row-scatter matrix and
# block-diagonal (F*D, F*D) matrices (padded to F=8 so FD=256 is lane aligned),
# so the kernel is 4 wide matmuls and never concatenates along the lane axis.
# Grid iterates over the banks (node bank, pair bank) -> one launch total.
# ----------------------------------------------------------------------------
def _feat_mlp_kernel(x_ref, s_ref, b1_ref, w2_ref, b2_ref,
                     w3_ref, b3_ref, wc_ref, bc_ref, o_ref):
    bf = jnp.bfloat16
    # Linear(1,D) for every feature at once: [R,F] @ [F,F*D] (selector matrix)
    h = jnp.dot(x_ref[0], s_ref[0],
                preferred_element_type=jnp.float32) + b1_ref[0]
    h = jnp.maximum(h, 0.0)                               # dropout = identity
    # block-diagonal Linear(D,D) per feature: [R,F*D] @ [F*D,F*D]
    h = jnp.dot(h.astype(bf), w2_ref[0],
                preferred_element_type=jnp.float32) + b2_ref[0]
    h = jnp.maximum(h, 0.0)
    h = jnp.dot(h.astype(bf), w3_ref[0],
                preferred_element_type=jnp.float32) + b3_ref[0]
    # TODO(synk): NiOp / PiOp (NODE_INFO_OPS / PAIR_INFO_OPS) unknown; identity.
    # combine MLP (node_mlp / pair_mlp) + ReLU
    out = jnp.dot(h.astype(bf), wc_ref[0],
                  preferred_element_type=jnp.float32) + bc_ref[0]
    o_ref[...] = jnp.maximum(out, 0.0)[None]


def fused_feature_banks(x_stacked, banks):
    """Run node bank and pair bank in a single pallas_call.

    x_stacked : (n_banks, R, F_PAD) bf16 -- already gathered/row-padded.
    banks     : dict of stacked packed weights, leading dim n_banks.
    """
    n_banks, R, FP = x_stacked.shape
    FD = banks["s"].shape[-1]
    D = banks["wc"].shape[-1]
    rep = lambda i: (i, 0, 0)
    return pl.pallas_call(
        _feat_mlp_kernel,
        out_shape=jax.ShapeDtypeStruct((n_banks, R, D), jnp.float32),
        grid_spec=pltpu.PrefetchScalarGridSpec(
            num_scalar_prefetch=0,
            grid=(n_banks,),
            in_specs=[
                pl.BlockSpec((1, R, FP), rep),
                pl.BlockSpec((1, FP, FD), rep),
                pl.BlockSpec((1, 1, FD), rep),
                pl.BlockSpec((1, FD, FD), rep),
                pl.BlockSpec((1, 1, FD), rep),
                pl.BlockSpec((1, FD, FD), rep),
                pl.BlockSpec((1, 1, FD), rep),
                pl.BlockSpec((1, FD, D), rep),
                pl.BlockSpec((1, 1, D), rep),
            ],
            out_specs=pl.BlockSpec((1, R, D), rep),
        ),
        compiler_params=pltpu.CompilerParams(
            dimension_semantics=("arbitrary",)),
    )(x_stacked, banks["s"], banks["b1"], banks["w2"], banks["b2"],
      banks["w3"], banks["b3"], banks["wc"], banks["bc"])


# ----------------------------------------------------------------------------
# Kernel 2: fused multi-layer GNN stack (stand-in NaOp = relu(A @ X @ W + b))
#   grid = (layer, row_tile, k_tile)   -- all sequential ("arbitrary")
#   * A streamed as int8 (tile_r, tile_k) blocks; per-row scale folded in after
#     the K loop; A_q @ X accumulated in f32 in a VMEM scratch.
#   * Layer activations stay resident in a bf16 double-buffered VMEM scratch;
#     x0 is stashed there on the first sweep so it is never re-streamed.
#   * Skip connection (LcOp stand-in), layer-fusion sum (LfOp stand-in) and the
#     final output write all live in-kernel; only the last layer writes HBM.
# ----------------------------------------------------------------------------
def _gnn_stack_kernel(a_ref, scale_ref, x0_ref, w_ref, b_ref, out_ref,
                      acc_ref, xst_ref, lf_ref):
    l = pl.program_id(0)
    r = pl.program_id(1)
    k = pl.program_id(2)
    n_layers = pl.num_programs(0)
    n_k = pl.num_programs(2)

    tile_r = a_ref.shape[0]
    tile_k = a_ref.shape[1]
    n_nodes = lf_ref.shape[0]

    in_off = (l % 2) * n_nodes           # xst rows holding this layer's input
    out_off = ((l + 1) % 2) * n_nodes    # xst rows receiving this layer's output
    k_start = pl.multiple_of(k * tile_k, tile_k)
    r_start = pl.multiple_of(r * tile_r, tile_r)

    @pl.when(k == 0)
    def _():
        acc_ref[...] = jnp.zeros_like(acc_ref)

    # int8 -> bf16 is exact; the per-row scale is folded in after the K loop.
    a_blk = a_ref[...].astype(jnp.bfloat16)

    first_sweep = jnp.logical_and(l == 0, r == 0)

    @pl.when(first_sweep)
    def _():
        xb = x0_ref[...]                                   # bf16 (tile_k, D)
        acc_ref[...] += jnp.dot(a_blk, xb,
                                preferred_element_type=jnp.float32)
        # Stash the raw input once; all later row tiles / layers read it (and
        # every later activation) from the VMEM-resident buffer instead of HBM.
        xst_ref[pl.ds(k_start, tile_k), :] = xb

    @pl.when(jnp.logical_not(first_sweep))
    def _():
        xk = xst_ref[pl.ds(in_off + k_start, tile_k), :]   # bf16
        acc_ref[...] += jnp.dot(a_blk, xk,
                                preferred_element_type=jnp.float32)

    @pl.when(k == n_k - 1)
    def _():
        # TODO(synk): NaOp comes from an undefined G_OPS dict; stand-in is a
        # dense-adjacency GCN relu(A @ X @ W + b); edge_type/base decomposition
        # is dropped.  hidden_drop is identity in inference mode.
        ax = acc_ref[...] * scale_ref[...]                 # fold int8 row scale
        h = jnp.dot(ax.astype(jnp.bfloat16), w_ref[0],
                    preferred_element_type=jnp.float32) + b_ref[0]
        h = jnp.maximum(h, 0.0)
        rows = pl.ds(r_start, tile_r)

        # TODO(synk): LfOp (LAYER_FUSION_OPS) unknown; stand-in = sum over layers.
        @pl.when(l == 0)
        def _():
            lf_ref[rows, :] = h

        @pl.when(l > 0)
        def _():
            lf_ref[rows, :] = lf_ref[rows, :] + h

        # TODO(synk): LcOp (LAYER_CONNECT_OPS) unknown; stand-in = skip-sum.
        @pl.when(l < n_layers - 1)
        def _():
            xst_ref[pl.ds(out_off + r_start, tile_r), :] = (
                h + xst_ref[pl.ds(in_off + r_start, tile_r), :]
                .astype(jnp.float32)).astype(jnp.bfloat16)

        # Only the final layer materializes the fused output (the out BlockSpec
        # pins earlier layers' block index, so no intermediate HBM writebacks).
        @pl.when(l == n_layers - 1)
        def _():
            out_ref[...] = lf_ref[rows, :]


def gnn_stack(adj_q, adj_scale, x0_bf16, w_bf16, b, *, tile_rows=None, tile_k=None):
    N = adj_q.shape[0]
    L, D, _ = w_bf16.shape
    if tile_rows is None:
        tile_rows = _pick_tile(N, 512, 8)
    if tile_k is None:
        tile_k = _pick_tile(N, 1024, 128)

    def vmem_bytes(tr, tk):
        scratch = (_padded_bytes((2 * N, D), 2)      # resident activations bf16
                   + _padded_bytes((N, D), 4)        # layer-fusion sum f32
                   + _padded_bytes((tr, D), 4))      # A@X accumulator f32
        streams = 2 * (_padded_bytes((tr, tk), 1)    # adjacency int8
                       + _padded_bytes((tr, 1), 4)   # per-row scales
                       + _padded_bytes((tk, D), 2)   # x0 bf16
                       + _padded_bytes((1, D, D), 2)
                       + _padded_bytes((1, 1, D), 4)
                       + _padded_bytes((tr, D), 4))  # output tile f32
        return scratch + streams

    # Budget against the smallest physical VMEM (v7x: 64 MiB): the resident
    # activation / fusion scratch scales with N*D and cannot be tiled away in
    # this fused design -- fail fast if it alone blows the budget.
    budget = 44 << 20
    scratch_only = _padded_bytes((2 * N, D), 2) + _padded_bytes((N, D), 4)
    assert scratch_only < budget, (
        "resident activation scratch (~3*N*D bytes) exceeds the VMEM budget; "
        "split the fused layer stack into per-layer pallas_calls")
    while vmem_bytes(tile_rows, tile_k) > budget and tile_k > 128:
        new_tk = _pick_tile(N, tile_k // 2, 128)
        if new_tk >= tile_k:
            break
        tile_k = new_tk
    while vmem_bytes(tile_rows, tile_k) > budget and tile_rows > 8:
        new_tr = _pick_tile(N, tile_rows // 2, 8)
        if new_tr >= tile_rows:
            break
        tile_rows = new_tr
    assert N % tile_rows == 0 and N % tile_k == 0

    vmem_limit = int(min(max(2 * vmem_bytes(tile_rows, tile_k), 32 << 20), 56 << 20))

    grid = (L, N // tile_rows, N // tile_k)
    last_layer = L - 1

    return pl.pallas_call(
        _gnn_stack_kernel,
        out_shape=jax.ShapeDtypeStruct((N, D), jnp.float32),
        grid_spec=pltpu.PrefetchScalarGridSpec(
            num_scalar_prefetch=0,
            grid=grid,
            in_specs=[
                pl.BlockSpec((tile_rows, tile_k), lambda l, r, k: (r, k)),
                pl.BlockSpec((tile_rows, 1), lambda l, r, k: (r, 0)),
                # x0 is consumed (and stashed into VMEM) only on the first
                # (layer 0, row-tile 0) sweep; afterwards keep the block index
                # pinned so the pipeline never re-streams it from HBM.
                pl.BlockSpec(
                    (tile_k, D),
                    lambda l, r, k: (
                        jnp.where(jnp.logical_and(l == 0, r == 0), k, 0), 0)),
                pl.BlockSpec((1, D, D), lambda l, r, k: (l, 0, 0)),
                pl.BlockSpec((1, 1, D), lambda l, r, k: (l, 0, 0)),
            ],
            # Only the final layer owns the output blocks; earlier layers keep
            # the block index pinned at 0 so nothing is written back to HBM
            # until the fused sum is complete.
            out_specs=pl.BlockSpec(
                (tile_rows, D),
                lambda l, r, k: (jnp.where(l == last_layer, r, 0), 0)),
            scratch_shapes=[
                pltpu.VMEM((tile_rows, D), jnp.float32),     # A@X accumulator
                pltpu.VMEM((2 * N, D), jnp.bfloat16),        # resident X (dbl buf)
                pltpu.VMEM((N, D), jnp.float32),             # layer-fusion sum
            ],
        ),
        # State is carried in per-core scratch across layers/rows, so every grid
        # axis must stay sequential on one core.
        # TODO(synk): this leaves v7x's second TensorCore idle; sharding the row
        # axis needs the activations in VMEM_SHARED/HBM plus core barriers.
        compiler_params=pltpu.CompilerParams(
            dimension_semantics=("arbitrary", "arbitrary", "arbitrary"),
            vmem_limit_bytes=vmem_limit),
    )(adj_q, adj_scale, x0_bf16, w_bf16, b)


# ----------------------------------------------------------------------------
# Parameter init (deterministic, synthetic -- mirrors __init__ shapes, then
# packs the feature-bank weights, padded to F_PAD features, for the fused
# kernel).  Matmul weights are stored in bf16 once, here, not per call.
# ----------------------------------------------------------------------------
def _pack_bank(key, nfeat, f_pad, dim):
    ks = jax.random.split(key, 4)
    w1 = 0.1 * jax.random.normal(ks[0], (nfeat, dim), jnp.float32)
    w2 = 0.1 * jax.random.normal(ks[1], (nfeat, dim, dim), jnp.float32)
    w3 = 0.1 * jax.random.normal(ks[2], (nfeat, dim, dim), jnp.float32)
    wc = 0.1 * jax.random.normal(ks[3], (nfeat * dim, dim), jnp.float32)

    fd = f_pad * dim
    s = np.zeros((f_pad, fd), np.float32)
    w2p = np.zeros((fd, fd), np.float32)
    w3p = np.zeros((fd, fd), np.float32)
    wcp = np.zeros((fd, dim), np.float32)
    w1n, w2n, w3n, wcn = map(np.asarray, (w1, w2, w3, wc))
    for f in range(nfeat):
        s[f, f * dim:(f + 1) * dim] = w1n[f]
        w2p[f * dim:(f + 1) * dim, f * dim:(f + 1) * dim] = w2n[f]
        w3p[f * dim:(f + 1) * dim, f * dim:(f + 1) * dim] = w3n[f]
    wcp[:nfeat * dim] = wcn        # padded feature blocks contribute nothing
    return dict(
        s=jnp.asarray(s, jnp.bfloat16),
        b1=jnp.zeros((1, fd), jnp.float32),
        w2=jnp.asarray(w2p, jnp.bfloat16),
        b2=jnp.zeros((1, fd), jnp.float32),
        w3=jnp.asarray(w3p, jnp.bfloat16),
        b3=jnp.zeros((1, fd), jnp.float32),
        wc=jnp.asarray(wcp, jnp.bfloat16),
        bc=jnp.zeros((1, dim), jnp.float32),
    )


def init_params(key, dim, layer_num, f_pad=8):
    keys = jax.random.split(key, 4)
    params = {
        "gnn_w": (0.1 * jax.random.normal(keys[0], (layer_num, dim, dim),
                                          jnp.float32)).astype(jnp.bfloat16),
        "gnn_b": jnp.zeros((layer_num, 1, dim), jnp.float32),
        "rel_w": 0.1 * jax.random.normal(keys[1], (layer_num, dim, dim),
                                         jnp.float32),
        "rel_b": jnp.zeros((layer_num, 1, dim), jnp.float32),
    }
    node_bank = _pack_bank(keys[2], 5, f_pad, dim)  # degree/cen/pgrank/netw/katz
    pair_bank = _pack_bank(keys[3], 4, f_pad, dim)  # cn/jaccaard/ra/adamic
    params["banks"] = {k: jnp.stack([node_bank[k], pair_bank[k]])
                       for k in node_bank}
    return params


# ----------------------------------------------------------------------------
# ESPATune forward (hot paths in Pallas, tiny glue in plain JAX)
# ----------------------------------------------------------------------------
def espa_tune_forward(params, ent_embeds, adj_q, adj_scale, rel_embeds,
                      sub, obj, node_feats, pair_feats, layer_num):
    N, D = ent_embeds.shape
    B = sub.shape[0]
    Bp = pair_feats.shape[0]

    # Fused GNN layer stack: all layers + skip-sum + layer-fusion sum, one call.
    ent_out = gnn_stack(adj_q, adj_scale, ent_embeds.astype(jnp.bfloat16),
                        params["gnn_w"], params["gnn_b"])

    # Per-layer relation-embedding linear: tiny matmul, left to XLA
    # (a pallas_call launch would dominate by ~100x at this size).
    rel = rel_embeds
    for i in range(layer_num):
        rel = rel @ params["rel_w"][i] + params["rel_b"][i]

    # Feature MLP banks: only the 2B consumed node rows (gather BEFORE the MLP)
    # and the B pair rows, both padded to F_PAD features and run in ONE launch.
    banks = params["banks"]
    f_pad = banks["s"].shape[1]
    rows = jnp.concatenate([sub, obj], axis=0)            # 2B consumed rows
    node_rows = node_feats[rows]                          # (2B, 5)
    R = _round_up(max(2 * B, Bp), 8)
    node_x = jnp.zeros((R, f_pad), jnp.float32).at[
        :2 * B, :node_feats.shape[1]].set(node_rows)
    pair_x = jnp.zeros((R, f_pad), jnp.float32).at[
        :Bp, :pair_feats.shape[1]].set(pair_feats)
    x_stacked = jnp.stack([node_x, pair_x]).astype(jnp.bfloat16)

    bank_out = fused_feature_banks(x_stacked, banks)      # (2, R, D) f32
    node_info = bank_out[0, :2 * B]
    optpair_info_embed = bank_out[1, :Bp]

    # Gathers touch only B rows; plain XLA gather + add is the cheap path here.
    sub_embed = ent_out[sub]
    obj_embed = ent_out[obj]
    # TODO(synk): NfOp (NODE_FUSION_OPS) unknown; stand-in = additive fusion.
    sub_gnn_node = sub_embed + node_info[:B]
    obj_gnn_node = obj_embed + node_info[B:2 * B]

    return sub_gnn_node, obj_gnn_node, optpair_info_embed, rel


# ----------------------------------------------------------------------------
# Pure-JAX reference with identical bf16/int8 numerics (for validation)
# ----------------------------------------------------------------------------
def _reference_forward(params, ent_embeds, adj_q, adj_scale, rel_embeds,
                       sub, obj, node_feats, pair_feats, layer_num):
    bf, f32 = jnp.bfloat16, jnp.float32
    aq = adj_q.astype(bf)
    x = ent_embeds.astype(bf)
    lf = None
    for l in range(layer_num):
        ax = jnp.dot(aq, x, preferred_element_type=f32) * adj_scale
        h = jnp.dot(ax.astype(bf), params["gnn_w"][l],
                    preferred_element_type=f32) + params["gnn_b"][l]
        h = jnp.maximum(h, 0.0)
        lf = h if lf is None else lf + h
        if l < layer_num - 1:
            x = (h + x.astype(f32)).astype(bf)
    ent_out = lf

    rel = rel_embeds
    for i in range(layer_num):
        rel = rel @ params["rel_w"][i] + params["rel_b"][i]

    def bank_ref(xp, bk):
        h = jnp.dot(xp.astype(bf), bk["s"], preferred_element_type=f32) + bk["b1"]
        h = jnp.maximum(h, 0.0)
        h = jnp.dot(h.astype(bf), bk["w2"], preferred_element_type=f32) + bk["b2"]
        h = jnp.maximum(h, 0.0)
        h = jnp.dot(h.astype(bf), bk["w3"], preferred_element_type=f32) + bk["b3"]
        out = jnp.dot(h.astype(bf), bk["wc"], preferred_element_type=f32) + bk["bc"]
        return jnp.maximum(out, 0.0)

    banks = params["banks"]
    f_pad = banks["s"].shape[1]
    B = sub.shape[0]
    node_bank = {k: banks[k][0] for k in banks}
    pair_bank = {k: banks[k][1] for k in banks}
    rows = jnp.concatenate([sub, obj], axis=0)
    node_x = jnp.zeros((2 * B, f_pad), f32).at[
        :, :node_feats.shape[1]].set(node_feats[rows])
    pair_x = jnp.zeros((pair_feats.shape[0], f_pad), f32).at[
        :, :pair_feats.shape[1]].set(pair_feats)
    node_info = bank_ref(node_x, node_bank)
    pair_info = bank_ref(pair_x, pair_bank)
    sub_gnn_node = ent_out[sub] + node_info[:B]
    obj_gnn_node = ent_out[obj] + node_info[B:]
    return sub_gnn_node, obj_gnn_node, pair_info, rel


# ----------------------------------------------------------------------------
# Synthetic data + run
# ----------------------------------------------------------------------------
if __name__ == "__main__":
    ENT = 256       # ent_num
    DIM = 32        # input_dim == hidden_dim == output_dim
    REL = 8         # rel_num
    B = 8           # batch_pair_num
    LAYERS = 2      # gnn_layer_num

    key = jax.random.PRNGKey(0)
    key, k_emb, k_rel, k_feat, k_sub, k_obj, k_edge, k_par = jax.random.split(key, 8)

    ent_embeds = jax.random.normal(k_emb, (ENT, DIM), jnp.float32)
    rel_embeds = jax.random.normal(k_rel, (REL, DIM), jnp.float32)
    node_feats = jax.random.uniform(k_feat, (ENT, 5), jnp.float32, 0.1, 2.0)

    # Edges: ring + chord per entity + random extras.
    src_list, dst_list = [], []
    for e in range(ENT):
        src_list += [e, e]
        dst_list += [(e + 1) % ENT, (e + 3) % ENT]
    extra = np.asarray(jax.random.randint(k_edge, (2, ENT), 0, ENT))
    src_list += list(extra[0])
    dst_list += list(extra[1])
    src = np.asarray(src_list, np.int64)
    dst = np.asarray(dst_list, np.int64)

    # Dense, row-normalized adjacency (messages flow src -> dst).
    A = np.zeros((ENT, ENT), np.float32)
    np.add.at(A, (dst, src), 1.0)
    A = A / np.maximum(A.sum(axis=1, keepdims=True), 1.0)
    adj = jnp.asarray(A)

    # Pre-quantize / persist the adjacency in its kernel dtype OUTSIDE the jit
    # (avoids re-materializing an N^2 copy every forward).
    adj_q, adj_scale = jax.block_until_ready(quantize_adj(adj))

    sub_np = np.asarray(jax.random.randint(k_sub, (B,), 0, ENT))
    obj_np = np.asarray(jax.random.randint(k_obj, (B,), 0, ENT))
    sub = jnp.asarray(sub_np, jnp.int32)
    obj = jnp.asarray(obj_np, jnp.int32)

    # Host-side heuristic pair features (CN / Jaccard / RA / Adamic), mirroring
    # the PyTorch Python/dict code -- no Pallas equivalent for set arithmetic.
    s2o = {e: [] for e in range(ENT)}
    for s_, o_ in zip(src, dst):
        s2o[int(s_)].append(int(o_))
    s_neighbor = [s2o.get(int(x)) if s2o.get(int(x)) else [] for x in sub_np]
    o_neighbor = [s2o.get(int(x)) if s2o.get(int(x)) else [] for x in obj_np]
    CN = [set(s_neighbor[i]) & set(o_neighbor[i]) for i in range(B)]
    CNnum = np.array([len(c) for c in CN], np.float32)
    Jaccaard = np.array(
        [CNnum[i] / max(len(set(s_neighbor[i]) | set(o_neighbor[i])), 1)
         for i in range(B)], np.float32)
    RA = np.array(
        [sum((1.0 / len(s2o.get(x))) if len(s2o.get(x)) > 0 else 0.0
             for x in CN[i]) for i in range(B)], np.float32)
    Adamic = np.array(
        [sum((1.0 / np.log(len(s2o.get(x)))) if len(s2o.get(x)) > 1 else 0.0
             for x in CN[i]) for i in range(B)], np.float32)
    pair_feats = jnp.asarray(np.stack([CNnum, Jaccaard, RA, Adamic], axis=1))

    params = init_params(k_par, DIM, LAYERS)

    fwd = jax.jit(espa_tune_forward, static_argnames=("layer_num",))
    outs = fwd(params, ent_embeds, adj_q, adj_scale, rel_embeds, sub, obj,
               node_feats, pair_feats, layer_num=LAYERS)
    outs = jax.block_until_ready(outs)

    sub_gnn_node, obj_gnn_node, optpair_info_embed, rel_out = outs
    assert sub_gnn_node.shape == (B, DIM)
    assert obj_gnn_node.shape == (B, DIM)
    assert optpair_info_embed.shape == (B, DIM)
    assert rel_out.shape == (REL, DIM)
    assert np.all(np.isfinite(np.asarray(sub_gnn_node)))

    # Validate kernel mechanics against a pure-JAX reference that mirrors the
    # kernel's bf16/int8 numerics (differences are accumulation-order only).
    refs = _reference_forward(params, ent_embeds, adj_q, adj_scale, rel_embeds,
                              sub, obj, node_feats, pair_feats, LAYERS)
    for got, want in zip(outs, refs):
        np.testing.assert_allclose(np.asarray(got), np.asarray(want),
                                   rtol=3e-2, atol=3e-2)
    print("KERNEL_OK")
</pallas_src>

<mosaic_0001>
module attributes {stable_mosaic.version = 11 : i64} {
  func.func @_gnn_stack_kernel(%arg0: i32, %arg1: i32, %arg2: i32, %arg3: memref<256x256xi8, #tpu.memory_space<vmem>>, %arg4: memref<256x1xf32, #tpu.memory_space<vmem>>, %arg5: memref<256x32xbf16, #tpu.memory_space<vmem>>, %arg6: memref<1x32x32xbf16, #tpu.memory_space<vmem>>, %arg7: memref<1x1x32xf32, #tpu.memory_space<vmem>>, %arg8: memref<256x32xf32, #tpu.memory_space<vmem>>, %arg9: memref<256x32xf32, #tpu.memory_space<vmem>>, %arg10: memref<512x32xbf16, #tpu.memory_space<vmem>>, %arg11: memref<256x32xf32, #tpu.memory_space<vmem>>) attributes {dimension_semantics = [#tpu.dimension_semantics<arbitrary>, #tpu.dimension_semantics<arbitrary>, #tpu.dimension_semantics<arbitrary>], iteration_bounds = array<i64: 2, 1, 1>, scalar_prefetch = 0 : i64, scratch_operands = 3 : i64, tpu.core_type = #tpu.core_type<tc>, window_params = [{transform_indices = @transform_0, window_bounds = array<i64: 256, 256>}, {transform_indices = @transform_1, window_bounds = array<i64: 256, 1>}, {transform_indices = @transform_2, window_bounds = array<i64: 256, 32>}, {transform_indices = @transform_3, window_bounds = array<i64: 1, 32, 32>}, {transform_indices = @transform_4, window_bounds = array<i64: 1, 1, 32>}, {transform_indices = @transform_5, window_bounds = array<i64: 256, 32>}]} {
    %c2_i32 = arith.constant 2 : i32
    %c0_i32 = arith.constant 0 : i32
    %0 = arith.cmpi eq, %c2_i32, %c0_i32 : i32
    %c1_i32 = arith.constant 1 : i32
    %1 = arith.select %0, %c1_i32, %c2_i32 : i32
    %2 = arith.remsi %arg0, %1 : i32
    %c0_i32_0 = arith.constant 0 : i32
    %3 = arith.cmpi ne, %2, %c0_i32_0 : i32
    %c0_i32_1 = arith.constant 0 : i32
    %4 = arith.cmpi slt, %2, %c0_i32_1 : i32
    %c0_i32_2 = arith.constant 0 : i32
    %5 = arith.cmpi slt, %1, %c0_i32_2 : i32
    %6 = arith.xori %4, %5 : i1
    %7 = arith.andi %6, %3 : i1
    %8 = arith.addi %2, %1 : i32
    %9 = arith.select %7, %8, %2 : i32
    %c256_i32 = arith.constant 256 : i32
    %10 = arith.muli %9, %c256_i32 : i32
    %c1_i32_3 = arith.constant 1 : i32
    %11 = arith.addi %arg0, %c1_i32_3 : i32
    %c2_i32_4 = arith.constant 2 : i32
    %c0_i32_5 = arith.constant 0 : i32
    %12 = arith.cmpi eq, %c2_i32_4, %c0_i32_5 : i32
    %c1_i32_6 = arith.constant 1 : i32
    %13 = arith.select %12, %c1_i32_6, %c2_i32_4 : i32
    %14 = arith.remsi %11, %13 : i32
    %c0_i32_7 = arith.constant 0 : i32
    %15 = arith.cmpi ne, %14, %c0_i32_7 : i32
    %c0_i32_8 = arith.constant 0 : i32
    %16 = arith.cmpi slt, %14, %c0_i32_8 : i32
    %c0_i32_9 = arith.constant 0 : i32
    %17 = arith.cmpi slt, %13, %c0_i32_9 : i32
    %18 = arith.xori %16, %17 : i1
    %19 = arith.andi %18, %15 : i1
    %20 = arith.addi %14, %13 : i32
    %21 = arith.select %19, %20, %14 : i32
    %c256_i32_10 = arith.constant 256 : i32
    %22 = arith.muli %21, %c256_i32_10 : i32
    %c256_i32_11 = arith.constant 256 : i32
    %23 = arith.muli %arg2, %c256_i32_11 : i32
    %24 = tpu.assume_multiple %23, 256 : i32
    %c256_i32_12 = arith.constant 256 : i32
    %25 = arith.muli %arg1, %c256_i32_12 : i32
    %26 = tpu.assume_multiple %25, 256 : i32
    %c0_i32_13 = arith.constant 0 : i32
    %27 = arith.cmpi eq, %arg2, %c0_i32_13 : i32
    %28 = arith.extui %27 : i1 to i32
    %c0_i32_14 = arith.constant 0 : i32
    %29 = arith.cmpi ne, %28, %c0_i32_14 : i32
    scf.if %29 {
      %cst = arith.constant 0.000000e+00 : f32
      %43 = vector.broadcast %cst : f32 to vector<256x32xf32>
      %c0_22 = arith.constant 0 : index
      %c0_23 = arith.constant 0 : index
      %44 = vector.load %arg9[%c0_22, %c0_23] : memref<256x32xf32, #tpu.memory_space<vmem>>, vector<256x32xf32>
      tpu.vector_store %arg9[%c0_22, %c0_23], %43 {strides = array<i32>} : memref<256x32xf32, #tpu.memory_space<vmem>>, vector<256x32xf32>,
    } else {
    }
    %c0 = arith.constant 0 : index
    %c0_15 = arith.constant 0 : index
    %30 = vector.load %arg3[%c0, %c0_15] : memref<256x256xi8, #tpu.memory_space<vmem>>, vector<256x256xi8>
    %31 = arith.sitofp %30 : vector<256x256xi8> to vector<256x256xbf16>
    %c0_i32_16 = arith.constant 0 : i32
    %32 = arith.cmpi eq, %arg0, %c0_i32_16 : i32
    %c0_i32_17 = arith.constant 0 : i32
    %33 = arith.cmpi eq, %arg1, %c0_i32_17 : i32
    %34 = arith.andi %32, %33 : i1
    %35 = arith.extui %34 : i1 to i32
    %c0_i32_18 = arith.constant 0 : i32
    %36 = arith.cmpi ne, %35, %c0_i32_18 : i32
    scf.if %36 {
      %c0_22 = arith.constant 0 : index
      %c0_23 = arith.constant 0 : index
      %43 = vector.load %arg5[%c0_22, %c0_23] : memref<256x32xbf16, #tpu.memory_space<vmem>>, vector<256x32xbf16>
      %c0_24 = arith.constant 0 : index
      %c0_25 = arith.constant 0 : index
      %44 = vector.load %arg9[%c0_24, %c0_25] : memref<256x32xf32, #tpu.memory_space<vmem>>, vector<256x32xf32>
      %cst = arith.constant dense<0.000000e+00> : vector<256x32xf32>
      %45 = tpu.matmul %31, %43, %cst {dimension_numbers = #tpu.dot_dimension_numbers<[1], [0], [0], [1], [0, 0, 1, 1], [], []>} : vector<256x256xbf16>, vector<256x32xbf16>, vector<256x32xf32> -> vector<256x32xf32>
      %46 = arith.addf %44, %45 : vector<256x32xf32>
      %c0_26 = arith.constant 0 : index
      %c0_27 = arith.constant 0 : index
      %47 = vector.load %arg9[%c0_26, %c0_27] : memref<256x32xf32, #tpu.memory_space<vmem>>, vector<256x32xf32>
      tpu.vector_store %arg9[%c0_26, %c0_27], %46 {strides = array<i32>} : memref<256x32xf32, #tpu.memory_space<vmem>>, vector<256x32xf32>,
      %48 = arith.index_cast %24 : i32 to index
      %c0_28 = arith.constant 0 : index
      %49 = vector.load %arg10[%48, %c0_28] : memref<512x32xbf16, #tpu.memory_space<vmem>>, vector<256x32xbf16>
      tpu.vector_store %arg10[%48, %c0_28], %43 {strides = array<i32>} : memref<512x32xbf16, #tpu.memory_space<vmem>>, vector<256x32xbf16>,
    } else {
    }
    %true = arith.constant true
    %37 = arith.xori %34, %true : i1
    %38 = arith.extui %37 : i1 to i32
    %c0_i32_19 = arith.constant 0 : i32
    %39 = arith.cmpi ne, %38, %c0_i32_19 : i32
    scf.if %39 {
      %43 = arith.addi %10, %24 : i32
      %44 = arith.index_cast %43 : i32 to index
      %c0_22 = arith.constant 0 : index
      %45 = vector.load %arg10[%44, %c0_22] : memref<512x32xbf16, #tpu.memory_space<vmem>>, vector<256x32xbf16>
      %c0_23 = arith.constant 0 : index
      %c0_24 = arith.constant 0 : index
      %46 = vector.load %arg9[%c0_23, %c0_24] : memref<256x32xf32, #tpu.memory_space<vmem>>, vector<256x32xf32>
      %cst = arith.constant dense<0.000000e+00> : vector<256x32xf32>
      %47 = tpu.matmul %31, %45, %cst {dimension_numbers = #tpu.dot_dimension_numbers<[1], [0], [0], [1], [0, 0, 1, 1], [], []>} : vector<256x256xbf16>, vector<256x32xbf16>, vector<256x32xf32> -> vector<256x32xf32>
      %48 = arith.addf %46, %47 : vector<256x32xf32>
      %c0_25 = arith.constant 0 : index
      %c0_26 = arith.constant 0 : index
      %49 = vector.load %arg9[%c0_25, %c0_26] : memref<256x32xf32, #tpu.memory_space<vmem>>, vector<256x32xf32>
      tpu.vector_store %arg9[%c0_25, %c0_26], %48 {strides = array<i32>} : memref<256x32xf32, #tpu.memory_space<vmem>>, vector<256x32xf32>,
    } else {
    }
    %c0_i32_20 = arith.constant 0 : i32
    %40 = arith.cmpi eq, %arg2, %c0_i32_20 : i32
    %41 = arith.extui %40 : i1 to i32
    %c0_i32_21 = arith.constant 0 : i32
    %42 = arith.cmpi ne, %41, %c0_i32_21 : i32
    scf.if %42 {
      %c0_22 = arith.constant 0 : index
      %c0_23 = arith.constant 0 : index
      %43 = vector.load %arg9[%c0_22, %c0_23] : memref<256x32xf32, #tpu.memory_space<vmem>>, vector<256x32xf32>
      %c0_24 = arith.constant 0 : index
      %c0_25 = arith.constant 0 : index
      %44 = vector.load %arg4[%c0_24, %c0_25] : memref<256x1xf32, #tpu.memory_space<vmem>>, vector<256x1xf32>
      %45 = vector.broadcast %44 : vector<256x1xf32> to vector<256x32xf32>
      %46 = arith.mulf %43, %45 : vector<256x32xf32>
      %47 = arith.truncf %46 : vector<256x32xf32> to vector<256x32xbf16>
      %c0_26 = arith.constant 0 : index
      %c0_27 = arith.constant 0 : index
      %c0_28 = arith.constant 0 : index
      %48 = vector.load %arg6[%c0_26, %c0_27, %c0_28] : memref<1x32x32xbf16, #tpu.memory_space<vmem>>, vector<1x32x32xbf16>
      %49 = vector.shape_cast %48 : vector<1x32x32xbf16> to vector<32x32xbf16>
      %cst = arith.constant dense<0.000000e+00> : vector<256x32xf32>
      %50 = tpu.matmul %47, %49, %cst {dimension_numbers = #tpu.dot_dimension_numbers<[1], [0], [0], [1], [0, 0, 1, 1], [], []>} : vector<256x32xbf16>, vector<32x32xbf16>, vector<256x32xf32> -> vector<256x32xf32>
      %c0_29 = arith.constant 0 : index
      %c0_30 = arith.constant 0 : index
      %c0_31 = arith.constant 0 : index
      %51 = vector.load %arg7[%c0_29, %c0_30, %c0_31] : memref<1x1x32xf32, #tpu.memory_space<vmem>>, vector<1x1x32xf32>
      %52 = vector.shape_cast %51 : vector<1x1x32xf32> to vector<1x32xf32>
      %53 = vector.broadcast %52 : vector<1x32xf32> to vector<256x32xf32>
      %54 = arith.addf %50, %53 : vector<256x32xf32>
      %cst_32 = arith.constant 0.000000e+00 : f32
      %55 = vector.broadcast %cst_32 : f32 to vector<256x32xf32>
      %56 = arith.maximumf %54, %55 : vector<256x32xf32>
      %c0_i32_33 = arith.constant 0 : i32
      %57 = arith.cmpi eq, %arg0, %c0_i32_33 : i32
      %58 = arith.extui %57 : i1 to i32
      %c0_i32_34 = arith.constant 0 : i32
      %59 = arith.cmpi ne, %58, %c0_i32_34 : i32
      scf.if %59 {
        %69 = arith.index_cast %26 : i32 to index
        %c0_41 = arith.constant 0 : index
        %70 = vector.load %arg11[%69, %c0_41] : memref<256x32xf32, #tpu.memory_space<vmem>>, vector<256x32xf32>
        tpu.vector_store %arg11[%69, %c0_41], %56 {strides = array<i32>} : memref<256x32xf32, #tpu.memory_space<vmem>>, vector<256x32xf32>,
      } else {
      }
      %c0_i32_35 = arith.constant 0 : i32
      %60 = arith.cmpi sgt, %arg0, %c0_i32_35 : i32
      %61 = arith.extui %60 : i1 to i32
      %c0_i32_36 = arith.constant 0 : i32
      %62 = arith.cmpi ne, %61, %c0_i32_36 : i32
      scf.if %62 {
        %69 = arith.index_cast %26 : i32 to index
        %c0_41 = arith.constant 0 : index
        %70 = vector.load %arg11[%69, %c0_41] : memref<256x32xf32, #tpu.memory_space<vmem>>, vector<256x32xf32>
        %71 = arith.addf %70, %56 : vector<256x32xf32>
        %72 = arith.index_cast %26 : i32 to index
        %c0_42 = arith.constant 0 : index
        %73 = vector.load %arg11[%72, %c0_42] : memref<256x32xf32, #tpu.memory_space<vmem>>, vector<256x32xf32>
        tpu.vector_store %arg11[%72, %c0_42], %71 {strides = array<i32>} : memref<256x32xf32, #tpu.memory_space<vmem>>, vector<256x32xf32>,
      } else {
      }
      %c1_i32_37 = arith.constant 1 : i32
      %63 = arith.cmpi slt, %arg0, %c1_i32_37 : i32
      %64 = arith.extui %63 : i1 to i32
      %c0_i32_38 = arith.constant 0 : i32
      %65 = arith.cmpi ne, %64, %c0_i32_38 : i32
      scf.if %65 {
        %69 = arith.addi %10, %26 : i32
        %70 = arith.index_cast %69 : i32 to index
        %c0_41 = arith.constant 0 : index
        %71 = vector.load %arg10[%70, %c0_41] : memref<512x32xbf16, #tpu.memory_space<vmem>>, vector<256x32xbf16>
        %72 = arith.extf %71 : vector<256x32xbf16> to vector<256x32xf32>
        %73 = arith.addf %56, %72 : vector<256x32xf32>
        %74 = arith.truncf %73 : vector<256x32xf32> to vector<256x32xbf16>
        %75 = arith.addi %22, %26 : i32
        %76 = arith.index_cast %75 : i32 to index
        %c0_42 = arith.constant 0 : index
        %77 = vector.load %arg10[%76, %c0_42] : memref<512x32xbf16, #tpu.memory_space<vmem>>, vector<256x32xbf16>
        tpu.vector_store %arg10[%76, %c0_42], %74 {strides = array<i32>} : memref<512x32xbf16, #tpu.memory_space<vmem>>, vector<256x32xbf16>,
      } else {
      }
      %c1_i32_39 = arith.constant 1 : i32
      %66 = arith.cmpi eq, %arg0, %c1_i32_39 : i32
      %67 = arith.extui %66 : i1 to i32
      %c0_i32_40 = arith.constant 0 : i32
      %68 = arith.cmpi ne, %67, %c0_i32_40 : i32
      scf.if %68 {
        %69 = arith.index_cast %26 : i32 to index
        %c0_41 = arith.constant 0 : index
        %70 = vector.load %arg11[%69, %c0_41] : memref<256x32xf32, #tpu.memory_space<vmem>>, vector<256x32xf32>
        %c0_42 = arith.constant 0 : index
        %c0_43 = arith.constant 0 : index
        %71 = vector.load %arg8[%c0_42, %c0_43] : memref<256x32xf32, #tpu.memory_space<vmem>>, vector<256x32xf32>
        tpu.vector_store %arg8[%c0_42, %c0_43], %70 {strides = array<i32>} : memref<256x32xf32, #tpu.memory_space<vmem>>, vector<256x32xf32>,
      } else {
      }
    } else {
    }
    return
  }
  func.func @transform_0(%arg0: i32, %arg1: i32, %arg2: i32) -> (i32, i32) {
    %c0_i32 = arith.constant 0 : i32
    return %arg1, %arg2 : i32, i32
  }
  func.func @transform_1(%arg0: i32, %arg1: i32, %arg2: i32) -> (i32, i32) {
    %c0_i32 = arith.constant 0 : i32
    %c0_i32_0 = arith.constant 0 : i32
    return %arg1, %c0_i32 : i32, i32
  }
  func.func @transform_2(%arg0: i32, %arg1: i32, %arg2: i32) -> (i32, i32) {
    %c0_i32 = arith.constant 0 : i32
    %0 = arith.cmpi eq, %arg0, %c0_i32 : i32
    %c0_i32_0 = arith.constant 0 : i32
    %1 = arith.cmpi eq, %arg1, %c0_i32_0 : i32
    %2 = arith.andi %0, %1 : i1
    %c0_i32_1 = arith.constant 0 : i32
    %3 = arith.select %2, %arg2, %c0_i32_1 : i32
    %c0_i32_2 = arith.constant 0 : i32
    %c0_i32_3 = arith.constant 0 : i32
    return %3, %c0_i32_2 : i32, i32
  }
  func.func @transform_3(%arg0: i32, %arg1: i32, %arg2: i32) -> (i32, i32, i32) {
    %c0_i32 = arith.constant 0 : i32
    %c0_i32_0 = arith.constant 0 : i32
    %c0_i32_1 = arith.constant 0 : i32
    return %arg0, %c0_i32, %c0_i32_0 : i32, i32, i32
  }
  func.func @transform_4(%arg0: i32, %arg1: i32, %arg2: i32) -> (i32, i32, i32) {
    %c0_i32 = arith.constant 0 : i32
    %c0_i32_0 = arith.constant 0 : i32
    %c0_i32_1 = arith.constant 0 : i32
    return %arg0, %c0_i32, %c0_i32_0 : i32, i32, i32
  }
  func.func @transform_5(%arg0: i32, %arg1: i32, %arg2: i32) -> (i32, i32) {
    %c1_i32 = arith.constant 1 : i32
    %0 = arith.cmpi eq, %arg0, %c1_i32 : i32
    %c0_i32 = arith.constant 0 : i32
    %1 = arith.select %0, %arg1, %c0_i32 : i32
    %c0_i32_0 = arith.constant 0 : i32
    %c0_i32_1 = arith.constant 0 : i32
    return %1, %c0_i32_0 : i32, i32
  }
}

module attributes {stable_mosaic.version = 11 : i64} {
  func.func @_feat_mlp_kernel(%arg0: i32, %arg1: memref<1x16x8xbf16, #tpu.memory_space<vmem>>, %arg2: memref<1x8x256xbf16, #tpu.memory_space<vmem>>, %arg3: memref<1x1x256xf32, #tpu.memory_space<vmem>>, %arg4: memref<1x256x256xbf16, #tpu.memory_space<vmem>>, %arg5: memref<1x1x256xf32, #tpu.memory_space<vmem>>, %arg6: memref<1x256x256xbf16, #tpu.memory_space<vmem>>, %arg7: memref<1x1x256xf32, #tpu.memory_space<vmem>>, %arg8: memref<1x256x32xbf16, #tpu.memory_space<vmem>>, %arg9: memref<1x1x32xf32, #tpu.memory_space<vmem>>, %arg10: memref<1x16x32xf32, #tpu.memory_space<vmem>>) attributes {dimension_semantics = [#tpu.dimension_semantics<arbitrary>], iteration_bounds = array<i64: 2>, scalar_prefetch = 0 : i64, scratch_operands = 0 : i64, tpu.core_type = #tpu.core_type<tc>, window_params = [{transform_indices = @transform_0, window_bounds = array<i64: 1, 16, 8>}, {transform_indices = @transform_1, window_bounds = array<i64: 1, 8, 256>}, {transform_indices = @transform_2, window_bounds = array<i64: 1, 1, 256>}, {transform_indices = @transform_3, window_bounds = array<i64: 1, 256, 256>}, {transform_indices = @transform_4, window_bounds = array<i64: 1, 1, 256>}, {transform_indices = @transform_5, window_bounds = array<i64: 1, 256, 256>}, {transform_indices = @transform_6, window_bounds = array<i64: 1, 1, 256>}, {transform_indices = @transform_7, window_bounds = array<i64: 1, 256, 32>}, {transform_indices = @transform_8, window_bounds = array<i64: 1, 1, 32>}, {transform_indices = @transform_9, window_bounds = array<i64: 1, 16, 32>}]} {
    %c0 = arith.constant 0 : index
    %c0_0 = arith.constant 0 : index
    %c0_1 = arith.constant 0 : index
    %0 = vector.load %arg1[%c0, %c0_0, %c0_1] : memref<1x16x8xbf16, #tpu.memory_space<vmem>>, vector<1x16x8xbf16>
    %1 = vector.shape_cast %0 : vector<1x16x8xbf16> to vector<16x8xbf16>
    %c0_2 = arith.constant 0 : index
    %c0_3 = arith.constant 0 : index
    %c0_4 = arith.constant 0 : index
    %2 = vector.load %arg2[%c0_2, %c0_3, %c0_4] : memref<1x8x256xbf16, #tpu.memory_space<vmem>>, vector<1x8x256xbf16>
    %3 = vector.shape_cast %2 : vector<1x8x256xbf16> to vector<8x256xbf16>
    %cst = arith.constant dense<0.000000e+00> : vector<16x256xf32>
    %4 = tpu.matmul %1, %3, %cst {dimension_numbers = #tpu.dot_dimension_numbers<[1], [0], [0], [1], [0, 0, 1, 1], [], []>} : vector<16x8xbf16>, vector<8x256xbf16>, vector<16x256xf32> -> vector<16x256xf32>
    %c0_5 = arith.constant 0 : index
    %c0_6 = arith.constant 0 : index
    %c0_7 = arith.constant 0 : index
    %5 = vector.load %arg3[%c0_5, %c0_6, %c0_7] : memref<1x1x256xf32, #tpu.memory_space<vmem>>, vector<1x1x256xf32>
    %6 = vector.shape_cast %5 : vector<1x1x256xf32> to vector<1x256xf32>
    %7 = vector.broadcast %6 : vector<1x256xf32> to vector<16x256xf32>
    %8 = arith.addf %4, %7 : vector<16x256xf32>
    %cst_8 = arith.constant 0.000000e+00 : f32
    %9 = vector.broadcast %cst_8 : f32 to vector<16x256xf32>
    %10 = arith.maximumf %8, %9 : vector<16x256xf32>
    %11 = arith.truncf %10 : vector<16x256xf32> to vector<16x256xbf16>
    %c0_9 = arith.constant 0 : index
    %c0_10 = arith.constant 0 : index
    %c0_11 = arith.constant 0 : index
    %12 = vector.load %arg4[%c0_9, %c0_10, %c0_11] : memref<1x256x256xbf16, #tpu.memory_space<vmem>>, vector<1x256x256xbf16>
    %13 = vector.shape_cast %12 : vector<1x256x256xbf16> to vector<256x256xbf16>
    %cst_12 = arith.constant dense<0.000000e+00> : vector<16x256xf32>
    %14 = tpu.matmul %11, %13, %cst_12 {dimension_numbers = #tpu.dot_dimension_numbers<[1], [0], [0], [1], [0, 0, 1, 1], [], []>} : vector<16x256xbf16>, vector<256x256xbf16>, vector<16x256xf32> -> vector<16x256xf32>
    %c0_13 = arith.constant 0 : index
    %c0_14 = arith.constant 0 : index
    %c0_15 = arith.constant 0 : index
    %15 = vector.load %arg5[%c0_13, %c0_14, %c0_15] : memref<1x1x256xf32, #tpu.memory_space<vmem>>, vector<1x1x256xf32>
    %16 = vector.shape_cast %15 : vector<1x1x256xf32> to vector<1x256xf32>
    %17 = vector.broadcast %16 : vector<1x256xf32> to vector<16x256xf32>
    %18 = arith.addf %14, %17 : vector<16x256xf32>
    %cst_16 = arith.constant 0.000000e+00 : f32
    %19 = vector.broadcast %cst_16 : f32 to vector<16x256xf32>
    %20 = arith.maximumf %18, %19 : vector<16x256xf32>
    %21 = arith.truncf %20 : vector<16x256xf32> to vector<16x256xbf16>
    %c0_17 = arith.constant 0 : index
    %c0_18 = arith.constant 0 : index
    %c0_19 = arith.constant 0 : index
    %22 = vector.load %arg6[%c0_17, %c0_18, %c0_19] : memref<1x256x256xbf16, #tpu.memory_space<vmem>>, vector<1x256x256xbf16>
    %23 = vector.shape_cast %22 : vector<1x256x256xbf16> to vector<256x256xbf16>
    %cst_20 = arith.constant dense<0.000000e+00> : vector<16x256xf32>
    %24 = tpu.matmul %21, %23, %cst_20 {dimension_numbers = #tpu.dot_dimension_numbers<[1], [0], [0], [1], [0, 0, 1, 1], [], []>} : vector<16x256xbf16>, vector<256x256xbf16>, vector<16x256xf32> -> vector<16x256xf32>
    %c0_21 = arith.constant 0 : index
    %c0_22 = arith.constant 0 : index
    %c0_23 = arith.constant 0 : index
    %25 = vector.load %arg7[%c0_21, %c0_22, %c0_23] : memref<1x1x256xf32, #tpu.memory_space<vmem>>, vector<1x1x256xf32>
    %26 = vector.shape_cast %25 : vector<1x1x256xf32> to vector<1x256xf32>
    %27 = vector.broadcast %26 : vector<1x256xf32> to vector<16x256xf32>
    %28 = arith.addf %24, %27 : vector<16x256xf32>
    %29 = arith.truncf %28 : vector<16x256xf32> to vector<16x256xbf16>
    %c0_24 = arith.constant 0 : index
    %c0_25 = arith.constant 0 : index
    %c0_26 = arith.constant 0 : index
    %30 = vector.load %arg8[%c0_24, %c0_25, %c0_26] : memref<1x256x32xbf16, #tpu.memory_space<vmem>>, vector<1x256x32xbf16>
    %31 = vector.shape_cast %30 : vector<1x256x32xbf16> to vector<256x32xbf16>
    %cst_27 = arith.constant dense<0.000000e+00> : vector<16x32xf32>
    %32 = tpu.matmul %29, %31, %cst_27 {dimension_numbers = #tpu.dot_dimension_numbers<[1], [0], [0], [1], [0, 0, 1, 1], [], []>} : vector<16x256xbf16>, vector<256x32xbf16>, vector<16x32xf32> -> vector<16x32xf32>
    %c0_28 = arith.constant 0 : index
    %c0_29 = arith.constant 0 : index
    %c0_30 = arith.constant 0 : index
    %33 = vector.load %arg9[%c0_28, %c0_29, %c0_30] : memref<1x1x32xf32, #tpu.memory_space<vmem>>, vector<1x1x32xf32>
    %34 = vector.shape_cast %33 : vector<1x1x32xf32> to vector<1x32xf32>
    %35 = vector.broadcast %34 : vector<1x32xf32> to vector<16x32xf32>
    %36 = arith.addf %32, %35 : vector<16x32xf32>
    %cst_31 = arith.constant 0.000000e+00 : f32
    %37 = vector.broadcast %cst_31 : f32 to vector<16x32xf32>
    %38 = arith.maximumf %36, %37 : vector<16x32xf32>
    %39 = vector.shape_cast %38 : vector<16x32xf32> to vector<1x16x32xf32>
    %c0_32 = arith.constant 0 : index
    %c0_33 = arith.constant 0 : index
    %c0_34 = arith.constant 0 : index
    %40 = vector.load %arg10[%c0_32, %c0_33, %c0_34] : memref<1x16x32xf32, #tpu.memory_space<vmem>>, vector<1x16x32xf32>
    tpu.vector_store %arg10[%c0_32, %c0_33, %c0_34], %39 {strides = array<i32>} : memref<1x16x32xf32, #tpu.memory_space<vmem>>, vector<1x16x32xf32>,
    return
  }
  func.func @transform_0(%arg0: i32) -> (i32, i32, i32) {
    %c0_i32 = arith.constant 0 : i32
    %c0_i32_0 = arith.constant 0 : i32
    %c0_i32_1 = arith.constant 0 : i32
    return %arg0, %c0_i32, %c0_i32_0 : i32, i32, i32
  }
  func.func @transform_1(%arg0: i32) -> (i32, i32, i32) {
    %c0_i32 = arith.constant 0 : i32
    %c0_i32_0 = arith.constant 0 : i32
    %c0_i32_1 = arith.constant 0 : i32
    return %arg0, %c0_i32, %c0_i32_0 : i32, i32, i32
  }
  func.func @transform_2(%arg0: i32) -> (i32, i32, i32) {
    %c0_i32 = arith.constant 0 : i32
    %c0_i32_0 = arith.constant 0 : i32
    %c0_i32_1 = arith.constant 0 : i32
    return %arg0, %c0_i32, %c0_i32_0 : i32, i32, i32
  }
  func.func @transform_3(%arg0: i32) -> (i32, i32, i32) {
    %c0_i32 = arith.constant 0 : i32
    %c0_i32_0 = arith.constant 0 : i32
    %c0_i32_1 = arith.constant 0 : i32
    return %arg0, %c0_i32, %c0_i32_0 : i32, i32, i32
  }
  func.func @transform_4(%arg0: i32) -> (i32, i32, i32) {
    %c0_i32 = arith.constant 0 : i32
    %c0_i32_0 = arith.constant 0 : i32
    %c0_i32_1 = arith.constant 0 : i32
    return %arg0, %c0_i32, %c0_i32_0 : i32, i32, i32
  }
  func.func @transform_5(%arg0: i32) -> (i32, i32, i32) {
    %c0_i32 = arith.constant 0 : i32
    %c0_i32_0 = arith.constant 0 : i32
    %c0_i32_1 = arith.constant 0 : i32
    return %arg0, %c0_i32, %c0_i32_0 : i32, i32, i32
  }
  func.func @transform_6(%arg0: i32) -> (i32, i32, i32) {
    %c0_i32 = arith.constant 0 : i32
    %c0_i32_0 = arith.constant 0 : i32
    %c0_i32_1 = arith.constant 0 : i32
    return %arg0, %c0_i32, %c0_i32_0 : i32, i32, i32
  }
  func.func @transform_7(%arg0: i32) -> (i32, i32, i32) {
    %c0_i32 = arith.constant 0 : i32
    %c0_i32_0 = arith.constant 0 : i32
    %c0_i32_1 = arith.constant 0 : i32
    return %arg0, %c0_i32, %c0_i32_0 : i32, i32, i32
  }
  func.func @transform_8(%arg0: i32) -> (i32, i32, i32) {
    %c0_i32 = arith.constant 0 : i32
    %c0_i32_0 = arith.constant 0 : i32
    %c0_i32_1 = arith.constant 0 : i32
    return %arg0, %c0_i32, %c0_i32_0 : i32, i32, i32
  }
  func.func @transform_9(%arg0: i32) -> (i32, i32, i32) {
    %c0_i32 = arith.constant 0 : i32
    %c0_i32_0 = arith.constant 0 : i32
    %c0_i32_1 = arith.constant 0 : i32
    return %arg0, %c0_i32, %c0_i32_0 : i32, i32, i32
  }
}

</mosaic_0001>

<bundles_post_ra>
// kernel: espa_tune_forward.3
= control target key start
LH: loop header
LB: loop body
LE: loop exit
PB: predicated region body
PF: predicated region fallthrough
CT: control target
= control target key end

     0   :  { %s1714_s30 = smov 0   ;;  %s1868_s0 = inlined_call_operand.vmem [shape: bf16[2,16,8], index: 0, kind: input, shape index: {}]   ;;  %s1869_s1 = inlined_call_operand.vmem [shape: bf16[2,8,256], index: 1, kind: input, shape index: {}]   ;;  %s1870_s2 = inlined_call_operand.vmem [shape: f32[2,1,256], index: 2, kind: input, shape index: {}]   ;;  %s1871_s3 = inlined_call_operand.vmem [shape: bf16[2,256,256], index: 3, kind: input, shape index: {}]   ;;  %s1872_s4 = inlined_call_operand.vmem [shape: f32[2,1,256], index: 4, kind: input, shape index: {}]   ;;  %s1873_s5 = inlined_call_operand.vmem [shape: bf16[2,256,256], index: 5, kind: input, shape index: {}]   ;;  %s1874_s6 = inlined_call_operand.vmem [shape: f32[2,1,256], index: 6, kind: input, shape index: {}]   ;;  %s1875_s7 = inlined_call_operand.vmem [shape: bf16[2,256,32], index: 7, kind: input, shape index: {}]   ;;  %s1876_s8 = inlined_call_operand.vmem [shape: f32[2,1,32], index: 8, kind: input, shape index: {}]   ;;  %s1877_s9 = inlined_call_operand.vmem [shape: f32[2,16,32], index: 9, kind: output, shape index: {}]  }
   0x1 LB: > { %s1395_s10 = sadd.s32 4294967295, %s1661_s30   ;;  %p1399_p0 = scmp.ge.s32.totalorder %s1661_s30, 1  ;;  %s1661_s30 = sphi %s1714_s30, %s19_s30  }
   0x2   : > { %p362_p1 = scmp.lt.s32.totalorder %s1661_s30, 3 }
   0x4   : > { %p363_p2 = pnand %p1399_p0, %p362_p1 }
   0x5   : > { %p433_p3 = scmp.lt.s32.totalorder (!%p363_p2), %s1395_s10, 1  ;;  %v1663_v0 = vmov (!%p363_p2), 0   ;;  %vm508_vm0 = vcmask (!%p363_p2), 1043456   ;;  %vm504_vm1 = vcmask (!%p363_p2), 64512   ;;  %vm1244_vm2 = vcmask (!%p363_p2), 261120  }
   0x6   : > { %366 = sbr.rel (%p363_p2) target bundleno = 909 (0x38d), region = 56  ;;  %547 = vmatprep.mubr.bf16.mxu0 (!%p363_p2), %v1663_v0 }
   0xd   : > { %s1879_s10 = smov (!%p433_p3, %s1395_s10), 1 }
   0xe   : > { %s1503_s11 = sshll.u32 %s1879_s10, 3  ;;  %s1505_s12 = sshll.u32 %s1879_s10, 8 }
   0xf   : > { %s437_s15 = scalar_lea.vmem %s1868_s0, %s1503_s11  ;;  %s442_s18 = scalar_lea.vmem %s1869_s1, %s1503_s11 }
  0x10   : > { %s1737_s21 = scalar_lea.vmem %s1871_s3, %s1505_s12  ;;  %v481_v1 = vld [vmem:[%s442_s18] sm:$0xff]  ;;  %s1756_s24 = scalar_lea.vmem %s1873_s5, %s1505_s12 }
  0x11   : > { %v1417_v2 = vcombine.high %v481_v1, %v481_v1  ;;  %v1416_v3 = vcombine.low %v481_v1, %v481_v1  ;;  %v1543_v4 = vld [vmem:[%s1737_s21 + $0x4] ss:$8 sps:$4 sm:$0xff]   ;;  %v1545_v5 = vld [vmem:[%s1737_s21] ss:$8 sps:$4 sm:$0xff]   ;;  %v1546_v8 = vld [vmem:[%s1737_s21 + $0x14] ss:$8 sps:$4 sm:$0xff]   ;;  %s472_s22 = scalar_lea.vmem %s1876_s8, %s1879_s10 }
  0x12   : > { %v1540_v6 = vld [vmem:[%s437_s15] sm:$0xff]   ;;  %768 = vmatprep.subr.bf16.mxu1 %v1543_v4  ;;  %v1548_v9 = vld [vmem:[%s1737_s21 + $0x10] ss:$8 sps:$4 sm:$0xff]   ;;  %v1552_v12 = vld [vmem:[%s1737_s21 + $0x34] ss:$8 sps:$4 sm:$0xff]   ;;  %s1507_s25 = sshll.u32 %s1879_s10, 7 }
  0x13   : > { %1418 = vmatprep.subr.msk.bf16.mxu0 %vm508_vm0, %v1417_v2  ;;  %v510_v7 = vsel %vm508_vm0, %v1416_v3, 0  ;;  %769 = vmatpush1.bf16.msra.mxu1 %v1545_v5  ;;  %v1549_v10 = vld [vmem:[%s1737_s21 + $0x24] ss:$8 sps:$4 sm:$0xff]   ;;  %v1551_v11 = vld [vmem:[%s1737_s21 + $0x20] ss:$8 sps:$4 sm:$0xff]   ;;  %s1767_s28 = scalar_lea.vmem %s1875_s7, %s1507_s25  ;;  %v484_v2 = vlaneseq  ;;  %s1813_s29 = sshll.u32 %s1879_s10, 1 }
  0x14   : > { %516 = vmatpush1.bf16.msra.mxu0 %v510_v7  ;;  %770 = vmatprep.subr.bf16.mxu1 %v1546_v8  ;;  %v1554_v13 = vld [vmem:[%s1737_s21 + $0x30] ss:$8 sps:$4 sm:$0xff]   ;;  %v1555_v14 = vld [vmem:[%s1737_s21 + $0x44] ss:$8 sps:$4 sm:$0xff]   ;;  %v1557_v15 = vld [vmem:[%s1737_s21 + $0x40] ss:$8 sps:$4 sm:$0xff]   ;;  %s446_s13 = scalar_lea.vmem %s1870_s2, %s1813_s29  ;;  %s455_s16 = scalar_lea.vmem %s1872_s4, %s1813_s29 }
  0x15   : > { %v1558_v16 = vld [vmem:[%s1737_s21 + $0x54] ss:$8 sps:$4 sm:$0xff]   ;;  %v1560_v17 = vld [vmem:[%s1737_s21 + $0x50] ss:$8 sps:$4 sm:$0xff]   ;;  %v1561_v18 = vld [vmem:[%s1737_s21 + $0x64] ss:$8 sps:$4 sm:$0xff]   ;;  %s464_s19 = scalar_lea.vmem %s1874_s6, %s1813_s29 }
  0x16   : > { %v1563_v19 = vld [vmem:[%s1737_s21 + $0x60] ss:$8 sps:$4 sm:$0xff]   ;;  %v1564_v20 = vld [vmem:[%s1737_s21 + $0x74] ss:$8 sps:$4 sm:$0xff]   ;;  %v1566_v21 = vld [vmem:[%s1737_s21 + $0x70] ss:$8 sps:$4 sm:$0xff]  }
  0x17   : > { %1419 = vmatmul.mubr.msk.bf16.vlgmr.msra.gmra.mrb[0].mxu0 %vm504_vm1, %v1540_v6  ;;  %771 = vmatpush1.bf16.msra.mxu1 %v1548_v9  ;;  %v1567_v22 = vld [vmem:[%s1737_s21 + $0x84] ss:$8 sps:$4 sm:$0xff]   ;;  %v1569_v23 = vld [vmem:[%s1737_s21 + $0x80] ss:$8 sps:$4 sm:$0xff]   ;;  %v1570_v24 = vld [vmem:[%s1737_s21 + $0x94] ss:$8 sps:$4 sm:$0xff]  }
  0x18   : > { %772 = vmatprep.subr.bf16.mxu1 %v1549_v10  ;;  %v1572_v25 = vld [vmem:[%s1737_s21 + $0x90] ss:$8 sps:$4 sm:$0xff]   ;;  %v1573_v26 = vld [vmem:[%s1737_s21 + $0xa4] ss:$8 sps:$4 sm:$0xff]   ;;  %v1575_v27 = vld [vmem:[%s1737_s21 + $0xa0] ss:$8 sps:$4 sm:$0xff]  }
  0x19   : > { %v1576_v28 = vld [vmem:[%s1737_s21 + $0xb4] ss:$8 sps:$4 sm:$0xff]   ;;  %v1578_v29 = vld [vmem:[%s1737_s21 + $0xb0] ss:$8 sps:$4 sm:$0xff]   ;;  %v1579_v30 = vld [vmem:[%s1737_s21 + $0xc4] ss:$8 sps:$4 sm:$0xff]  }
  0x1a   : > { %v1581_v31 = vld [vmem:[%s1737_s21 + $0xc0] ss:$8 sps:$4 sm:$0xff]   ;;  %v1582_v32 = vld [vmem:[%s1737_s21 + $0xd4] ss:$8 sps:$4 sm:$0xff]   ;;  %v1584_v33 = vld [vmem:[%s1737_s21 + $0xd0] ss:$8 sps:$4 sm:$0xff]  }
  0x1b   : > { %773 = vmatpush1.bf16.msra.mxu1 %v1551_v11  ;;  %v1585_v34 = vld [vmem:[%s1737_s21 + $0xe4] ss:$8 sps:$4 sm:$0xff]   ;;  %v1587_v35 = vld [vmem:[%s1737_s21 + $0xe0] ss:$8 sps:$4 sm:$0xff]   ;;  %v1588_v36 = vld [vmem:[%s1737_s21 + $0xf4] ss:$8 sps:$4 sm:$0xff]  }
  0x1c   : > { %774 = vmatprep.subr.bf16.mxu1 %v1552_v12  ;;  %v1590_v37 = vld [vmem:[%s1737_s21 + $0xf0] ss:$8 sps:$4 sm:$0xff]   ;;  %v1591_v38 = vld [vmem:[%s1756_s24] ss:$8 sps:$4 sm:$0xff]   ;;  %v1593_v39 = vld [vmem:[%s1756_s24 + $0x4] ss:$8 sps:$4 sm:$0xff]  }
  0x1d   : > { %v1596_v40 = vld [vmem:[%s1756_s24 + $0x14] ss:$8 sps:$4 sm:$0xff]   ;;  %1021 = vmatprep.subr.bf16.mxu0 %v1593_v39  ;;  %v1594_v41 = vld [vmem:[%s1756_s24 + $0x10] ss:$8 sps:$4 sm:$0xff]   ;;  %v1599_v42 = vld [vmem:[%s1756_s24 + $0x24] ss:$8 sps:$4 sm:$0xff]  }
  0x1e   : > { %1022 = vmatpush1.bf16.msra.mxu0 %v1591_v38  ;;  %v1597_v43 = vld [vmem:[%s1756_s24 + $0x20] ss:$8 sps:$4 sm:$0xff]   ;;  %v1602_v44 = vld [vmem:[%s1756_s24 + $0x34] ss:$8 sps:$4 sm:$0xff]   ;;  %v1600_v45 = vld [vmem:[%s1756_s24 + $0x30] ss:$8 sps:$4 sm:$0xff]  }
  0x1f   : > { %775 = vmatpush1.bf16.msra.mxu1 %v1554_v13  ;;  %1023 = vmatprep.subr.bf16.mxu0 %v1596_v40  ;;  %v1605_v46 = vld [vmem:[%s1756_s24 + $0x44] ss:$8 sps:$4 sm:$0xff]   ;;  %v1603_v47 = vld [vmem:[%s1756_s24 + $0x40] ss:$8 sps:$4 sm:$0xff]   ;;  %v1608_v48 = vld [vmem:[%s1756_s24 + $0x54] ss:$8 sps:$4 sm:$0xff]  }
  0x20   : > { %776 = vmatprep.subr.bf16.mxu1 %v1555_v14  ;;  %v1606_v49 = vld [vmem:[%s1756_s24 + $0x50] ss:$8 sps:$4 sm:$0xff]   ;;  %v1611_v50 = vld [vmem:[%s1756_s24 + $0x64] ss:$8 sps:$4 sm:$0xff]   ;;  %v1609_v51 = vld [vmem:[%s1756_s24 + $0x60] ss:$8 sps:$4 sm:$0xff]  }
  0x21   : > { %v1614_v52 = vld [vmem:[%s1756_s24 + $0x74] ss:$8 sps:$4 sm:$0xff]   ;;  %v1612_v53 = vld [vmem:[%s1756_s24 + $0x70] ss:$8 sps:$4 sm:$0xff]   ;;  %v1617_v54 = vld [vmem:[%s1756_s24 + $0x84] ss:$8 sps:$4 sm:$0xff]  }
  0x22   : > { %1024 = vmatpush1.bf16.msra.mxu0 %v1594_v41  ;;  %v1615_v55 = vld [vmem:[%s1756_s24 + $0x80] ss:$8 sps:$4 sm:$0xff]   ;;  %v1620_v56 = vld [vmem:[%s1756_s24 + $0x94] ss:$8 sps:$4 sm:$0xff]   ;;  %v1618_v57 = vld [vmem:[%s1756_s24 + $0x90] ss:$8 sps:$4 sm:$0xff]  }
  0x23   : > { %777 = vmatpush1.bf16.msra.mxu1 %v1557_v15  ;;  %1025 = vmatprep.subr.bf16.mxu0 %v1599_v42  ;;  %v1623_v58 = vld [vmem:[%s1756_s24 + $0xa4] ss:$8 sps:$4 sm:$0xff]   ;;  %v1621_v59 = vld [vmem:[%s1756_s24 + $0xa0] ss:$8 sps:$4 sm:$0xff]   ;;  %v1626_v60 = vld [vmem:[%s1756_s24 + $0xb4] ss:$8 sps:$4 sm:$0xff]  }
  0x24   : > { %778 = vmatprep.subr.bf16.mxu1 %v1558_v16  ;;  %v1624_v61 = vld [vmem:[%s1756_s24 + $0xb0] ss:$8 sps:$4 sm:$0xff]   ;;  %v1629_v62 = vld [vmem:[%s1756_s24 + $0xc4] ss:$8 sps:$4 sm:$0xff]   ;;  %v1627_v63 = vld [vmem:[%s1756_s24 + $0xc0] ss:$8 sps:$4 sm:$0xff]  }
  0x25   : > { %v1632_v0 = vld [vmem:[%s1756_s24 + $0xd4] ss:$8 sps:$4 sm:$0xff]   ;;  %v1630_v1 = vld [vmem:[%s1756_s24 + $0xd0] ss:$8 sps:$4 sm:$0xff]   ;;  %v485_v3 = vshrl.u32 %v484_v2, 7  ;;  %v1650_v38 = vld [vmem:[%s1767_s28 + $0x28] sm:$0xff]  }
  0x26   : > { %1026 = vmatpush1.bf16.msra.mxu0 %v1597_v43  ;;  %v482_v5 = vld [vmem:[%s446_s13] sm:$0x3]  ;;  %s1508_s23 = sshll.u32 %s1879_s10, 4 }
  0x27   : > { %779 = vmatpush1.bf16.msra.mxu1 %v1560_v17  ;;  %1027 = vmatprep.subr.bf16.mxu0 %v1602_v44  ;;  %v1819_v4 = vsub.s32 0, %v485_v3  ;;  %v1821_v6 = vsub.s32 1, %v485_v3  ;;  %v596_v39 = vld [vmem:[%s455_s16] sm:$0x3]  ;;  %s477_s26 = scalar_lea.vmem %s1877_s9, %s1508_s23 }
  0x28   : > { %780 = vmatprep.subr.bf16.mxu1 %v1561_v18 }
  0x29   : > { %v487_v7 = vrot.slane %v482_v5, %v1819_v4  ;;  %v491_v8 = vrot.slane %v482_v5, %v1821_v6  ;;  %v601_v40 = vrot.slane %v596_v39, %v1819_v4  ;;  %v605_v41 = vrot.slane %v596_v39, %v1821_v6 }
  0x2a   : > { %1028 = vmatpush1.bf16.msra.mxu0 %v1600_v45 }
  0x2b   : > { %781 = vmatpush1.bf16.msra.mxu1 %v1563_v19  ;;  %1029 = vmatprep.subr.bf16.mxu0 %v1605_v46 }
  0x2c   : > { %782 = vmatprep.subr.bf16.mxu1 %v1564_v20 }
  0x2e   : > { %1030 = vmatpush1.bf16.msra.mxu0 %v1603_v47 }
  0x2f   : > { %783 = vmatpush1.bf16.msra.mxu1 %v1566_v21  ;;  %1031 = vmatprep.subr.bf16.mxu0 %v1608_v48 }
  0x30   : > { %784 = vmatprep.subr.bf16.mxu1 %v1567_v22 }
  0x32   : > { %1032 = vmatpush1.bf16.msra.mxu0 %v1606_v49 }
  0x33   : > { %785 = vmatpush1.bf16.msra.mxu1 %v1569_v23  ;;  %1033 = vmatprep.subr.bf16.mxu0 %v1611_v50  ;;  %v1635_v23 = vld [vmem:[%s1756_s24 + $0xe4] ss:$8 sps:$4 sm:$0xff]  }
  0x34   : > { %786 = vmatprep.subr.bf16.mxu1 %v1570_v24  ;;  %v1633_v24 = vld [vmem:[%s1756_s24 + $0xe0] ss:$8 sps:$4 sm:$0xff]  }
  0x36   : > { %1034 = vmatpush1.bf16.msra.mxu0 %v1609_v51 }
  0x37   : > { %787 = vmatpush1.bf16.msra.mxu1 %v1572_v25  ;;  %1035 = vmatprep.subr.bf16.mxu0 %v1614_v52  ;;  %v1638_v25 = vld [vmem:[%s1756_s24 + $0xf4] ss:$8 sps:$4 sm:$0xff]  }
  0x38   : > { %788 = vmatprep.subr.bf16.mxu1 %v1573_v26  ;;  %v1636_v26 = vld [vmem:[%s1756_s24 + $0xf0] ss:$8 sps:$4 sm:$0xff]  }
  0x3a   : > { %1036 = vmatpush1.bf16.msra.mxu0 %v1612_v53 }
  0x3b   : > { %789 = vmatpush1.bf16.msra.mxu1 %v1575_v27  ;;  %1037 = vmatprep.subr.bf16.mxu0 %v1617_v54  ;;  %v1639_v27 = vld [vmem:[%s1767_s28 + $0x40] sm:$0xff]  }
  0x3c   : > { %790 = vmatprep.subr.bf16.mxu1 %v1576_v28  ;;  %v1640_v28 = vld [vmem:[%s1767_s28] sm:$0xff]  }
  0x3e   : > { %1038 = vmatpush1.bf16.msra.mxu0 %v1615_v55 }
  0x3f   : > { %791 = vmatpush1.bf16.msra.mxu1 %v1578_v29  ;;  %1039 = vmatprep.subr.bf16.mxu0 %v1620_v56  ;;  %v1641_v29 = vld [vmem:[%s1767_s28 + $0x48] sm:$0xff]   ;;  %v1651_v56 = vld [vmem:[%s1767_s28 + $0x70] sm:$0xff]  }
  0x40   : > { %792 = vmatprep.subr.bf16.mxu1 %v1579_v30  ;;  %v1642_v30 = vld [vmem:[%s1767_s28 + $0x8] sm:$0xff]  }
  0x42   : > { %1040 = vmatpush1.bf16.msra.mxu0 %v1618_v57  ;;  %v1652_v57 = vld [vmem:[%s1767_s28 + $0x30] sm:$0xff]  }
  0x43   : > { %793 = vmatpush1.bf16.msra.mxu1 %v1581_v31  ;;  %1041 = vmatprep.subr.bf16.mxu0 %v1623_v58  ;;  %v1643_v31 = vld [vmem:[%s1767_s28 + $0x50] sm:$0xff]   ;;  %v1653_v58 = vld [vmem:[%s1767_s28 + $0x78] sm:$0xff]  }
  0x44   : > { %794 = vmatprep.subr.bf16.mxu1 %v1582_v32  ;;  %v1644_v32 = vld [vmem:[%s1767_s28 + $0x10] sm:$0xff]  }
  0x46   : > { %1042 = vmatpush1.bf16.msra.mxu0 %v1621_v59  ;;  %v1654_v59 = vld [vmem:[%s1767_s28 + $0x38] sm:$0xff]  }
  0x47   : > { %795 = vmatpush1.bf16.msra.mxu1 %v1584_v33  ;;  %1043 = vmatprep.subr.bf16.mxu0 %v1626_v60  ;;  %v1645_v33 = vld [vmem:[%s1767_s28 + $0x58] sm:$0xff]   ;;  %v849_v60 = vld [vmem:[%s464_s19] sm:$0x3] }
  0x48   : > { %796 = vmatprep.subr.bf16.mxu1 %v1585_v34  ;;  %v1646_v34 = vld [vmem:[%s1767_s28 + $0x18] sm:$0xff]  }
  0x4a   : > { %1044 = vmatpush1.bf16.msra.mxu0 %v1624_v61  ;;  %v854_v61 = vrot.slane %v849_v60, %v1819_v4 }
  0x4b   : > { %797 = vmatpush1.bf16.msra.mxu1 %v1587_v35  ;;  %1045 = vmatprep.subr.bf16.mxu0 %v1629_v62  ;;  %v1647_v35 = vld [vmem:[%s1767_s28 + $0x60] sm:$0xff]  }
  0x4c   : > { %798 = vmatprep.subr.bf16.mxu1 %v1588_v36  ;;  %v1648_v36 = vld [vmem:[%s1767_s28 + $0x20] sm:$0xff]  }
  0x4e   : > { %1046 = vmatpush1.bf16.msra.mxu0 %v1627_v63  ;;  %v858_v63 = vrot.slane %v849_v60, %v1821_v6 }
  0x4f   : > { %799 = vmatpush1.bf16.msra.mxu1 %v1590_v37  ;;  %1047 = vmatprep.subr.bf16.mxu0 %v1632_v0  ;;  %v1649_v37 = vld [vmem:[%s1767_s28 + $0x68] sm:$0xff]  }
  0x50   : > { %1509 = vmatprep.subr.bf16.mxu1 %v1639_v27 }
  0x52   : > { %1048 = vmatpush1.bf16.msra.mxu0 %v1630_v1 }
  0x53   : > { %1049 = vmatprep.subr.bf16.mxu0 %v1635_v23 }
  0x56   : > { %1050 = vmatpush1.bf16.msra.mxu0 %v1633_v24 }
  0x57   : > { %1051 = vmatprep.subr.bf16.mxu0 %v1638_v25 }
  0x5a   : > { %1052 = vmatpush1.bf16.msra.mxu0 %v1636_v26 }
  0xea   : > { %v549_v9 = vpop.f32.mrb[0].mxu0 }
  0xeb   : > { %v550_v10 = vadd.f32 %v549_v9, %v487_v7  ;;  %v551_v11 = vpop.f32.mrb[1].mxu0 }
  0xec   : > { %v552_v12 = vadd.f32 %v551_v11, %v491_v8  ;;  %v553_v13 = vpop.f32.mrb[2].mxu0  ;;  %v1484_v11 = vld [vmem:[%s472_s22] ss:$0 sm:$0xff] }
  0xed   : > { %v554_v14 = vadd.f32 %v553_v13, %v487_v7  ;;  %v555_v15 = vpop.f32.mrb[3].mxu0  ;;  %v558_v17 = vmax.f32 %v550_v10, 0.0 }
  0xee   : > { %v556_v16 = vadd.f32 %v555_v15, %v491_v8  ;;  %v559_v19 = vmax.f32 %v552_v12, 0.0 }
  0xef   : > { %v560_v18 = vmax.f32 %v554_v14, 0.0 }
  0xf0   : > { %v561_v20 = vmax.f32 %v556_v16, 0.0 }
  0xf1   : > { %v562_v21 = vpack.c.bf16 %v560_v18, %v558_v17 }
  0xf2   : > { %v563_v22 = vpack.c.bf16 %v561_v20, %v559_v19 }
  0xf4   : > { %800 = vmatprep.mubr.bf16.mxu1 %v563_v22 }
  0xf5   : > { %801 = vmatmul.mubr.bf16.vlgmr.msra.gmra.mrb[0].mxu1 %v562_v21 }
  0xf6   : > { %1510 = vmatpush3.bf16.msra.mxu1 %v1640_v28 }
  0xf7   : > { %1511 = vmatprep.subr.bf16.mxu1 %v1641_v29 }
  0xfa   : > { %1512 = vmatpush3.bf16.msra.mxu1 %v1642_v30 }
  0xfb   : > { %1513 = vmatprep.subr.bf16.mxu1 %v1643_v31 }
  0xfe   : > { %1514 = vmatpush3.bf16.msra.mxu1 %v1644_v32 }
  0xff   : > { %1515 = vmatprep.subr.bf16.mxu1 %v1645_v33 }
 0x102   : > { %1516 = vmatpush3.bf16.msra.mxu1 %v1646_v34 }
 0x103   : > { %1517 = vmatprep.subr.bf16.mxu1 %v1647_v35 }
 0x106   : > { %1518 = vmatpush3.bf16.msra.mxu1 %v1648_v36 }
 0x107   : > { %1519 = vmatprep.subr.bf16.mxu1 %v1649_v37 }
 0x10a   : > { %1520 = vmatpush3.bf16.msra.mxu1 %v1650_v38 }
 0x10b   : > { %1521 = vmatprep.subr.bf16.mxu1 %v1651_v56 }
 0x10e   : > { %1522 = vmatpush3.bf16.msra.mxu1 %v1652_v57 }
 0x10f   : > { %1523 = vmatprep.subr.bf16.mxu1 %v1653_v58 }
 0x112   : > { %1524 = vmatpush3.bf16.msra.mxu1 %v1654_v59 }
 0x1c8   : > { %v802_v42 = vpop.f32.mrb[0].mxu1 }
 0x1c9   : > { %v803_v43 = vadd.f32 %v802_v42, %v601_v40  ;;  %v804_v44 = vpop.f32.mrb[1].mxu1 }
 0x1ca   : > { %v805_v45 = vadd.f32 %v804_v44, %v605_v41  ;;  %v806_v46 = vpop.f32.mrb[2].mxu1 }
 0x1cb   : > { %v807_v47 = vadd.f32 %v806_v46, %v601_v40  ;;  %v808_v48 = vpop.f32.mrb[3].mxu1  ;;  %v811_v50 = vmax.f32 %v803_v43, 0.0 }
 0x1cc   : > { %v809_v49 = vadd.f32 %v808_v48, %v605_v41  ;;  %v812_v52 = vmax.f32 %v805_v45, 0.0 }
 0x1cd   : > { %v813_v51 = vmax.f32 %v807_v47, 0.0 }
 0x1ce   : > { %v814_v53 = vmax.f32 %v809_v49, 0.0 }
 0x1cf   : > { %v815_v54 = vpack.c.bf16 %v813_v51, %v811_v50 }
 0x1d0   : > { %v816_v55 = vpack.c.bf16 %v814_v53, %v812_v52 }
 0x1d2   : > { %1053 = vmatprep.mubr.bf16.mxu0 %v816_v55 }
 0x1d3   : > { %1054 = vmatmul.mubr.bf16.vlgmr.msra.gmra.mrb[4].mxu0 %v815_v54 }
 0x2a6   : > { %v1055_v62 = vpop.f32.mrb[4].mxu0 }
 0x2a7   : > { %v1057_v0 = vpop.f32.mrb[5].mxu0  ;;  %v1056_v2 = vadd.f32 %v1055_v62, %v854_v61 }
 0x2a8   : > { %v1059_v1 = vpop.f32.mrb[6].mxu0  ;;  %v1058_v7 = vadd.f32 %v1057_v0, %v858_v63 }
 0x2a9   : > { %v1060_v3 = vadd.f32 %v1059_v1, %v854_v61  ;;  %v1061_v5 = vpop.f32.mrb[7].mxu0 }
 0x2aa   : > { %v1062_v8 = vadd.f32 %v1061_v5, %v858_v63 }
 0x2ab   : > { %v1064_v9 = vpack.c.bf16 %v1060_v3, %v1056_v2 }
 0x2ac   : > { %v1065_v10 = vpack.c.bf16 %v1062_v8, %v1058_v7 }
 0x2ae   : > { %1233 = vmatprep.mubr.bf16.mxu1 %v1065_v10 }
 0x2af   : > { %1234 = vmatmul.mubr.bf16.vlgmr.msra.gmra.mrb[4].mxu1 %v1064_v9 }
 0x382   : > { %v1525_v4 = vpop.f32.mrb[4].mxu1 }
 0x383   : > { %v1526_v12 = vpop.f32.mrb[5].mxu1 }
 0x384   : > { %v1527_v6 = vadd.f32 %v1526_v12, %v1525_v4  ;;  %v1528_v13 = vpop.f32.mrb[6].mxu1 }
 0x385   : > { %v1529_v14 = vpop.f32.mrb[7].mxu1 }
 0x386   : > { %v1236_v15 = vadd.f32 %v1527_v6, %v1484_v11  ;;  %v1530_v16 = vadd.f32 %v1529_v14, %v1528_v13 }
 0x388   : > { %v1242_v17 = vmax.f32 %v1236_v15, 0.0  ;;  %v1239_v18 = vadd.f32 %v1530_v16, %v1484_v11 }
 0x38a   : > { %1245 = vst.msk [vmem:[%s477_s26] sm:$0xff] %vm1244_vm2, %v1242_v17  ;;  %v1243_v19 = vmax.f32 %v1239_v18, 0.0 }
 0x38c   : > { %1246 = vst.msk [vmem:[%s477_s26 + $0x8] sm:$0xff] %vm1244_vm2, %v1243_v19 }
 0x38d PF: > { %s19_s30 = sadd.s32 1, %s1661_s30  }
 0x38e   : > { %p16_p4 = scmp.ge.s32.totalorder %s19_s30, 4  }
 0x390   :  { %18 = sbr.rel (!%p16_p4) target bundleno = 1 (0x1), region = 110 }

// kernel: espa_tune_forward.2
= control target key start
LH: loop header
LB: loop body
LE: loop exit
PB: predicated region body
PF: predicated region fallthrough
CT: control target
= control target key end

     0   :  { %s2704_s18 = smov 0   ;;  %s2706_s19 = smov 0   ;;  %s3764_s0 = inlined_call_operand.vmem [shape: s8[256,256], index: 0, kind: input, shape index: {}]   ;;  %s3765_s1 = inlined_call_operand.vmem [shape: f32[256,1], index: 1, kind: input, shape index: {}]   ;;  %s3766_s2 = inlined_call_operand.vmem [shape: bf16[256,32], index: 2, kind: input, shape index: {}]   ;;  %s3767_s3 = inlined_call_operand.vmem [shape: bf16[2,32,32], index: 3, kind: input, shape index: {}]   ;;  %s3768_s4 = inlined_call_operand.vmem [shape: f32[2,1,32], index: 4, kind: input, shape index: {}]   ;;  %s3769_s5 = inlined_call_operand.vmem [shape: f32[256,32], index: 5, kind: output, shape index: {}]  }
   0x1   :  { %s2708_s20 = smov 0  }
   0x2 LB: > { %s34_s21 = sadd.s32 1, %s2666_s19  ;;  %p2224_p0 = scmp.ge.s32.totalorder %s2670_s20, 1  ;;  %s2670_s20 = sphi %s2708_s20, %s15_s20   ;;  %s2666_s19 = sphi %s2706_s19, %s3783_s19   ;;  %s2662_s18 = sphi %s2704_s18, %s3782_s18  }
   0x3   : > { %p36_p1 = scmp.ge.s32.totalorder %s34_s21, 2  ;;  %p279_p2 = scmp.lt.s32.totalorder %s2670_s20, 3 }
   0x5   : > { %s3785_s21 = smov (%p36_p1, %s34_s21), 0  ;;  %p280_p3 = pnand %p2224_p0, %p279_p2 }
   0x6   : > { %p371_p4 = scmp.lt.s32.totalorder (!%p280_p3), %s2662_s18, 1  ;;  %vm423_vm0 = vcmask (!%p280_p3), 261120   ;;  %v2728_v0 = vld [vmem:[%s3764_s0] sm:$0xff] (!%p280_p3)  ;;  %v2733_v1 = vld [vmem:[%s3764_s0 + $0x8] sm:$0xff] (!%p280_p3)  ;;  %p390_p5 = scmp.lt.s32.totalorder (!%p280_p3), %s2662_s18, 0  ;;  %v2672_v2 = vmov (!%p280_p3), 0.0  }
   0x7   : > { %283 = sbr.rel (%p280_p3) target bundleno = 1143 (0x477), region = 40  ;;  %s391_s26 = ssub.s32 (!%p280_p3), 0, %s2662_s18  ;;  %424 = vst.msk [vmem:[#allocation2] sm:$0xff] (!%p280_p3), %vm423_vm0, %v2672_v2  ;;  %425 = vst.msk [vmem:[#allocation2 + $0x8] sm:$0xff] (!%p280_p3), %vm423_vm0, %v2672_v2  ;;  %v2772_v3 = vld [vmem:[%s3764_s0 + $0x10] sm:$0xff] (!%p280_p3)  ;;  %v2777_v4 = vld [vmem:[%s3764_s0 + $0x18] sm:$0xff] (!%p280_p3)  ;;  %v472_v6 = vunpack.c.l.s8.bf16 (!%p280_p3), %v2728_v0  ;;  %v473_v7 = vunpack.c.l.s8.bf16 (!%p280_p3), %v2733_v1  ;;  %v474_v8 = vunpack.c.h.s8.bf16 (!%p280_p3), %v2728_v0  ;;  %v475_v9 = vunpack.c.h.s8.bf16 (!%p280_p3), %v2733_v1 }
   0x8   : > { %426 = vst.msk [vmem:[#allocation2 + $0x10] sm:$0xff] (!%p280_p3), %vm423_vm0, %v2672_v2  ;;  %427 = vst.msk [vmem:[#allocation2 + $0x18] sm:$0xff] (!%p280_p3), %vm423_vm0, %v2672_v2  ;;  %v2782_v5 = vld [vmem:[%s3764_s0 + $0x20] sm:$0xff] (!%p280_p3)  ;;  %v2796_v10 = vld [vmem:[%s3764_s0 + $0x28] sm:$0xff] (!%p280_p3)  ;;  %v476_v13 = vunpack.c.l.s8.bf16 (!%p280_p3), %v2772_v3  ;;  %v477_v14 = vunpack.c.l.s8.bf16 (!%p280_p3), %v2777_v4  ;;  %v478_v15 = vunpack.c.h.s8.bf16 (!%p280_p3), %v2772_v3  ;;  %v479_v16 = vunpack.c.h.s8.bf16 (!%p280_p3), %v2777_v4  ;;  %s2815_s15 = smin.u32 (!%p280_p3), %s2662_s18, %s391_s26  ;;  %s2818_s16 = sadd.s32 (!%p280_p3), 1, %s2662_s18 }
   0x9   : > { %428 = vst.msk [vmem:[#allocation2 + $0x20] sm:$0xff] (!%p280_p3), %vm423_vm0, %v2672_v2  ;;  %429 = vst.msk [vmem:[#allocation2 + $0x28] sm:$0xff] (!%p280_p3), %vm423_vm0, %v2672_v2  ;;  %v2801_v11 = vld [vmem:[%s3764_s0 + $0x30] sm:$0xff] (!%p280_p3)  ;;  %v2806_v12 = vld [vmem:[%s3764_s0 + $0x38] sm:$0xff] (!%p280_p3)  ;;  %v480_v20 = vunpack.c.l.s8.bf16 (!%p280_p3), %v2782_v5  ;;  %v481_v21 = vunpack.c.l.s8.bf16 (!%p280_p3), %v2796_v10  ;;  %v482_v22 = vunpack.c.h.s8.bf16 (!%p280_p3), %v2782_v5  ;;  %v483_v23 = vunpack.c.h.s8.bf16 (!%p280_p3), %v2796_v10  ;;  %s393_s22 = sand.u32 (!%p280_p3), 1, %s2815_s15   ;;  %p504_p6 = scmp.eq.s32.totalorder (!%p280_p3), %s2662_s18, 0 }
   0xa   : > { %430 = vst.msk [vmem:[#allocation2 + $0x30] sm:$0xff] (!%p280_p3), %vm423_vm0, %v2672_v2  ;;  %431 = vst.msk [vmem:[#allocation2 + $0x38] sm:$0xff] (!%p280_p3), %vm423_vm0, %v2672_v2  ;;  %v2823_v17 = vld [vmem:[%s3764_s0 + $0x40] sm:$0xff] (!%p280_p3)  ;;  %v2828_v18 = vld [vmem:[%s3764_s0 + $0x48] sm:$0xff] (!%p280_p3)  ;;  %v3775_v27 = vunpack.c.l.s8.bf16 (!%p280_p3), %v2801_v11  ;;  %v485_v28 = vunpack.c.l.s8.bf16 (!%p280_p3), %v2806_v12  ;;  %v3770_v29 = vunpack.c.h.s8.bf16 (!%p280_p3), %v2801_v11  ;;  %v3773_v30 = vunpack.c.h.s8.bf16 (!%p280_p3), %v2806_v12  ;;  %s394_s15 = ssub.s32 (!%p280_p3), 0, %s393_s22  ;;  %p404_p8 = scmp.lt.s32.totalorder (!%p280_p3), %s2818_s16, 0 }
   0xb   : > { %432 = vst.msk [vmem:[#allocation2 + $0x40] sm:$0xff] (!%p280_p3), %vm423_vm0, %v2672_v2  ;;  %433 = vst.msk [vmem:[#allocation2 + $0x48] sm:$0xff] (!%p280_p3), %vm423_vm0, %v2672_v2  ;;  %v2833_v19 = vld [vmem:[%s3764_s0 + $0x50] sm:$0xff] (!%p280_p3)  ;;  %v2847_v24 = vld [vmem:[%s3764_s0 + $0x58] sm:$0xff] (!%p280_p3)  ;;  %v488_v33 = vunpack.c.l.s8.bf16 (!%p280_p3), %v2823_v17  ;;  %v489_v34 = vunpack.c.l.s8.bf16 (!%p280_p3), %v2828_v18  ;;  %v490_v35 = vunpack.c.h.s8.bf16 (!%p280_p3), %v2823_v17  ;;  %v491_v36 = vunpack.c.h.s8.bf16 (!%p280_p3), %v2828_v18 }
   0xc   : > { %434 = vst.msk [vmem:[#allocation2 + $0x50] sm:$0xff] (!%p280_p3), %vm423_vm0, %v2672_v2  ;;  %435 = vst.msk [vmem:[#allocation2 + $0x58] sm:$0xff] (!%p280_p3), %vm423_vm0, %v2672_v2  ;;  %v2852_v25 = vld [vmem:[%s3764_s0 + $0x60] sm:$0xff] (!%p280_p3)  ;;  %v2857_v26 = vld [vmem:[%s3764_s0 + $0x68] sm:$0xff] (!%p280_p3)  ;;  %v492_v37 = vunpack.c.l.s8.bf16 (!%p280_p3), %v2833_v19  ;;  %v493_v38 = vunpack.c.l.s8.bf16 (!%p280_p3), %v2847_v24  ;;  %v494_v39 = vunpack.c.h.s8.bf16 (!%p280_p3), %v2833_v19  ;;  %v495_v40 = vunpack.c.h.s8.bf16 (!%p280_p3), %v2847_v24 }
   0xd   : > { %436 = vst.msk [vmem:[#allocation2 + $0x60] sm:$0xff] (!%p280_p3), %vm423_vm0, %v2672_v2  ;;  %437 = vst.msk [vmem:[#allocation2 + $0x68] sm:$0xff] (!%p280_p3), %vm423_vm0, %v2672_v2  ;;  %v2872_v31 = vld [vmem:[%s3764_s0 + $0x70] sm:$0xff] (!%p280_p3)  ;;  %v2877_v32 = vld [vmem:[%s3764_s0 + $0x78] sm:$0xff] (!%p280_p3)  ;;  %v496_v41 = vunpack.c.l.s8.bf16 (!%p280_p3), %v2852_v25  ;;  %v497_v42 = vunpack.c.l.s8.bf16 (!%p280_p3), %v2857_v26  ;;  %v498_v43 = vunpack.c.h.s8.bf16 (!%p280_p3), %v2852_v25  ;;  %v499_v44 = vunpack.c.h.s8.bf16 (!%p280_p3), %v2857_v26 }
   0xe   : > { %438 = vst.msk [vmem:[#allocation2 + $0x70] sm:$0xff] %vm423_vm0, %v2672_v2  ;;  %439 = vst.msk [vmem:[#allocation2 + $0x78] sm:$0xff] %vm423_vm0, %v2672_v2  ;;  %s2791_s8 = scalar_select %p371_p4, %s2662_s18, 1  ;;  %v3774_v45 = vunpack.c.l.s8.bf16 %v2872_v31  ;;  %v501_v46 = vunpack.c.l.s8.bf16 %v2877_v32  ;;  %v3772_v47 = vunpack.c.h.s8.bf16 %v2872_v31  ;;  %v3771_v48 = vunpack.c.h.s8.bf16 %v2877_v32 }
   0xf   : > { %440 = vst.msk [vmem:[#allocation2 + $0x80] sm:$0xff] %vm423_vm0, %v2672_v2  ;;  %441 = vst.msk [vmem:[#allocation2 + $0x88] sm:$0xff] %vm423_vm0, %v2672_v2  ;;  %s3787_s15 = smov (!%p390_p5, %s394_s15), %s393_s22  ;;  %v2628_v49 = vld [vmem:[%s3766_s2 + $0x40] sm:$0xff] (%p504_p6)   ;;  %702 = vmatprep.mubr.bf16.mxu0 (%p504_p6), %v473_v7  ;;  %766 = vmatprep.mubr.bf16.mxu1 (%p504_p6), %v489_v34  ;;  %v2630_v51 = vld [vmem:[%s3766_s2 + $0x48] sm:$0xff] (%p504_p6)  }
  0x10   : > { %442 = vst.msk [vmem:[#allocation2 + $0x90] sm:$0xff] %vm423_vm0, %v2672_v2  ;;  %443 = vst.msk [vmem:[#allocation2 + $0x98] sm:$0xff] %vm423_vm0, %v2672_v2  ;;  %s2286_s26 = sshll.u32 %s2791_s8, 4  ;;  %s378_s30 = scalar_lea.vmem %s3768_s4, %s2791_s8  ;;  %v2629_v50 = vld [vmem:[%s3766_s2] sm:$0xff] (%p504_p6)   ;;  %2288 = vmatprep.subr.bf16.mxu0 (%p504_p6), %v2628_v49  ;;  %2566 = vmatprep.subr.bf16.mxu1 (%p504_p6), %v2628_v49  ;;  %v2631_v52 = vld [vmem:[%s3766_s2 + $0x8] sm:$0xff] (%p504_p6)  }
  0x11   : > { %444 = vst.msk [vmem:[#allocation2 + $0xa0] sm:$0xff] %vm423_vm0, %v2672_v2  ;;  %445 = vst.msk [vmem:[#allocation2 + $0xa8] sm:$0xff] %vm423_vm0, %v2672_v2  ;;  %s2866_s17 = scalar_lea.vmem %s3767_s3, %s2286_s26  ;;  %s405_s26 = ssub.s32 0, %s2818_s16  ;;  %2289 = vmatpush3.bf16.msra.mxu0 (%p504_p6), %v2629_v50  ;;  %2574 = vmatpush3.bf16.msra.mxu1 (%p504_p6), %v2629_v50  ;;  %v2632_v53 = vld [vmem:[%s3766_s2 + $0x50] sm:$0xff] (%p504_p6)   ;;  %v2634_v55 = vld [vmem:[%s3766_s2 + $0x58] sm:$0xff] (%p504_p6)  }
  0x12   : > { %446 = vst.msk [vmem:[#allocation2 + $0xb0] sm:$0xff] %vm423_vm0, %v2672_v2  ;;  %447 = vst.msk [vmem:[#allocation2 + $0xb8] sm:$0xff] %vm423_vm0, %v2672_v2  ;;  %s2232_s28 = smin.u32 %s405_s26, %s2818_s16  ;;  %p2230_p7 = scmp.lt.s32.totalorder %s3787_s15, 0  ;;  %2290 = vmatprep.subr.bf16.mxu0 (%p504_p6), %v2630_v51  ;;  %2567 = vmatprep.subr.bf16.mxu1 (%p504_p6), %v2630_v51  ;;  %v2633_v54 = vld [vmem:[%s3766_s2 + $0x10] sm:$0xff] (%p504_p6)   ;;  %v2635_v56 = vld [vmem:[%s3766_s2 + $0x18] sm:$0xff] (%p504_p6)  }
  0x13   : > { %448 = vst.msk [vmem:[#allocation2 + $0xc0] sm:$0xff] %vm423_vm0, %v2672_v2  ;;  %449 = vst.msk [vmem:[#allocation2 + $0xc8] sm:$0xff] %vm423_vm0, %v2672_v2  ;;  %s400_s29 = sadd.s32 2, %s3787_s15  ;;  %s407_s6 = sand.u32 1, %s2232_s28   ;;  %v2636_v57 = vld [vmem:[%s3766_s2 + $0x60] sm:$0xff] (%p504_p6)   ;;  %v2638_v59 = vld [vmem:[%s3766_s2 + $0x68] sm:$0xff] (%p504_p6)  }
  0x14   : > { %450 = vst.msk [vmem:[#allocation2 + $0xd0] sm:$0xff] %vm423_vm0, %v2672_v2  ;;  %451 = vst.msk [vmem:[#allocation2 + $0xd8] sm:$0xff] %vm423_vm0, %v2672_v2  ;;  %s3789_s29 = smov (!%p2230_p7, %s400_s29), %s3787_s15  ;;  %s408_s7 = ssub.s32 0, %s407_s6  ;;  %v2637_v58 = vld [vmem:[%s3766_s2 + $0x20] sm:$0xff] (%p504_p6)   ;;  %v2639_v60 = vld [vmem:[%s3766_s2 + $0x28] sm:$0xff] (%p504_p6)  }
  0x15   : > { %452 = vst.msk [vmem:[#allocation2 + $0xe0] sm:$0xff] %vm423_vm0, %v2672_v2  ;;  %453 = vst.msk [vmem:[#allocation2 + $0xe8] sm:$0xff] %vm423_vm0, %v2672_v2  ;;  %s2231_s9 = sshll.u32 %s3789_s29, 8  ;;  %s3791_s7 = smov (!%p404_p8, %s408_s7), %s407_s6  ;;  %2291 = vmatpush3.bf16.msra.mxu0 (%p504_p6), %v2631_v52  ;;  %2575 = vmatpush3.bf16.msra.mxu1 (%p504_p6), %v2631_v52  ;;  %v2640_v61 = vld [vmem:[%s3766_s2 + $0x70] sm:$0xff] (%p504_p6)   ;;  %v2642_v63 = vld [vmem:[%s3766_s2 + $0x78] sm:$0xff] (%p504_p6)  }
  0x16   : > { %454 = vst.msk [vmem:[#allocation2 + $0xf0] sm:$0xff] %vm423_vm0, %v2672_v2  ;;  %455 = vst.msk [vmem:[#allocation2 + $0xf8] sm:$0xff] %vm423_vm0, %v2672_v2  ;;  %p2234_p9 = scmp.lt.s32.totalorder %s3791_s7, 0  ;;  %s414_s10 = sadd.s32 2, %s3791_s7  ;;  %2292 = vmatprep.subr.bf16.mxu0 (%p504_p6), %v2632_v53  ;;  %2568 = vmatprep.subr.bf16.mxu1 (%p504_p6), %v2632_v53  ;;  %v2641_v62 = vld [vmem:[%s3766_s2 + $0x30] sm:$0xff] (%p504_p6)   ;;  %v2643_v2 = vld [vmem:[%s3766_s2 + $0x38] sm:$0xff] (%p504_p6)  }
  0x17   : > { %509 = sbr.rel (!%p504_p6) target bundleno = 324 (0x144), region = 48  ;;  %908 = vst.msk [vmem:[#allocation3 + $0x40] sm:$0xff] (%p504_p6), %vm423_vm0, %v2628_v49  ;;  %900 = vst.msk [vmem:[#allocation3] sm:$0xff] (%p504_p6), %vm423_vm0, %v2629_v50 }
  0x18   : > { %s3793_s10 = smov (!%p2234_p9, %s414_s10), %s3791_s7  ;;  %909 = vst.msk [vmem:[#allocation3 + $0x48] sm:$0xff] (%p504_p6), %vm423_vm0, %v2630_v51  ;;  %901 = vst.msk [vmem:[#allocation3 + $0x8] sm:$0xff] (%p504_p6), %vm423_vm0, %v2631_v52  ;;  %v542_v51 = vld [vmem:[#allocation2] sm:$0xff] (%p504_p6) }
  0x19   : > { %s2235_s11 = sshll.u32 %s3793_s10, 8  ;;  %910 = vst.msk [vmem:[#allocation3 + $0x50] sm:$0xff] (%p504_p6), %vm423_vm0, %v2632_v53  ;;  %902 = vst.msk [vmem:[#allocation3 + $0x10] sm:$0xff] (%p504_p6), %vm423_vm0, %v2633_v54  ;;  %2293 = vmatpush3.bf16.msra.mxu0 (%p504_p6), %v2633_v54  ;;  %2576 = vmatpush3.bf16.msra.mxu1 (%p504_p6), %v2633_v54  ;;  %v558_v53 = vld [vmem:[#allocation2 + $0x80] sm:$0xff] (%p504_p6) }
  0x1a   : > { %911 = vst.msk [vmem:[#allocation3 + $0x58] sm:$0xff] (%p504_p6), %vm423_vm0, %v2634_v55  ;;  %903 = vst.msk [vmem:[#allocation3 + $0x18] sm:$0xff] (%p504_p6), %vm423_vm0, %v2635_v56  ;;  %2294 = vmatprep.subr.bf16.mxu0 (%p504_p6), %v2634_v55  ;;  %2569 = vmatprep.subr.bf16.mxu1 (%p504_p6), %v2634_v55 }
  0x1b   : > { %912 = vst.msk [vmem:[#allocation3 + $0x60] sm:$0xff] (%p504_p6), %vm423_vm0, %v2636_v57  ;;  %904 = vst.msk [vmem:[#allocation3 + $0x20] sm:$0xff] (%p504_p6), %vm423_vm0, %v2637_v58 }
  0x1c   : > { %913 = vst.msk [vmem:[#allocation3 + $0x68] sm:$0xff] (%p504_p6), %vm423_vm0, %v2638_v59  ;;  %905 = vst.msk [vmem:[#allocation3 + $0x28] sm:$0xff] (%p504_p6), %vm423_vm0, %v2639_v60 }
  0x1d   : > { %914 = vst.msk [vmem:[#allocation3 + $0x70] sm:$0xff] (%p504_p6), %vm423_vm0, %v2640_v61  ;;  %2295 = vmatpush3.bf16.msra.mxu0 (%p504_p6), %v2635_v56  ;;  %2577 = vmatpush3.bf16.msra.mxu1 (%p504_p6), %v2635_v56  ;;  %906 = vst.msk [vmem:[#allocation3 + $0x30] sm:$0xff] (%p504_p6), %vm423_vm0, %v2641_v62 }
  0x1e   : > { %2296 = vmatprep.subr.bf16.mxu0 %v2636_v57  ;;  %2570 = vmatprep.subr.bf16.mxu1 %v2636_v57  ;;  %915 = vst.msk [vmem:[#allocation3 + $0x78] sm:$0xff] %vm423_vm0, %v2642_v63  ;;  %907 = vst.msk [vmem:[#allocation3 + $0x38] sm:$0xff] %vm423_vm0, %v2643_v2 }
  0x21   : > { %2297 = vmatpush3.bf16.msra.mxu0 %v2637_v58  ;;  %2578 = vmatpush3.bf16.msra.mxu1 %v2637_v58 }
  0x22   : > { %2298 = vmatprep.subr.bf16.mxu0 %v2638_v59  ;;  %2571 = vmatprep.subr.bf16.mxu1 %v2638_v59  ;;  %v543_v59 = vld [vmem:[#allocation2 + $0x8] sm:$0xff] }
  0x25   : > { %2299 = vmatpush3.bf16.msra.mxu0 %v2639_v60  ;;  %2579 = vmatpush3.bf16.msra.mxu1 %v2639_v60 }
  0x26   : > { %2300 = vmatprep.subr.bf16.mxu0 %v2640_v61  ;;  %2572 = vmatprep.subr.bf16.mxu1 %v2640_v61  ;;  %v559_v61 = vld [vmem:[#allocation2 + $0x88] sm:$0xff] }
  0x29   : > { %2301 = vmatpush3.bf16.msra.mxu0 %v2641_v62  ;;  %2580 = vmatpush3.bf16.msra.mxu1 %v2641_v62 }
  0x2a   : > { %2302 = vmatprep.subr.bf16.mxu0 %v2642_v63  ;;  %2573 = vmatprep.subr.bf16.mxu1 %v2642_v63 }
  0x2d   : > { %2303 = vmatpush3.bf16.msra.mxu0 %v2643_v2  ;;  %2581 = vmatpush3.bf16.msra.mxu1 %v2643_v2 }
  0x30   : > { %703 = vmatmul.mubr.bf16.vlgmr.msra.gmra.mrb[0].mxu0 %v472_v6  ;;  %767 = vmatmul.mubr.bf16.vlgmr.msra.gmra.mrb[0].mxu1 %v488_v33 }
  0x31   : > { %710 = vmatprep.mubr.bf16.mxu0 %v475_v9  ;;  %774 = vmatprep.mubr.bf16.mxu1 %v491_v36 }
  0x38   : > { %711 = vmatmul.mubr.bf16.gmra.mrb[4].mxu0 %v474_v8  ;;  %775 = vmatmul.mubr.bf16.gmra.mrb[4].mxu1 %v490_v35 }
  0x39   : > { %718 = vmatprep.mubr.bf16.mxu0 %v477_v14  ;;  %782 = vmatprep.mubr.bf16.mxu1 %v493_v38 }
  0x40   : > { %719 = vmatmul.mubr.bf16.gmra.mrb[8].mxu0 %v476_v13  ;;  %783 = vmatmul.mubr.bf16.gmra.mrb[8].mxu1 %v492_v37 }
  0x41   : > { %726 = vmatprep.mubr.bf16.mxu0 %v479_v16  ;;  %790 = vmatprep.mubr.bf16.mxu1 %v495_v40 }
  0x48   : > { %727 = vmatmul.mubr.bf16.gmra.mrb[12].mxu0 %v478_v15  ;;  %791 = vmatmul.mubr.bf16.gmra.mrb[12].mxu1 %v494_v39 }
  0x49   : > { %734 = vmatprep.mubr.bf16.mxu0 %v481_v21  ;;  %798 = vmatprep.mubr.bf16.mxu1 %v497_v42 }
  0x50   : > { %735 = vmatmul.mubr.bf16.gmra.mrb[16].mxu0 %v480_v20  ;;  %799 = vmatmul.mubr.bf16.gmra.mrb[16].mxu1 %v496_v41 }
  0x51   : > { %742 = vmatprep.mubr.bf16.mxu0 %v483_v23  ;;  %806 = vmatprep.mubr.bf16.mxu1 %v499_v44 }
  0x58   : > { %743 = vmatmul.mubr.bf16.gmra.mrb[20].mxu0 %v482_v22  ;;  %807 = vmatmul.mubr.bf16.gmra.mrb[20].mxu1 %v498_v43 }
  0x59   : > { %750 = vmatprep.mubr.bf16.mxu0 %v485_v28  ;;  %814 = vmatprep.mubr.bf16.mxu1 %v501_v46 }
  0x60   : > { %751 = vmatmul.mubr.bf16.gmra.mrb[24].mxu0 %v3775_v27  ;;  %815 = vmatmul.mubr.bf16.gmra.mrb[24].mxu1 %v3774_v45  ;;  %v560_v45 = vld [vmem:[#allocation2 + $0x90] sm:$0xff] }
  0x61   : > { %758 = vmatprep.mubr.bf16.mxu0 %v3773_v30  ;;  %822 = vmatprep.mubr.bf16.mxu1 %v3771_v48 }
  0x68   : > { %759 = vmatmul.mubr.bf16.gmra.mrb[28].mxu0 %v3770_v29  ;;  %823 = vmatmul.mubr.bf16.gmra.mrb[28].mxu1 %v3772_v47 }
 0x103   : > { %v2304_v49 = vpop.f32.mrb[0].mxu0  ;;  %v2352_v50 = vpop.f32.mrb[0].mxu1 }
 0x104   : > { %v2305_v52 = vpop.f32.mrb[1].mxu0  ;;  %v2353_v54 = vpop.f32.mrb[1].mxu1 }
 0x105   : > { %v2306_v55 = vadd.f32 %v2305_v52, %v2304_v49  ;;  %v2354_v56 = vadd.f32 %v2353_v54, %v2352_v50  ;;  %v2307_v57 = vpop.f32.mrb[2].mxu0  ;;  %v2355_v58 = vpop.f32.mrb[2].mxu1  ;;  %v544_v52 = vld [vmem:[#allocation2 + $0x10] sm:$0xff] }
 0x106   : > { %v2308_v60 = vpop.f32.mrb[3].mxu0  ;;  %v2356_v62 = vpop.f32.mrb[3].mxu1 }
 0x107   : > { %v831_v63 = vadd.f32 %v2306_v55, %v542_v51  ;;  %v847_v2 = vadd.f32 %v2354_v56, %v558_v53  ;;  %v2309_v29 = vadd.f32 %v2308_v60, %v2307_v57  ;;  %v2357_v48 = vadd.f32 %v2356_v62, %v2355_v58  ;;  %v545_v57 = vld [vmem:[#allocation2 + $0x18] sm:$0xff] }
 0x108   : > { %v561_v60 = vld [vmem:[#allocation2 + $0x98] sm:$0xff] }
 0x109   : > { %864 = vst.msk [vmem:[#allocation2] sm:$0xff] %vm423_vm0, %v831_v63  ;;  %880 = vst.msk [vmem:[#allocation2 + $0x80] sm:$0xff] %vm423_vm0, %v847_v2  ;;  %v832_v47 = vadd.f32 %v2309_v29, %v543_v59  ;;  %v848_v30 = vadd.f32 %v2357_v48, %v559_v61  ;;  %v546_v2 = vld [vmem:[#allocation2 + $0x20] sm:$0xff] }
 0x10b   : > { %865 = vst.msk [vmem:[#allocation2 + $0x8] sm:$0xff] %vm423_vm0, %v832_v47  ;;  %881 = vst.msk [vmem:[#allocation2 + $0x88] sm:$0xff] %vm423_vm0, %v848_v30  ;;  %v2310_v49 = vpop.f32.mrb[4].mxu0  ;;  %v2358_v50 = vpop.f32.mrb[4].mxu1 }
 0x10c   : > { %v2311_v54 = vpop.f32.mrb[5].mxu0  ;;  %v2359_v27 = vpop.f32.mrb[5].mxu1 }
 0x10d   : > { %v2312_v51 = vadd.f32 %v2311_v54, %v2310_v49  ;;  %v2360_v53 = vadd.f32 %v2359_v27, %v2358_v50  ;;  %v2313_v55 = vpop.f32.mrb[6].mxu0  ;;  %v2361_v56 = vpop.f32.mrb[6].mxu1  ;;  %v562_v50 = vld [vmem:[#allocation2 + $0xa0] sm:$0xff] }
 0x10e   : > { %v2314_v58 = vpop.f32.mrb[7].mxu0  ;;  %v2362_v62 = vpop.f32.mrb[7].mxu1 }
 0x10f   : > { %v833_v29 = vadd.f32 %v2312_v51, %v544_v52  ;;  %v849_v48 = vadd.f32 %v2360_v53, %v560_v45  ;;  %v2315_v59 = vadd.f32 %v2314_v58, %v2313_v55  ;;  %v2363_v47 = vadd.f32 %v2362_v62, %v2361_v56  ;;  %v547_v55 = vld [vmem:[#allocation2 + $0x28] sm:$0xff] }
 0x110   : > { %v563_v58 = vld [vmem:[#allocation2 + $0xa8] sm:$0xff] }
 0x111   : > { %866 = vst.msk [vmem:[#allocation2 + $0x10] sm:$0xff] %vm423_vm0, %v833_v29  ;;  %882 = vst.msk [vmem:[#allocation2 + $0x90] sm:$0xff] %vm423_vm0, %v849_v48  ;;  %v834_v30 = vadd.f32 %v2315_v59, %v545_v57  ;;  %v850_v61 = vadd.f32 %v2363_v47, %v561_v60 }
 0x113   : > { %867 = vst.msk [vmem:[#allocation2 + $0x18] sm:$0xff] %vm423_vm0, %v834_v30  ;;  %883 = vst.msk [vmem:[#allocation2 + $0x98] sm:$0xff] %vm423_vm0, %v850_v61  ;;  %v2316_v27 = vpop.f32.mrb[8].mxu0  ;;  %v2364_v63 = vpop.f32.mrb[8].mxu1 }
 0x114   : > { %v2317_v49 = vpop.f32.mrb[9].mxu0  ;;  %v2365_v54 = vpop.f32.mrb[9].mxu1 }
 0x115   : > { %v2318_v52 = vadd.f32 %v2317_v49, %v2316_v27  ;;  %v2366_v45 = vadd.f32 %v2365_v54, %v2364_v63  ;;  %v2319_v51 = vpop.f32.mrb[10].mxu0  ;;  %v2367_v53 = vpop.f32.mrb[10].mxu1  ;;  %v548_v27 = vld [vmem:[#allocation2 + $0x30] sm:$0xff] }
 0x116   : > { %v2320_v56 = vpop.f32.mrb[11].mxu0  ;;  %v2368_v62 = vpop.f32.mrb[11].mxu1  ;;  %v564_v49 = vld [vmem:[#allocation2 + $0xb0] sm:$0xff] }
 0x117   : > { %v835_v57 = vadd.f32 %v2318_v52, %v546_v2  ;;  %v851_v60 = vadd.f32 %v2366_v45, %v562_v50  ;;  %v2321_v29 = vadd.f32 %v2320_v56, %v2319_v51  ;;  %v2369_v48 = vadd.f32 %v2368_v62, %v2367_v53  ;;  %v549_v51 = vld [vmem:[#allocation2 + $0x38] sm:$0xff] }
 0x118   : > { %v565_v56 = vld [vmem:[#allocation2 + $0xb8] sm:$0xff] }
 0x119   : > { %868 = vst.msk [vmem:[#allocation2 + $0x20] sm:$0xff] %vm423_vm0, %v835_v57  ;;  %884 = vst.msk [vmem:[#allocation2 + $0xa0] sm:$0xff] %vm423_vm0, %v851_v60  ;;  %v836_v59 = vadd.f32 %v2321_v29, %v547_v55  ;;  %v852_v47 = vadd.f32 %v2369_v48, %v563_v58 }
 0x11b   : > { %869 = vst.msk [vmem:[#allocation2 + $0x28] sm:$0xff] %vm423_vm0, %v836_v59  ;;  %885 = vst.msk [vmem:[#allocation2 + $0xa8] sm:$0xff] %vm423_vm0, %v852_v47  ;;  %v2322_v30 = vpop.f32.mrb[12].mxu0  ;;  %v2370_v61 = vpop.f32.mrb[12].mxu1 }
 0x11c   : > { %v2323_v63 = vpop.f32.mrb[13].mxu0  ;;  %v2371_v54 = vpop.f32.mrb[13].mxu1 }
 0x11d   : > { %v2324_v2 = vadd.f32 %v2323_v63, %v2322_v30  ;;  %v2372_v50 = vadd.f32 %v2371_v54, %v2370_v61  ;;  %v2325_v52 = vpop.f32.mrb[14].mxu0  ;;  %v2373_v45 = vpop.f32.mrb[14].mxu1  ;;  %v550_v30 = vld [vmem:[#allocation2 + $0x40] sm:$0xff] }
 0x11e   : > { %v2326_v53 = vpop.f32.mrb[15].mxu0  ;;  %v2374_v62 = vpop.f32.mrb[15].mxu1  ;;  %v566_v63 = vld [vmem:[#allocation2 + $0xc0] sm:$0xff] }
 0x11f   : > { %v837_v55 = vadd.f32 %v2324_v2, %v548_v27  ;;  %v853_v58 = vadd.f32 %v2372_v50, %v564_v49  ;;  %v2327_v57 = vadd.f32 %v2326_v53, %v2325_v52  ;;  %v2375_v60 = vadd.f32 %v2374_v62, %v2373_v45  ;;  %v551_v52 = vld [vmem:[#allocation2 + $0x48] sm:$0xff] }
 0x120   : > { %v567_v53 = vld [vmem:[#allocation2 + $0xc8] sm:$0xff] }
 0x121   : > { %870 = vst.msk [vmem:[#allocation2 + $0x30] sm:$0xff] %vm423_vm0, %v837_v55  ;;  %886 = vst.msk [vmem:[#allocation2 + $0xb0] sm:$0xff] %vm423_vm0, %v853_v58  ;;  %v838_v29 = vadd.f32 %v2327_v57, %v549_v51  ;;  %v854_v48 = vadd.f32 %v2375_v60, %v565_v56 }
 0x123   : > { %871 = vst.msk [vmem:[#allocation2 + $0x38] sm:$0xff] %vm423_vm0, %v838_v29  ;;  %887 = vst.msk [vmem:[#allocation2 + $0xb8] sm:$0xff] %vm423_vm0, %v854_v48  ;;  %v2328_v59 = vpop.f32.mrb[16].mxu0  ;;  %v2376_v47 = vpop.f32.mrb[16].mxu1 }
 0x124   : > { %v2329_v61 = vpop.f32.mrb[17].mxu0  ;;  %v2377_v54 = vpop.f32.mrb[17].mxu1 }
 0x125   : > { %v2330_v27 = vadd.f32 %v2329_v61, %v2328_v59  ;;  %v2378_v49 = vadd.f32 %v2377_v54, %v2376_v47  ;;  %v2331_v2 = vpop.f32.mrb[18].mxu0  ;;  %v2379_v50 = vpop.f32.mrb[18].mxu1  ;;  %v552_v59 = vld [vmem:[#allocation2 + $0x50] sm:$0xff] }
 0x126   : > { %v2332_v45 = vpop.f32.mrb[19].mxu0  ;;  %v2380_v62 = vpop.f32.mrb[19].mxu1  ;;  %v568_v61 = vld [vmem:[#allocation2 + $0xd0] sm:$0xff] }
 0x127   : > { %v839_v51 = vadd.f32 %v2330_v27, %v550_v30  ;;  %v855_v56 = vadd.f32 %v2378_v49, %v566_v63  ;;  %v2333_v55 = vadd.f32 %v2332_v45, %v2331_v2  ;;  %v2381_v58 = vadd.f32 %v2380_v62, %v2379_v50  ;;  %v553_v2 = vld [vmem:[#allocation2 + $0x58] sm:$0xff] }
 0x128   : > { %v569_v45 = vld [vmem:[#allocation2 + $0xd8] sm:$0xff] }
 0x129   : > { %872 = vst.msk [vmem:[#allocation2 + $0x40] sm:$0xff] %vm423_vm0, %v839_v51  ;;  %888 = vst.msk [vmem:[#allocation2 + $0xc0] sm:$0xff] %vm423_vm0, %v855_v56  ;;  %v840_v57 = vadd.f32 %v2333_v55, %v551_v52  ;;  %v856_v60 = vadd.f32 %v2381_v58, %v567_v53 }
 0x12b   : > { %873 = vst.msk [vmem:[#allocation2 + $0x48] sm:$0xff] %vm423_vm0, %v840_v57  ;;  %889 = vst.msk [vmem:[#allocation2 + $0xc8] sm:$0xff] %vm423_vm0, %v856_v60  ;;  %v2334_v29 = vpop.f32.mrb[20].mxu0  ;;  %v2382_v48 = vpop.f32.mrb[20].mxu1 }
 0x12c   : > { %v2335_v47 = vpop.f32.mrb[21].mxu0  ;;  %v2383_v54 = vpop.f32.mrb[21].mxu1 }
 0x12d   : > { %v2336_v30 = vadd.f32 %v2335_v47, %v2334_v29  ;;  %v2384_v63 = vadd.f32 %v2383_v54, %v2382_v48  ;;  %v2337_v27 = vpop.f32.mrb[22].mxu0  ;;  %v2385_v49 = vpop.f32.mrb[22].mxu1  ;;  %v554_v29 = vld [vmem:[#allocation2 + $0x60] sm:$0xff] }
 0x12e   : > { %v2338_v50 = vpop.f32.mrb[23].mxu0  ;;  %v2386_v62 = vpop.f32.mrb[23].mxu1  ;;  %v570_v47 = vld [vmem:[#allocation2 + $0xe0] sm:$0xff] }
 0x12f   : > { %v841_v52 = vadd.f32 %v2336_v30, %v552_v59  ;;  %v857_v53 = vadd.f32 %v2384_v63, %v568_v61  ;;  %v2339_v51 = vadd.f32 %v2338_v50, %v2337_v27  ;;  %v2387_v56 = vadd.f32 %v2386_v62, %v2385_v49  ;;  %v555_v27 = vld [vmem:[#allocation2 + $0x68] sm:$0xff] }
 0x130   : > { %v571_v50 = vld [vmem:[#allocation2 + $0xe8] sm:$0xff] }
 0x131   : > { %874 = vst.msk [vmem:[#allocation2 + $0x50] sm:$0xff] %vm423_vm0, %v841_v52  ;;  %890 = vst.msk [vmem:[#allocation2 + $0xd0] sm:$0xff] %vm423_vm0, %v857_v53  ;;  %v842_v55 = vadd.f32 %v2339_v51, %v553_v2  ;;  %v858_v58 = vadd.f32 %v2387_v56, %v569_v45 }
 0x133   : > { %875 = vst.msk [vmem:[#allocation2 + $0x58] sm:$0xff] %vm423_vm0, %v842_v55  ;;  %891 = vst.msk [vmem:[#allocation2 + $0xd8] sm:$0xff] %vm423_vm0, %v858_v58  ;;  %v2340_v57 = vpop.f32.mrb[24].mxu0  ;;  %v2388_v60 = vpop.f32.mrb[24].mxu1 }
 0x134   : > { %v2341_v48 = vpop.f32.mrb[25].mxu0  ;;  %v2389_v54 = vpop.f32.mrb[25].mxu1 }
 0x135   : > { %v2342_v59 = vadd.f32 %v2341_v48, %v2340_v57  ;;  %v2390_v61 = vadd.f32 %v2389_v54, %v2388_v60  ;;  %v2343_v30 = vpop.f32.mrb[26].mxu0  ;;  %v2391_v63 = vpop.f32.mrb[26].mxu1  ;;  %v556_v57 = vld [vmem:[#allocation2 + $0x70] sm:$0xff] }
 0x136   : > { %v2344_v49 = vpop.f32.mrb[27].mxu0  ;;  %v2392_v62 = vpop.f32.mrb[27].mxu1  ;;  %v572_v48 = vld [vmem:[#allocation2 + $0xf0] sm:$0xff] }
 0x137   : > { %v843_v2 = vadd.f32 %v2342_v59, %v554_v29  ;;  %v859_v45 = vadd.f32 %v2390_v61, %v570_v47  ;;  %v2345_v52 = vadd.f32 %v2344_v49, %v2343_v30  ;;  %v2393_v53 = vadd.f32 %v2392_v62, %v2391_v63  ;;  %v557_v30 = vld [vmem:[#allocation2 + $0x78] sm:$0xff] }
 0x138   : > { %v573_v49 = vld [vmem:[#allocation2 + $0xf8] sm:$0xff] }
 0x139   : > { %876 = vst.msk [vmem:[#allocation2 + $0x60] sm:$0xff] %vm423_vm0, %v843_v2  ;;  %892 = vst.msk [vmem:[#allocation2 + $0xe0] sm:$0xff] %vm423_vm0, %v859_v45  ;;  %v844_v51 = vadd.f32 %v2345_v52, %v555_v27  ;;  %v860_v56 = vadd.f32 %v2393_v53, %v571_v50 }
 0x13b   : > { %877 = vst.msk [vmem:[#allocation2 + $0x68] sm:$0xff] %vm423_vm0, %v844_v51  ;;  %893 = vst.msk [vmem:[#allocation2 + $0xe8] sm:$0xff] %vm423_vm0, %v860_v56  ;;  %v2346_v55 = vpop.f32.mrb[28].mxu0  ;;  %v2394_v58 = vpop.f32.mrb[28].mxu1 }
 0x13c   : > { %v2347_v60 = vpop.f32.mrb[29].mxu0  ;;  %v2395_v54 = vpop.f32.mrb[29].mxu1 }
 0x13d   : > { %v2348_v29 = vadd.f32 %v2347_v60, %v2346_v55  ;;  %v2396_v47 = vadd.f32 %v2395_v54, %v2394_v58  ;;  %v2349_v59 = vpop.f32.mrb[30].mxu0  ;;  %v2397_v61 = vpop.f32.mrb[30].mxu1 }
 0x13e   : > { %v2350_v63 = vpop.f32.mrb[31].mxu0  ;;  %v2398_v62 = vpop.f32.mrb[31].mxu1 }
 0x13f   : > { %v845_v27 = vadd.f32 %v2348_v29, %v556_v57  ;;  %v861_v50 = vadd.f32 %v2396_v47, %v572_v48  ;;  %v2351_v2 = vadd.f32 %v2350_v63, %v2349_v59  ;;  %v2399_v45 = vadd.f32 %v2398_v62, %v2397_v61 }
 0x141   : > { %878 = vst.msk [vmem:[#allocation2 + $0x70] sm:$0xff] %vm423_vm0, %v845_v27  ;;  %894 = vst.msk [vmem:[#allocation2 + $0xf0] sm:$0xff] %vm423_vm0, %v861_v50  ;;  %v846_v52 = vadd.f32 %v2351_v2, %v557_v30  ;;  %v862_v53 = vadd.f32 %v2399_v45, %v573_v49 }
 0x143   : > { %879 = vst.msk [vmem:[#allocation2 + $0x78] sm:$0xff] %vm423_vm0, %v846_v52  ;;  %895 = vst.msk [vmem:[#allocation2 + $0xf8] sm:$0xff] %vm423_vm0, %v862_v53 }
 0x144 PF: > { %918 = sbr.rel (%p504_p6) target bundleno = 640 (0x280), region = 52  ;;  %s920_s22 = sshra.s32 (!%p504_p6), %s2231_s9, 4  ;;  %1004 = vmatprep.mubr.bf16.mxu0 (!%p504_p6), %v473_v7  ;;  %1068 = vmatprep.mubr.bf16.mxu1 (!%p504_p6), %v489_v34  ;;  %v3776_v0 = vunpack.c.l.s8.bf16 (!%p504_p6), %v2801_v11  ;;  %v3777_v1 = vunpack.c.l.s8.bf16 (!%p504_p6), %v2872_v31  ;;  %v3778_v3 = vunpack.c.h.s8.bf16 (!%p504_p6), %v2806_v12  ;;  %v3779_v4 = vunpack.c.h.s8.bf16 (!%p504_p6), %v2877_v32  ;;  %v940_v10 = vld [vmem:[#allocation2] sm:$0xff] (!%p504_p6)  ;;  %v941_v19 = vld [vmem:[#allocation2 + $0x8] sm:$0xff] (!%p504_p6) }
 0x145   : > { %s2253_s23 = sshll.u32 (!%p504_p6), %s920_s22, 3  ;;  %v3780_v5 = vunpack.c.h.s8.bf16 (!%p504_p6), %v2801_v11 }
 0x146   : > { %s3077_s24 = scalar_lea.vmem (!%p504_p6), [#allocation3], %s2253_s23 }
 0x14b   : > { %v932_v51 = vld [vmem:[%s3077_s24 + $0x40] sm:$0xff]  ;;  %v933_v55 = vld [vmem:[%s3077_s24 + $0x48] sm:$0xff]  ;;  %v934_v34 = vld [vmem:[%s3077_s24 + $0x50] sm:$0xff] }
 0x14c   : > { %v924_v56 = vld [vmem:[%s3077_s24] sm:$0xff]  ;;  %2400 = vmatprep.subr.bf16.mxu0 %v932_v51  ;;  %2582 = vmatprep.subr.bf16.mxu1 %v932_v51  ;;  %v925_v7 = vld [vmem:[%s3077_s24 + $0x8] sm:$0xff]  ;;  %v926_v58 = vld [vmem:[%s3077_s24 + $0x10] sm:$0xff] }
 0x14d   : > { %2401 = vmatpush3.bf16.msra.mxu0 %v924_v56  ;;  %2590 = vmatpush3.bf16.msra.mxu1 %v924_v56  ;;  %v935_v57 = vld [vmem:[%s3077_s24 + $0x58] sm:$0xff]  ;;  %v936_v48 = vld [vmem:[%s3077_s24 + $0x60] sm:$0xff]  ;;  %v937_v29 = vld [vmem:[%s3077_s24 + $0x68] sm:$0xff] }
 0x14e   : > { %2402 = vmatprep.subr.bf16.mxu0 %v933_v55  ;;  %2583 = vmatprep.subr.bf16.mxu1 %v933_v55  ;;  %v927_v60 = vld [vmem:[%s3077_s24 + $0x18] sm:$0xff]  ;;  %v928_v54 = vld [vmem:[%s3077_s24 + $0x20] sm:$0xff]  ;;  %v929_v47 = vld [vmem:[%s3077_s24 + $0x28] sm:$0xff] }
 0x14f   : > { %v938_v59 = vld [vmem:[%s3077_s24 + $0x70] sm:$0xff]  ;;  %v939_v30 = vld [vmem:[%s3077_s24 + $0x78] sm:$0xff]  ;;  %v944_v51 = vld [vmem:[#allocation2 + $0x20] sm:$0xff] }
 0x150   : > { %v930_v61 = vld [vmem:[%s3077_s24 + $0x30] sm:$0xff]  ;;  %v931_v63 = vld [vmem:[%s3077_s24 + $0x38] sm:$0xff]  ;;  %v960_v55 = vld [vmem:[#allocation2 + $0xa0] sm:$0xff] }
 0x151   : > { %2403 = vmatpush3.bf16.msra.mxu0 %v925_v7  ;;  %2591 = vmatpush3.bf16.msra.mxu1 %v925_v7 }
 0x152   : > { %2404 = vmatprep.subr.bf16.mxu0 %v934_v34  ;;  %2584 = vmatprep.subr.bf16.mxu1 %v934_v34 }
 0x155   : > { %2405 = vmatpush3.bf16.msra.mxu0 %v926_v58  ;;  %2592 = vmatpush3.bf16.msra.mxu1 %v926_v58 }
 0x156   : > { %2406 = vmatprep.subr.bf16.mxu0 %v935_v57  ;;  %2585 = vmatprep.subr.bf16.mxu1 %v935_v57 }
 0x159   : > { %2407 = vmatpush3.bf16.msra.mxu0 %v927_v60  ;;  %2593 = vmatpush3.bf16.msra.mxu1 %v927_v60 }
 0x15a   : > { %2408 = vmatprep.subr.bf16.mxu0 %v936_v48  ;;  %2586 = vmatprep.subr.bf16.mxu1 %v936_v48  ;;  %v945_v48 = vld [vmem:[#allocation2 + $0x28] sm:$0xff] }
 0x15d   : > { %2409 = vmatpush3.bf16.msra.mxu0 %v928_v54  ;;  %2594 = vmatpush3.bf16.msra.mxu1 %v928_v54 }
 0x15e   : > { %2410 = vmatprep.subr.bf16.mxu0 %v937_v29  ;;  %2587 = vmatprep.subr.bf16.mxu1 %v937_v29  ;;  %v961_v29 = vld [vmem:[#allocation2 + $0xa8] sm:$0xff] }
 0x161   : > { %2411 = vmatpush3.bf16.msra.mxu0 %v929_v47  ;;  %2595 = vmatpush3.bf16.msra.mxu1 %v929_v47 }
 0x162   : > { %2412 = vmatprep.subr.bf16.mxu0 %v938_v59  ;;  %2588 = vmatprep.subr.bf16.mxu1 %v938_v59 }
 0x165   : > { %2413 = vmatpush3.bf16.msra.mxu0 %v930_v61  ;;  %2596 = vmatpush3.bf16.msra.mxu1 %v930_v61 }
 0x166   : > { %2414 = vmatprep.subr.bf16.mxu0 %v939_v30  ;;  %2589 = vmatprep.subr.bf16.mxu1 %v939_v30 }
 0x169   : > { %2415 = vmatpush3.bf16.msra.mxu0 %v931_v63  ;;  %2597 = vmatpush3.bf16.msra.mxu1 %v931_v63 }
 0x16c   : > { %1005 = vmatmul.mubr.bf16.vlgmr.msra.gmra.mrb[0].mxu0 %v472_v6  ;;  %1069 = vmatmul.mubr.bf16.vlgmr.msra.gmra.mrb[0].mxu1 %v488_v33  ;;  %v3781_v6 = vunpack.c.h.s8.bf16 %v2872_v31  ;;  %v942_v33 = vld [vmem:[#allocation2 + $0x10] sm:$0xff] }
 0x16d   : > { %1012 = vmatprep.mubr.bf16.mxu0 %v475_v9  ;;  %1076 = vmatprep.mubr.bf16.mxu1 %v491_v36  ;;  %v958_v36 = vld [vmem:[#allocation2 + $0x90] sm:$0xff] }
 0x174   : > { %1013 = vmatmul.mubr.bf16.gmra.mrb[4].mxu0 %v474_v8  ;;  %1077 = vmatmul.mubr.bf16.gmra.mrb[4].mxu1 %v490_v35 }
 0x175   : > { %1020 = vmatprep.mubr.bf16.mxu0 %v477_v14  ;;  %1084 = vmatprep.mubr.bf16.mxu1 %v493_v38  ;;  %v956_v14 = vld [vmem:[#allocation2 + $0x80] sm:$0xff] }
 0x17c   : > { %1021 = vmatmul.mubr.bf16.gmra.mrb[8].mxu0 %v476_v13  ;;  %1085 = vmatmul.mubr.bf16.gmra.mrb[8].mxu1 %v492_v37 }
 0x17d   : > { %1028 = vmatprep.mubr.bf16.mxu0 %v479_v16  ;;  %1092 = vmatprep.mubr.bf16.mxu1 %v495_v40 }
 0x184   : > { %1029 = vmatmul.mubr.bf16.gmra.mrb[12].mxu0 %v478_v15  ;;  %1093 = vmatmul.mubr.bf16.gmra.mrb[12].mxu1 %v494_v39 }
 0x185   : > { %1036 = vmatprep.mubr.bf16.mxu0 %v481_v21  ;;  %1100 = vmatprep.mubr.bf16.mxu1 %v497_v42  ;;  %v957_v21 = vld [vmem:[#allocation2 + $0x88] sm:$0xff]  ;;  %v943_v42 = vld [vmem:[#allocation2 + $0x18] sm:$0xff] }
 0x18c   : > { %1037 = vmatmul.mubr.bf16.gmra.mrb[16].mxu0 %v480_v20  ;;  %1101 = vmatmul.mubr.bf16.gmra.mrb[16].mxu1 %v496_v41 }
 0x18d   : > { %1044 = vmatprep.mubr.bf16.mxu0 %v483_v23  ;;  %1108 = vmatprep.mubr.bf16.mxu1 %v499_v44  ;;  %v959_v44 = vld [vmem:[#allocation2 + $0x98] sm:$0xff] }
 0x194   : > { %1045 = vmatmul.mubr.bf16.gmra.mrb[20].mxu0 %v482_v22  ;;  %1109 = vmatmul.mubr.bf16.gmra.mrb[20].mxu1 %v498_v43 }
 0x195   : > { %1052 = vmatprep.mubr.bf16.mxu0 %v485_v28  ;;  %1116 = vmatprep.mubr.bf16.mxu1 %v501_v46 }
 0x19c   : > { %1053 = vmatmul.mubr.bf16.gmra.mrb[24].mxu0 %v3776_v0  ;;  %1117 = vmatmul.mubr.bf16.gmra.mrb[24].mxu1 %v3777_v1 }
 0x19d   : > { %1060 = vmatprep.mubr.bf16.mxu0 %v3778_v3  ;;  %1124 = vmatprep.mubr.bf16.mxu1 %v3779_v4 }
 0x1a4   : > { %1061 = vmatmul.mubr.bf16.gmra.mrb[28].mxu0 %v3780_v5  ;;  %1125 = vmatmul.mubr.bf16.gmra.mrb[28].mxu1 %v3781_v6  ;;  %v946_v5 = vld [vmem:[#allocation2 + $0x30] sm:$0xff] }
 0x23f   : > { %v2416_v8 = vpop.f32.mrb[0].mxu0  ;;  %v2464_v9 = vpop.f32.mrb[0].mxu1 }
 0x240   : > { %v2417_v13 = vpop.f32.mrb[1].mxu0  ;;  %v2465_v15 = vpop.f32.mrb[1].mxu1 }
 0x241   : > { %v2418_v16 = vadd.f32 %v2417_v13, %v2416_v8  ;;  %v2466_v17 = vadd.f32 %v2465_v15, %v2464_v9  ;;  %v2419_v18 = vpop.f32.mrb[2].mxu0  ;;  %v2467_v12 = vpop.f32.mrb[2].mxu1  ;;  %v962_v8 = vld [vmem:[#allocation2 + $0xb0] sm:$0xff] }
 0x242   : > { %v2420_v20 = vpop.f32.mrb[3].mxu0  ;;  %v2468_v22 = vpop.f32.mrb[3].mxu1 }
 0x243   : > { %v1133_v23 = vadd.f32 %v2418_v16, %v940_v10  ;;  %v1149_v11 = vadd.f32 %v2466_v17, %v956_v14  ;;  %v2421_v24 = vadd.f32 %v2420_v20, %v2419_v18  ;;  %v2469_v25 = vadd.f32 %v2468_v22, %v2467_v12  ;;  %v947_v16 = vld [vmem:[#allocation2 + $0x38] sm:$0xff] }
 0x244   : > { %v963_v18 = vld [vmem:[#allocation2 + $0xb8] sm:$0xff] }
 0x245   : > { %1166 = vst.msk [vmem:[#allocation2] sm:$0xff] %vm423_vm0, %v1133_v23  ;;  %1182 = vst.msk [vmem:[#allocation2 + $0x80] sm:$0xff] %vm423_vm0, %v1149_v11  ;;  %v1134_v26 = vadd.f32 %v2421_v24, %v941_v19  ;;  %v1150_v28 = vadd.f32 %v2469_v25, %v957_v21 }
 0x247   : > { %1167 = vst.msk [vmem:[#allocation2 + $0x8] sm:$0xff] %vm423_vm0, %v1134_v26  ;;  %1183 = vst.msk [vmem:[#allocation2 + $0x88] sm:$0xff] %vm423_vm0, %v1150_v28  ;;  %v2422_v31 = vpop.f32.mrb[4].mxu0  ;;  %v2470_v32 = vpop.f32.mrb[4].mxu1  ;;  %v948_v26 = vld [vmem:[#allocation2 + $0x40] sm:$0xff] }
 0x248   : > { %v2423_v35 = vpop.f32.mrb[5].mxu0  ;;  %v2471_v37 = vpop.f32.mrb[5].mxu1 }
 0x249   : > { %v2424_v38 = vadd.f32 %v2423_v35, %v2422_v31  ;;  %v2472_v39 = vadd.f32 %v2471_v37, %v2470_v32  ;;  %v2425_v40 = vpop.f32.mrb[6].mxu0  ;;  %v2473_v41 = vpop.f32.mrb[6].mxu1  ;;  %v964_v31 = vld [vmem:[#allocation2 + $0xc0] sm:$0xff] }
 0x24a   : > { %v2426_v43 = vpop.f32.mrb[7].mxu0  ;;  %v2474_v46 = vpop.f32.mrb[7].mxu1 }
 0x24b   : > { %v1135_v49 = vadd.f32 %v2424_v38, %v942_v33  ;;  %v1151_v62 = vadd.f32 %v2472_v39, %v958_v36  ;;  %v2427_v27 = vadd.f32 %v2426_v43, %v2425_v40  ;;  %v2475_v50 = vadd.f32 %v2474_v46, %v2473_v41  ;;  %v949_v38 = vld [vmem:[#allocation2 + $0x48] sm:$0xff] }
 0x24c   : > { %v965_v40 = vld [vmem:[#allocation2 + $0xc8] sm:$0xff] }
 0x24d   : > { %1168 = vst.msk [vmem:[#allocation2 + $0x10] sm:$0xff] %vm423_vm0, %v1135_v49  ;;  %1184 = vst.msk [vmem:[#allocation2 + $0x90] sm:$0xff] %vm423_vm0, %v1151_v62  ;;  %v1136_v2 = vadd.f32 %v2427_v27, %v943_v42  ;;  %v1152_v45 = vadd.f32 %v2475_v50, %v959_v44 }
 0x24f   : > { %1169 = vst.msk [vmem:[#allocation2 + $0x18] sm:$0xff] %vm423_vm0, %v1136_v2  ;;  %1185 = vst.msk [vmem:[#allocation2 + $0x98] sm:$0xff] %vm423_vm0, %v1152_v45  ;;  %v2428_v52 = vpop.f32.mrb[8].mxu0  ;;  %v2476_v53 = vpop.f32.mrb[8].mxu1  ;;  %v950_v2 = vld [vmem:[#allocation2 + $0x50] sm:$0xff] }
 0x250   : > { %v2429_v56 = vpop.f32.mrb[9].mxu0  ;;  %v2477_v7 = vpop.f32.mrb[9].mxu1 }
 0x251   : > { %v2430_v34 = vadd.f32 %v2429_v56, %v2428_v52  ;;  %v2478_v58 = vadd.f32 %v2477_v7, %v2476_v53  ;;  %v2431_v57 = vpop.f32.mrb[10].mxu0  ;;  %v2479_v60 = vpop.f32.mrb[10].mxu1  ;;  %v966_v52 = vld [vmem:[#allocation2 + $0xd0] sm:$0xff] }
 0x252   : > { %v2432_v54 = vpop.f32.mrb[11].mxu0  ;;  %v2480_v47 = vpop.f32.mrb[11].mxu1 }
 0x253   : > { %v1137_v59 = vadd.f32 %v2430_v34, %v944_v51  ;;  %v1153_v61 = vadd.f32 %v2478_v58, %v960_v55  ;;  %v2433_v30 = vadd.f32 %v2432_v54, %v2431_v57  ;;  %v2481_v63 = vadd.f32 %v2480_v47, %v2479_v60  ;;  %v951_v34 = vld [vmem:[#allocation2 + $0x58] sm:$0xff] }
 0x254   : > { %v967_v57 = vld [vmem:[#allocation2 + $0xd8] sm:$0xff] }
 0x255   : > { %1170 = vst.msk [vmem:[#allocation2 + $0x20] sm:$0xff] %vm423_vm0, %v1137_v59  ;;  %1186 = vst.msk [vmem:[#allocation2 + $0xa0] sm:$0xff] %vm423_vm0, %v1153_v61  ;;  %v1138_v0 = vadd.f32 %v2433_v30, %v945_v48  ;;  %v1154_v1 = vadd.f32 %v2481_v63, %v961_v29 }
 0x257   : > { %1171 = vst.msk [vmem:[#allocation2 + $0x28] sm:$0xff] %vm423_vm0, %v1138_v0  ;;  %1187 = vst.msk [vmem:[#allocation2 + $0xa8] sm:$0xff] %vm423_vm0, %v1154_v1  ;;  %v2434_v3 = vpop.f32.mrb[12].mxu0  ;;  %v2482_v4 = vpop.f32.mrb[12].mxu1  ;;  %v952_v0 = vld [vmem:[#allocation2 + $0x60] sm:$0xff] }
 0x258   : > { %v2435_v6 = vpop.f32.mrb[13].mxu0  ;;  %v2483_v9 = vpop.f32.mrb[13].mxu1 }
 0x259   : > { %v2436_v10 = vadd.f32 %v2435_v6, %v2434_v3  ;;  %v2484_v13 = vadd.f32 %v2483_v9, %v2482_v4  ;;  %v2437_v14 = vpop.f32.mrb[14].mxu0  ;;  %v2485_v15 = vpop.f32.mrb[14].mxu1  ;;  %v968_v3 = vld [vmem:[#allocation2 + $0xe0] sm:$0xff] }
 0x25a   : > { %v2438_v17 = vpop.f32.mrb[15].mxu0  ;;  %v2486_v12 = vpop.f32.mrb[15].mxu1 }
 0x25b   : > { %v1139_v19 = vadd.f32 %v2436_v10, %v946_v5  ;;  %v1155_v20 = vadd.f32 %v2484_v13, %v962_v8  ;;  %v2439_v21 = vadd.f32 %v2438_v17, %v2437_v14  ;;  %v2487_v22 = vadd.f32 %v2486_v12, %v2485_v15  ;;  %v953_v10 = vld [vmem:[#allocation2 + $0x68] sm:$0xff] }
 0x25c   : > { %v969_v14 = vld [vmem:[#allocation2 + $0xe8] sm:$0xff] }
 0x25d   : > { %1172 = vst.msk [vmem:[#allocation2 + $0x30] sm:$0xff] %vm423_vm0, %v1139_v19  ;;  %1188 = vst.msk [vmem:[#allocation2 + $0xb0] sm:$0xff] %vm423_vm0, %v1155_v20  ;;  %v1140_v23 = vadd.f32 %v2439_v21, %v947_v16  ;;  %v1156_v11 = vadd.f32 %v2487_v22, %v963_v18 }
 0x25f   : > { %1173 = vst.msk [vmem:[#allocation2 + $0x38] sm:$0xff] %vm423_vm0, %v1140_v23  ;;  %1189 = vst.msk [vmem:[#allocation2 + $0xb8] sm:$0xff] %vm423_vm0, %v1156_v11  ;;  %v2440_v24 = vpop.f32.mrb[16].mxu0  ;;  %v2488_v25 = vpop.f32.mrb[16].mxu1  ;;  %v954_v23 = vld [vmem:[#allocation2 + $0x70] sm:$0xff] }
 0x260   : > { %v2441_v28 = vpop.f32.mrb[17].mxu0  ;;  %v2489_v32 = vpop.f32.mrb[17].mxu1 }
 0x261   : > { %v2442_v33 = vadd.f32 %v2441_v28, %v2440_v24  ;;  %v2490_v35 = vadd.f32 %v2489_v32, %v2488_v25  ;;  %v2443_v36 = vpop.f32.mrb[18].mxu0  ;;  %v2491_v37 = vpop.f32.mrb[18].mxu1  ;;  %v970_v24 = vld [vmem:[#allocation2 + $0xf0] sm:$0xff] }
 0x262   : > { %v2444_v39 = vpop.f32.mrb[19].mxu0  ;;  %v2492_v41 = vpop.f32.mrb[19].mxu1 }
 0x263   : > { %v1141_v42 = vadd.f32 %v2442_v33, %v948_v26  ;;  %v1157_v43 = vadd.f32 %v2490_v35, %v964_v31  ;;  %v2445_v44 = vadd.f32 %v2444_v39, %v2443_v36  ;;  %v2493_v46 = vadd.f32 %v2492_v41, %v2491_v37  ;;  %v955_v33 = vld [vmem:[#allocation2 + $0x78] sm:$0xff] }
 0x264   : > { %v971_v36 = vld [vmem:[#allocation2 + $0xf8] sm:$0xff] }
 0x265   : > { %1174 = vst.msk [vmem:[#allocation2 + $0x40] sm:$0xff] %vm423_vm0, %v1141_v42  ;;  %1190 = vst.msk [vmem:[#allocation2 + $0xc0] sm:$0xff] %vm423_vm0, %v1157_v43  ;;  %v1142_v49 = vadd.f32 %v2445_v44, %v949_v38  ;;  %v1158_v62 = vadd.f32 %v2493_v46, %v965_v40 }
 0x267   : > { %1175 = vst.msk [vmem:[#allocation2 + $0x48] sm:$0xff] %vm423_vm0, %v1142_v49  ;;  %1191 = vst.msk [vmem:[#allocation2 + $0xc8] sm:$0xff] %vm423_vm0, %v1158_v62  ;;  %v2446_v27 = vpop.f32.mrb[20].mxu0  ;;  %v2494_v50 = vpop.f32.mrb[20].mxu1 }
 0x268   : > { %v2447_v45 = vpop.f32.mrb[21].mxu0  ;;  %v2495_v53 = vpop.f32.mrb[21].mxu1 }
 0x269   : > { %v2448_v51 = vadd.f32 %v2447_v45, %v2446_v27  ;;  %v2496_v56 = vadd.f32 %v2495_v53, %v2494_v50  ;;  %v2449_v55 = vpop.f32.mrb[22].mxu0  ;;  %v2497_v7 = vpop.f32.mrb[22].mxu1 }
 0x26a   : > { %v2450_v58 = vpop.f32.mrb[23].mxu0  ;;  %v2498_v60 = vpop.f32.mrb[23].mxu1 }
 0x26b   : > { %v1143_v48 = vadd.f32 %v2448_v51, %v950_v2  ;;  %v1159_v54 = vadd.f32 %v2496_v56, %v966_v52  ;;  %v2451_v29 = vadd.f32 %v2450_v58, %v2449_v55  ;;  %v2499_v47 = vadd.f32 %v2498_v60, %v2497_v7 }
 0x26d   : > { %1176 = vst.msk [vmem:[#allocation2 + $0x50] sm:$0xff] %vm423_vm0, %v1143_v48  ;;  %1192 = vst.msk [vmem:[#allocation2 + $0xd0] sm:$0xff] %vm423_vm0, %v1159_v54  ;;  %v1144_v59 = vadd.f32 %v2451_v29, %v951_v34  ;;  %v1160_v61 = vadd.f32 %v2499_v47, %v967_v57 }
 0x26f   : > { %1177 = vst.msk [vmem:[#allocation2 + $0x58] sm:$0xff] %vm423_vm0, %v1144_v59  ;;  %1193 = vst.msk [vmem:[#allocation2 + $0xd8] sm:$0xff] %vm423_vm0, %v1160_v61  ;;  %v2452_v30 = vpop.f32.mrb[24].mxu0  ;;  %v2500_v63 = vpop.f32.mrb[24].mxu1 }
 0x270   : > { %v2453_v1 = vpop.f32.mrb[25].mxu0  ;;  %v2501_v4 = vpop.f32.mrb[25].mxu1 }
 0x271   : > { %v2454_v5 = vadd.f32 %v2453_v1, %v2452_v30  ;;  %v2502_v6 = vadd.f32 %v2501_v4, %v2500_v63  ;;  %v2455_v8 = vpop.f32.mrb[26].mxu0  ;;  %v2503_v9 = vpop.f32.mrb[26].mxu1 }
 0x272   : > { %v2456_v13 = vpop.f32.mrb[27].mxu0  ;;  %v2504_v15 = vpop.f32.mrb[27].mxu1 }
 0x273   : > { %v1145_v16 = vadd.f32 %v2454_v5, %v952_v0  ;;  %v1161_v17 = vadd.f32 %v2502_v6, %v968_v3  ;;  %v2457_v18 = vadd.f32 %v2456_v13, %v2455_v8  ;;  %v2505_v12 = vadd.f32 %v2504_v15, %v2503_v9 }
 0x275   : > { %1178 = vst.msk [vmem:[#allocation2 + $0x60] sm:$0xff] %vm423_vm0, %v1145_v16  ;;  %1194 = vst.msk [vmem:[#allocation2 + $0xe0] sm:$0xff] %vm423_vm0, %v1161_v17  ;;  %v1146_v19 = vadd.f32 %v2457_v18, %v953_v10  ;;  %v1162_v20 = vadd.f32 %v2505_v12, %v969_v14 }
 0x277   : > { %1179 = vst.msk [vmem:[#allocation2 + $0x68] sm:$0xff] %vm423_vm0, %v1146_v19  ;;  %1195 = vst.msk [vmem:[#allocation2 + $0xe8] sm:$0xff] %vm423_vm0, %v1162_v20  ;;  %v2458_v21 = vpop.f32.mrb[28].mxu0  ;;  %v2506_v22 = vpop.f32.mrb[28].mxu1 }
 0x278   : > { %v2459_v11 = vpop.f32.mrb[29].mxu0  ;;  %v2507_v25 = vpop.f32.mrb[29].mxu1 }
 0x279   : > { %v2460_v26 = vadd.f32 %v2459_v11, %v2458_v21  ;;  %v2508_v28 = vadd.f32 %v2507_v25, %v2506_v22  ;;  %v2461_v31 = vpop.f32.mrb[30].mxu0  ;;  %v2509_v32 = vpop.f32.mrb[30].mxu1 }
 0x27a   : > { %v2462_v35 = vpop.f32.mrb[31].mxu0  ;;  %v2510_v37 = vpop.f32.mrb[31].mxu1 }
 0x27b   : > { %v1147_v38 = vadd.f32 %v2460_v26, %v954_v23  ;;  %v1163_v39 = vadd.f32 %v2508_v28, %v970_v24  ;;  %v2463_v40 = vadd.f32 %v2462_v35, %v2461_v31  ;;  %v2511_v41 = vadd.f32 %v2510_v37, %v2509_v32 }
 0x27d   : > { %1180 = vst.msk [vmem:[#allocation2 + $0x70] sm:$0xff] %vm423_vm0, %v1147_v38  ;;  %1196 = vst.msk [vmem:[#allocation2 + $0xf0] sm:$0xff] %vm423_vm0, %v1163_v39  ;;  %v1148_v42 = vadd.f32 %v2463_v40, %v955_v33  ;;  %v1164_v43 = vadd.f32 %v2511_v41, %v971_v36 }
 0x27f   : > { %1181 = vst.msk [vmem:[#allocation2 + $0x78] sm:$0xff] %vm423_vm0, %v1148_v42  ;;  %1197 = vst.msk [vmem:[#allocation2 + $0xf8] sm:$0xff] %vm423_vm0, %v1164_v43 }
 0x280 PF: > { %v1249_v44 = vld [vmem:[%s3765_s1 + $0x80] sm:$0xff]  ;;  %v2673_v49 = vmov 0   ;;  %v1250_v62 = vld [vmem:[%s3765_s1 + $0x88] sm:$0xff]  ;;  %v1236_v50 = vld [vmem:[%s3765_s1 + $0x18] sm:$0xff]  ;;  %p2273_p10 = scmp.ne.s32.totalorder %s2662_s18, 0 }
 0x281   : > { %v1233_v46 = vld [vmem:[%s3765_s1] sm:$0xff]  ;;  %2645 = vset.pattern.permute.xlu1 %v2673_v49  ;;  %2644 = vset.pattern.permute.xlu0 %v2673_v49  ;;  %v1234_v27 = vld [vmem:[%s3765_s1 + $0x8] sm:$0xff]  ;;  %v1235_v2 = vld [vmem:[%s3765_s1 + $0x10] sm:$0xff] }
 0x282   : > { %1347 = vperm.xlu1 %2645, %v1249_v44   ;;  %1267 = vperm.xlu0 %2644, %v1233_v46   ;;  %v1252_v45 = vld [vmem:[%s3765_s1 + $0x98] sm:$0xff]  ;;  %v1251_v52 = vld [vmem:[%s3765_s1 + $0x90] sm:$0xff]  ;;  %v2646_v53 = vld [vmem:[%s2866_s17] sm:$0xff]  }
 0x283   : > { %v2647_v51 = vld [vmem:[%s2866_s17 + $0x8] sm:$0xff]   ;;  %v1237_v55 = vld [vmem:[%s3765_s1 + $0x20] sm:$0xff]  ;;  %2530 = vmatprep.subr.bf16.mxu0 %v2646_v53  ;;  %2598 = vmatprep.subr.bf16.mxu1 %v2646_v53  ;;  %v1240_v58 = vld [vmem:[%s3765_s1 + $0x38] sm:$0xff] }
 0x284   : > { %v1238_v56 = vld [vmem:[%s3765_s1 + $0x28] sm:$0xff]  ;;  %2531 = vmatpush3.bf16.msra.mxu0 %v2646_v53  ;;  %2600 = vmatpush3.bf16.msra.mxu1 %v2646_v53  ;;  %v1253_v34 = vld [vmem:[%s3765_s1 + $0xa0] sm:$0xff]  ;;  %v1239_v57 = vld [vmem:[%s3765_s1 + $0x30] sm:$0xff] }
 0x285   : > { %2532 = vmatprep.subr.bf16.mxu0 %v2647_v51  ;;  %2599 = vmatprep.subr.bf16.mxu1 %v2647_v51  ;;  %v1254_v7 = vld [vmem:[%s3765_s1 + $0xa8] sm:$0xff]  ;;  %v1256_v60 = vld [vmem:[%s3765_s1 + $0xb8] sm:$0xff]  ;;  %v1255_v48 = vld [vmem:[%s3765_s1 + $0xb0] sm:$0xff] }
 0x286   : > { %1352 = vperm.xlu1 %2645, %v1250_v62   ;;  %1272 = vperm.xlu0 %2644, %v1234_v27   ;;  %v1242_v54 = vld [vmem:[%s3765_s1 + $0x48] sm:$0xff]  ;;  %v1241_v29 = vld [vmem:[%s3765_s1 + $0x40] sm:$0xff]  ;;  %v1244_v61 = vld [vmem:[%s3765_s1 + $0x58] sm:$0xff] }
 0x287   : > { %v1258_v47 = vld [vmem:[%s3765_s1 + $0xc8] sm:$0xff]  ;;  %v1257_v59 = vld [vmem:[%s3765_s1 + $0xc0] sm:$0xff]  ;;  %v1243_v30 = vld [vmem:[%s3765_s1 + $0x50] sm:$0xff] }
 0x288   : > { %2533 = vmatpush3.bf16.msra.mxu0 %v2647_v51  ;;  %2601 = vmatpush3.bf16.msra.mxu1 %v2647_v51  ;;  %v1260_v63 = vld [vmem:[%s3765_s1 + $0xd8] sm:$0xff]  ;;  %v1259_v0 = vld [vmem:[%s3765_s1 + $0xd0] sm:$0xff]  ;;  %v1246_v1 = vld [vmem:[%s3765_s1 + $0x68] sm:$0xff] }
 0x289   : > { %v1245_v3 = vld [vmem:[%s3765_s1 + $0x60] sm:$0xff]  ;;  %v1262_v4 = vld [vmem:[%s3765_s1 + $0xe8] sm:$0xff]  ;;  %v1248_v6 = vld [vmem:[%s3765_s1 + $0x78] sm:$0xff] }
 0x28a   : > { %1282 = vperm.xlu1 %2645, %v1236_v50   ;;  %1277 = vperm.xlu0 %2644, %v1235_v2   ;;  %v1261_v5 = vld [vmem:[%s3765_s1 + $0xe0] sm:$0xff]  ;;  %v1247_v8 = vld [vmem:[%s3765_s1 + $0x70] sm:$0xff]  ;;  %v1264_v9 = vld [vmem:[%s3765_s1 + $0xf8] sm:$0xff] }
 0x28b   : > { %v1263_v10 = vld [vmem:[%s3765_s1 + $0xf0] sm:$0xff]  ;;  %v1217_v15 = vld [vmem:[#allocation2 + $0x80] sm:$0xff]  ;;  %v1218_v17 = vld [vmem:[#allocation2 + $0x88] sm:$0xff] }
 0x28c   : > { %v1201_v16 = vld [vmem:[#allocation2] sm:$0xff]  ;;  %v1202_v18 = vld [vmem:[#allocation2 + $0x8] sm:$0xff]  ;;  %v1204_v11 = vld [vmem:[#allocation2 + $0x18] sm:$0xff] }
 0x28d   : > { %v1203_v24 = vld [vmem:[#allocation2 + $0x10] sm:$0xff]  ;;  %v1220_v35 = vld [vmem:[#allocation2 + $0x98] sm:$0xff]  ;;  %v1206_v42 = vld [vmem:[#allocation2 + $0x28] sm:$0xff] }
 0x28e   : > { %1362 = vperm.xlu1 %2645, %v1252_v45   ;;  %1357 = vperm.xlu0 %2644, %v1251_v52   ;;  %v1219_v36 = vld [vmem:[#allocation2 + $0x90] sm:$0xff]  ;;  %v1205_v43 = vld [vmem:[#allocation2 + $0x20] sm:$0xff]  ;;  %v1222_v50 = vld [vmem:[#allocation2 + $0xa8] sm:$0xff] }
 0x28f   : > { %v1221_v2 = vld [vmem:[#allocation2 + $0xa0] sm:$0xff] }
 0x292   : > { %1292 = vperm.xlu1 %2645, %v1238_v56   ;;  %1287 = vperm.xlu0 %2644, %v1237_v55   ;;  %v1208_v55 = vld [vmem:[#allocation2 + $0x38] sm:$0xff] }
 0x296   : > { %1372 = vperm.xlu1 %2645, %v1254_v7   ;;  %1367 = vperm.xlu0 %2644, %v1253_v34   ;;  %v1207_v7 = vld [vmem:[#allocation2 + $0x30] sm:$0xff] }
 0x29a   : > { %1302 = vperm.xlu1 %2645, %v1240_v58   ;;  %1297 = vperm.xlu0 %2644, %v1239_v57  }
 0x29e   : > { %1382 = vperm.xlu1 %2645, %v1256_v60   ;;  %1377 = vperm.xlu0 %2644, %v1255_v48  }
 0x2a2   : > { %1312 = vperm.xlu1 %2645, %v1242_v54   ;;  %1307 = vperm.xlu0 %2644, %v1241_v29   ;;  %v1224_v54 = vld [vmem:[#allocation2 + $0xb8] sm:$0xff]  ;;  %v1223_v29 = vld [vmem:[#allocation2 + $0xb0] sm:$0xff] }
 0x2a6   : > { %1392 = vperm.xlu1 %2645, %v1258_v47   ;;  %1387 = vperm.xlu0 %2644, %v1257_v59  }
 0x2aa   : > { %1322 = vperm.xlu1 %2645, %v1244_v61   ;;  %1317 = vperm.xlu0 %2644, %v1243_v30  }
 0x2ae   : > { %1402 = vperm.xlu1 %2645, %v1260_v63   ;;  %1397 = vperm.xlu0 %2644, %v1259_v0   ;;  %v1210_v0 = vld [vmem:[#allocation2 + $0x48] sm:$0xff] }
 0x2b2   : > { %1332 = vperm.xlu1 %2645, %v1246_v1   ;;  %1327 = vperm.xlu0 %2644, %v1245_v3   ;;  %v1209_v1 = vld [vmem:[#allocation2 + $0x40] sm:$0xff] }
 0x2b6   : > { %1412 = vperm.xlu1 %2645, %v1262_v4   ;;  %1407 = vperm.xlu0 %2644, %v1261_v5  }
 0x2ba   : > { %1342 = vperm.xlu1 %2645, %v1248_v6   ;;  %1337 = vperm.xlu0 %2644, %v1247_v8  }
 0x2be   : > { %1422 = vperm.xlu1 %2645, %v1264_v9   ;;  %1417 = vperm.xlu0 %2644, %v1263_v10   ;;  %v1226_v9 = vld [vmem:[#allocation2 + $0xc8] sm:$0xff]  ;;  %v1225_v10 = vld [vmem:[#allocation2 + $0xc0] sm:$0xff] }
 0x301   : > { %v1348_v13 = vpop.permute.xlu1 %1347  ;;  %v1268_v14 = vpop.permute.xlu0 %1267 }
 0x302   : > { %v1441_v20 = vmul.f32 %v1348_v13, %v1217_v15  ;;  %v1425_v21 = vmul.f32 %v1268_v14, %v1201_v16 }
 0x305   : > { %v1353_v12 = vpop.permute.xlu1 %1352  ;;  %v1273_v19 = vpop.permute.xlu0 %1272 }
 0x306   : > { %v1442_v22 = vmul.f32 %v1353_v12, %v1218_v17  ;;  %v1426_v23 = vmul.f32 %v1273_v19, %v1202_v18  ;;  %v1212_v18 = vld [vmem:[#allocation2 + $0x58] sm:$0xff]  ;;  %v1211_v12 = vld [vmem:[#allocation2 + $0x50] sm:$0xff] }
 0x308   : > { %v1457_v25 = vpack.c.bf16 %v1426_v23, %v1425_v21  ;;  %v1465_v26 = vpack.c.bf16 %v1442_v22, %v1441_v20 }
 0x309   : > { %v1283_v28 = vpop.permute.xlu1 %1282  ;;  %v1278_v31 = vpop.permute.xlu0 %1277 }
 0x30a   : > { %v1428_v32 = vmul.f32 %v1283_v28, %v1204_v11  ;;  %v1427_v33 = vmul.f32 %v1278_v31, %v1203_v24  ;;  %2534 = vmatprep.mubr.msk.bf16.mxu0 %vm423_vm0, %v1457_v25  ;;  %2550 = vmatprep.mubr.msk.bf16.mxu1 %vm423_vm0, %v1465_v26  ;;  %v1228_v11 = vld [vmem:[#allocation2 + $0xd8] sm:$0xff]  ;;  %v1227_v24 = vld [vmem:[#allocation2 + $0xd0] sm:$0xff] }
 0x30c   : > { %v1458_v37 = vpack.c.bf16 %v1428_v32, %v1427_v33  ;;  %v1214_v33 = vld [vmem:[#allocation2 + $0x68] sm:$0xff] }
 0x30d   : > { %v1363_v38 = vpop.permute.xlu1 %1362  ;;  %v1358_v39 = vpop.permute.xlu0 %1357 }
 0x30e   : > { %v1444_v40 = vmul.f32 %v1363_v38, %v1220_v35  ;;  %v1443_v41 = vmul.f32 %v1358_v39, %v1219_v36  ;;  %2535 = vmatmul.mubr.msk.bf16.vlgmr.msra.gmra.mrb[0].mxu0 %vm423_vm0, %v1458_v37  ;;  %v1213_v35 = vld [vmem:[#allocation2 + $0x60] sm:$0xff] }
 0x310   : > { %v1466_v44 = vpack.c.bf16 %v1444_v40, %v1443_v41  ;;  %v1230_v41 = vld [vmem:[#allocation2 + $0xe8] sm:$0xff] }
 0x311   : > { %v1293_v46 = vpop.permute.xlu1 %1292  ;;  %v1288_v49 = vpop.permute.xlu0 %1287 }
 0x312   : > { %v1430_v62 = vmul.f32 %v1293_v46, %v1206_v42  ;;  %v1429_v27 = vmul.f32 %v1288_v49, %v1205_v43  ;;  %2551 = vmatmul.mubr.msk.bf16.vlgmr.msra.gmra.mrb[0].mxu1 %vm423_vm0, %v1466_v44  ;;  %v1229_v42 = vld [vmem:[#allocation2 + $0xe0] sm:$0xff] }
 0x314   : > { %v1459_v45 = vpack.c.bf16 %v1430_v62, %v1429_v27  ;;  %v1216_v27 = vld [vmem:[#allocation2 + $0x78] sm:$0xff] }
 0x315   : > { %v1373_v52 = vpop.permute.xlu1 %1372  ;;  %v1368_v53 = vpop.permute.xlu0 %1367 }
 0x316   : > { %v1446_v51 = vmul.f32 %v1373_v52, %v1222_v50  ;;  %v1445_v56 = vmul.f32 %v1368_v53, %v1221_v2  ;;  %2538 = vmatprep.mubr.msk.bf16.mxu0 %vm423_vm0, %v1459_v45  ;;  %v1215_v50 = vld [vmem:[#allocation2 + $0x70] sm:$0xff] }
 0x318   : > { %v1467_v34 = vpack.c.bf16 %v1446_v51, %v1445_v56  ;;  %v1232_v56 = vld [vmem:[#allocation2 + $0xf8] sm:$0xff] }
 0x319   : > { %v1303_v58 = vpop.permute.xlu1 %1302  ;;  %v1298_v57 = vpop.permute.xlu0 %1297 }
 0x31a   : > { %v1432_v60 = vmul.f32 %v1303_v58, %v1208_v55  ;;  %v1431_v48 = vmul.f32 %v1298_v57, %v1207_v7  ;;  %2554 = vmatprep.mubr.msk.bf16.mxu1 %vm423_vm0, %v1467_v34  ;;  %v1231_v55 = vld [vmem:[#allocation2 + $0xf0] sm:$0xff] }
 0x31c   : > { %v1460_v47 = vpack.c.bf16 %v1432_v60, %v1431_v48 }
 0x31d   : > { %v1383_v59 = vpop.permute.xlu1 %1382  ;;  %v1378_v61 = vpop.permute.xlu0 %1377 }
 0x31e   : > { %v1448_v30 = vmul.f32 %v1383_v59, %v1224_v54  ;;  %v1447_v63 = vmul.f32 %v1378_v61, %v1223_v29  ;;  %2539 = vmatmul.mubr.msk.bf16.gmra.mrb[4].mxu0 %vm423_vm0, %v1460_v47  ;;  %v3306_v54 = vld [vmem:[%s378_s30] ss:$0 sm:$0xff] }
 0x320   : > { %v1468_v3 = vpack.c.bf16 %v1448_v30, %v1447_v63 }
 0x321   : > { %v1313_v4 = vpop.permute.xlu1 %1312  ;;  %v1308_v5 = vpop.permute.xlu0 %1307 }
 0x322   : > { %v1434_v6 = vmul.f32 %v1313_v4, %v1210_v0  ;;  %v1433_v8 = vmul.f32 %v1308_v5, %v1209_v1  ;;  %2555 = vmatmul.mubr.msk.bf16.gmra.mrb[4].mxu1 %vm423_vm0, %v1468_v3 }
 0x324   : > { %v1461_v13 = vpack.c.bf16 %v1434_v6, %v1433_v8 }
 0x325   : > { %v1393_v14 = vpop.permute.xlu1 %1392  ;;  %v1388_v15 = vpop.permute.xlu0 %1387 }
 0x326   : > { %v1450_v16 = vmul.f32 %v1393_v14, %v1226_v9  ;;  %v1449_v17 = vmul.f32 %v1388_v15, %v1225_v10  ;;  %2542 = vmatprep.mubr.msk.bf16.mxu0 %vm423_vm0, %v1461_v13 }
 0x328   : > { %v1469_v19 = vpack.c.bf16 %v1450_v16, %v1449_v17 }
 0x329   : > { %v1323_v20 = vpop.permute.xlu1 %1322  ;;  %v1318_v21 = vpop.permute.xlu0 %1317 }
 0x32a   : > { %v1436_v22 = vmul.f32 %v1323_v20, %v1212_v18  ;;  %v1435_v23 = vmul.f32 %v1318_v21, %v1211_v12  ;;  %2558 = vmatprep.mubr.msk.bf16.mxu1 %vm423_vm0, %v1469_v19 }
 0x32c   : > { %v1462_v25 = vpack.c.bf16 %v1436_v22, %v1435_v23 }
 0x32d   : > { %v1403_v26 = vpop.permute.xlu1 %1402  ;;  %v1398_v28 = vpop.permute.xlu0 %1397 }
 0x32e   : > { %v1452_v31 = vmul.f32 %v1403_v26, %v1228_v11  ;;  %v1451_v32 = vmul.f32 %v1398_v28, %v1227_v24  ;;  %2543 = vmatmul.mubr.msk.bf16.gmra.mrb[8].mxu0 %vm423_vm0, %v1462_v25 }
 0x330   : > { %v1470_v36 = vpack.c.bf16 %v1452_v31, %v1451_v32 }
 0x331   : > { %v1333_v37 = vpop.permute.xlu1 %1332  ;;  %v1328_v38 = vpop.permute.xlu0 %1327 }
 0x332   : > { %v1438_v39 = vmul.f32 %v1333_v37, %v1214_v33  ;;  %v1437_v40 = vmul.f32 %v1328_v38, %v1213_v35  ;;  %2559 = vmatmul.mubr.msk.bf16.gmra.mrb[8].mxu1 %vm423_vm0, %v1470_v36 }
 0x334   : > { %v1463_v43 = vpack.c.bf16 %v1438_v39, %v1437_v40 }
 0x335   : > { %v1413_v44 = vpop.permute.xlu1 %1412  ;;  %v1408_v46 = vpop.permute.xlu0 %1407 }
 0x336   : > { %v1454_v49 = vmul.f32 %v1413_v44, %v1230_v41  ;;  %v1453_v62 = vmul.f32 %v1408_v46, %v1229_v42  ;;  %2546 = vmatprep.mubr.msk.bf16.mxu0 %vm423_vm0, %v1463_v43 }
 0x338   : > { %v1471_v2 = vpack.c.bf16 %v1454_v49, %v1453_v62 }
 0x339   : > { %v1343_v45 = vpop.permute.xlu1 %1342  ;;  %v1338_v52 = vpop.permute.xlu0 %1337 }
 0x33a   : > { %v1440_v53 = vmul.f32 %v1343_v45, %v1216_v27  ;;  %v1439_v51 = vmul.f32 %v1338_v52, %v1215_v50  ;;  %2562 = vmatprep.mubr.msk.bf16.mxu1 %vm423_vm0, %v1471_v2 }
 0x33c   : > { %v1464_v7 = vpack.c.bf16 %v1440_v53, %v1439_v51 }
 0x33d   : > { %v1423_v34 = vpop.permute.xlu1 %1422  ;;  %v1418_v58 = vpop.permute.xlu0 %1417 }
 0x33e   : > { %v1456_v57 = vmul.f32 %v1423_v34, %v1232_v56  ;;  %v1455_v60 = vmul.f32 %v1418_v58, %v1231_v55  ;;  %2547 = vmatmul.mubr.msk.bf16.gmra.mrb[12].mxu0 %vm423_vm0, %v1464_v7 }
 0x340   : > { %v1472_v48 = vpack.c.bf16 %v1456_v57, %v1455_v60 }
 0x342   : > { %2563 = vmatmul.mubr.msk.bf16.gmra.mrb[12].mxu1 %vm423_vm0, %v1472_v48 }
 0x3e1   : > { %v2536_v29 = vpop.f32.mrb[0].mxu0 }
 0x3e2   : > { %v1588_v47 = vadd.f32 %v2536_v29, %v3306_v54  ;;  %v1579_v59 = vpop.f32.mrb[1].mxu0 }
 0x3e3   : > { %v1580_v61 = vadd.f32 %v3306_v54, %v1579_v59  ;;  %v2537_v30 = vpop.f32.mrb[2].mxu0 }
 0x3e4   : > { %v3310_v63 = vmax.f32 %v1588_v47, 0.0  ;;  %v1591_v0 = vadd.f32 %v2537_v30, %v3306_v54  ;;  %v1582_v1 = vpop.f32.mrb[3].mxu0 }
 0x3e5   : > { %v3313_v3 = vmax.f32 %v1580_v61, 0.0  ;;  %v1583_v4 = vadd.f32 %v3306_v54, %v1582_v1  ;;  %v2552_v5 = vpop.f32.mrb[0].mxu1 }
 0x3e6   : > { %v3316_v6 = vmax.f32 %v1591_v0, 0.0  ;;  %v1652_v8 = vadd.f32 %v2552_v5, %v3306_v54  ;;  %v1643_v9 = vpop.f32.mrb[1].mxu1  ;;  %1744 = vst.msk [vmem:[#allocation4 + $0x10] sm:$0xff] (!%p2273_p10), %vm423_vm0, %v3310_v63 }
 0x3e7   : > { %v3319_v10 = vmax.f32 %v1583_v4, 0.0  ;;  %v1644_v13 = vadd.f32 %v3306_v54, %v1643_v9  ;;  %v2553_v14 = vpop.f32.mrb[2].mxu1  ;;  %1742 = vst.msk [vmem:[#allocation4] sm:$0xff] (!%p2273_p10), %vm423_vm0, %v3313_v3 }
 0x3e8   : > { %v3322_v15 = vmax.f32 %v1652_v8, 0.0  ;;  %v1655_v16 = vadd.f32 %v2553_v14, %v3306_v54  ;;  %v1646_v17 = vpop.f32.mrb[3].mxu1  ;;  %1745 = vst.msk [vmem:[#allocation4 + $0x18] sm:$0xff] (!%p2273_p10), %vm423_vm0, %v3316_v6 }
 0x3e9   : > { %v3325_v18 = vmax.f32 %v1644_v13, 0.0  ;;  %v1647_v12 = vadd.f32 %v3306_v54, %v1646_v17  ;;  %1743 = vst.msk [vmem:[#allocation4 + $0x8] sm:$0xff] (!%p2273_p10), %vm423_vm0, %v3319_v10 }
 0x3ea   : > { %v3328_v19 = vmax.f32 %v1655_v16, 0.0  ;;  %1760 = vst.msk [vmem:[#allocation4 + $0x90] sm:$0xff] (!%p2273_p10), %vm423_vm0, %v3322_v15 }
 0x3eb   : > { %v3330_v20 = vmax.f32 %v1647_v12, 0.0  ;;  %1758 = vst.msk [vmem:[#allocation4 + $0x80] sm:$0xff] (!%p2273_p10), %vm423_vm0, %v3325_v18 }
 0x3ec   : > { %1761 = vst.msk [vmem:[#allocation4 + $0x98] sm:$0xff] (!%p2273_p10), %vm423_vm0, %v3328_v19 }
 0x3ed   : > { %1759 = vst.msk [vmem:[#allocation4 + $0x88] sm:$0xff] (!%p2273_p10), %vm423_vm0, %v3330_v20 }
 0x3f1   : > { %v2540_v21 = vpop.f32.mrb[4].mxu0 }
 0x3f2   : > { %v1604_v22 = vadd.f32 %v2540_v21, %v3306_v54  ;;  %v1595_v23 = vpop.f32.mrb[5].mxu0 }
 0x3f3   : > { %v1596_v11 = vadd.f32 %v3306_v54, %v1595_v23  ;;  %v2541_v24 = vpop.f32.mrb[6].mxu0 }
 0x3f4   : > { %v3334_v25 = vmax.f32 %v1604_v22, 0.0  ;;  %v1607_v26 = vadd.f32 %v2541_v24, %v3306_v54  ;;  %v1598_v28 = vpop.f32.mrb[7].mxu0 }
 0x3f5   : > { %v3337_v31 = vmax.f32 %v1596_v11, 0.0  ;;  %v1599_v32 = vadd.f32 %v3306_v54, %v1598_v28  ;;  %v2556_v33 = vpop.f32.mrb[4].mxu1 }
 0x3f6   : > { %v3340_v35 = vmax.f32 %v1607_v26, 0.0  ;;  %v1668_v36 = vadd.f32 %v2556_v33, %v3306_v54  ;;  %v1659_v37 = vpop.f32.mrb[5].mxu1  ;;  %1748 = vst.msk [vmem:[#allocation4 + $0x30] sm:$0xff] (!%p2273_p10), %vm423_vm0, %v3334_v25 }
 0x3f7   : > { %v3343_v38 = vmax.f32 %v1599_v32, 0.0  ;;  %v1660_v39 = vadd.f32 %v3306_v54, %v1659_v37  ;;  %v2557_v40 = vpop.f32.mrb[6].mxu1  ;;  %1746 = vst.msk [vmem:[#allocation4 + $0x20] sm:$0xff] (!%p2273_p10), %vm423_vm0, %v3337_v31 }
 0x3f8   : > { %v3346_v41 = vmax.f32 %v1668_v36, 0.0  ;;  %v1671_v42 = vadd.f32 %v2557_v40, %v3306_v54  ;;  %v1662_v43 = vpop.f32.mrb[7].mxu1  ;;  %1749 = vst.msk [vmem:[#allocation4 + $0x38] sm:$0xff] (!%p2273_p10), %vm423_vm0, %v3340_v35 }
 0x3f9   : > { %v3349_v44 = vmax.f32 %v1660_v39, 0.0  ;;  %v1663_v46 = vadd.f32 %v3306_v54, %v1662_v43  ;;  %1747 = vst.msk [vmem:[#allocation4 + $0x28] sm:$0xff] (!%p2273_p10), %vm423_vm0, %v3343_v38 }
 0x3fa   : > { %v3352_v49 = vmax.f32 %v1671_v42, 0.0  ;;  %1764 = vst.msk [vmem:[#allocation4 + $0xb0] sm:$0xff] (!%p2273_p10), %vm423_vm0, %v3346_v41 }
 0x3fb   : > { %v3354_v62 = vmax.f32 %v1663_v46, 0.0  ;;  %1762 = vst.msk [vmem:[#allocation4 + $0xa0] sm:$0xff] (!%p2273_p10), %vm423_vm0, %v3349_v44 }
 0x3fc   : > { %1765 = vst.msk [vmem:[#allocation4 + $0xb8] sm:$0xff] (!%p2273_p10), %vm423_vm0, %v3352_v49 }
 0x3fd   : > { %1763 = vst.msk [vmem:[#allocation4 + $0xa8] sm:$0xff] (!%p2273_p10), %vm423_vm0, %v3354_v62 }
 0x401   : > { %v2544_v27 = vpop.f32.mrb[8].mxu0 }
 0x402   : > { %v1620_v50 = vadd.f32 %v2544_v27, %v3306_v54  ;;  %v1611_v2 = vpop.f32.mrb[9].mxu0 }
 0x403   : > { %v1612_v45 = vadd.f32 %v3306_v54, %v1611_v2  ;;  %v2545_v52 = vpop.f32.mrb[10].mxu0 }
 0x404   : > { %v3358_v53 = vmax.f32 %v1620_v50, 0.0  ;;  %v1623_v51 = vadd.f32 %v2545_v52, %v3306_v54  ;;  %v1614_v56 = vpop.f32.mrb[11].mxu0 }
 0x405   : > { %v3361_v55 = vmax.f32 %v1612_v45, 0.0  ;;  %v1615_v7 = vadd.f32 %v3306_v54, %v1614_v56  ;;  %v2560_v34 = vpop.f32.mrb[8].mxu1 }
 0x406   : > { %v3364_v58 = vmax.f32 %v1623_v51, 0.0  ;;  %v1684_v57 = vadd.f32 %v2560_v34, %v3306_v54  ;;  %v1675_v60 = vpop.f32.mrb[9].mxu1  ;;  %1752 = vst.msk [vmem:[#allocation4 + $0x50] sm:$0xff] (!%p2273_p10), %vm423_vm0, %v3358_v53 }
 0x407   : > { %v3367_v48 = vmax.f32 %v1615_v7, 0.0  ;;  %v1676_v29 = vadd.f32 %v3306_v54, %v1675_v60  ;;  %v2561_v47 = vpop.f32.mrb[10].mxu1  ;;  %1750 = vst.msk [vmem:[#allocation4 + $0x40] sm:$0xff] (!%p2273_p10), %vm423_vm0, %v3361_v55 }
 0x408   : > { %v3370_v59 = vmax.f32 %v1684_v57, 0.0  ;;  %v1687_v61 = vadd.f32 %v2561_v47, %v3306_v54  ;;  %v1678_v30 = vpop.f32.mrb[11].mxu1  ;;  %1753 = vst.msk [vmem:[#allocation4 + $0x58] sm:$0xff] (!%p2273_p10), %vm423_vm0, %v3364_v58 }
 0x409   : > { %v3373_v0 = vmax.f32 %v1676_v29, 0.0  ;;  %v1679_v1 = vadd.f32 %v3306_v54, %v1678_v30  ;;  %1751 = vst.msk [vmem:[#allocation4 + $0x48] sm:$0xff] (!%p2273_p10), %vm423_vm0, %v3367_v48 }
 0x40a   : > { %v3376_v4 = vmax.f32 %v1687_v61, 0.0  ;;  %1768 = vst.msk [vmem:[#allocation4 + $0xd0] sm:$0xff] (!%p2273_p10), %vm423_vm0, %v3370_v59 }
 0x40b   : > { %v3378_v5 = vmax.f32 %v1679_v1, 0.0  ;;  %1766 = vst.msk [vmem:[#allocation4 + $0xc0] sm:$0xff] (!%p2273_p10), %vm423_vm0, %v3373_v0 }
 0x40c   : > { %1769 = vst.msk [vmem:[#allocation4 + $0xd8] sm:$0xff] (!%p2273_p10), %vm423_vm0, %v3376_v4 }
 0x40d   : > { %1767 = vst.msk [vmem:[#allocation4 + $0xc8] sm:$0xff] (!%p2273_p10), %vm423_vm0, %v3378_v5 }
 0x411   : > { %v2548_v8 = vpop.f32.mrb[12].mxu0 }
 0x412   : > { %v1636_v9 = vadd.f32 %v2548_v8, %v3306_v54  ;;  %v1627_v13 = vpop.f32.mrb[13].mxu0 }
 0x413   : > { %v1628_v14 = vadd.f32 %v3306_v54, %v1627_v13  ;;  %v2549_v16 = vpop.f32.mrb[14].mxu0 }
 0x414   : > { %v3382_v17 = vmax.f32 %v1636_v9, 0.0  ;;  %v1639_v12 = vadd.f32 %v2549_v16, %v3306_v54  ;;  %v1630_v21 = vpop.f32.mrb[15].mxu0 }
 0x415   : > { %v3385_v22 = vmax.f32 %v1628_v14, 0.0  ;;  %v1631_v23 = vadd.f32 %v3306_v54, %v1630_v21  ;;  %v2564_v11 = vpop.f32.mrb[12].mxu1  ;;  %1740 = sbr.rel (%p2273_p10) target bundleno = 1054 (0x41e), region = 60 }
 0x416   : > { %v3388_v24 = vmax.f32 %v1639_v12, 0.0  ;;  %v1700_v26 = vadd.f32 %v2564_v11, %v3306_v54  ;;  %v1691_v28 = vpop.f32.mrb[13].mxu1  ;;  %1756 = vst.msk [vmem:[#allocation4 + $0x70] sm:$0xff] (!%p2273_p10), %vm423_vm0, %v3382_v17 }
 0x417   : > { %v3391_v32 = vmax.f32 %v1631_v23, 0.0  ;;  %v1692_v33 = vadd.f32 %v3306_v54, %v1691_v28  ;;  %v2565_v36 = vpop.f32.mrb[14].mxu1  ;;  %1754 = vst.msk [vmem:[#allocation4 + $0x60] sm:$0xff] (!%p2273_p10), %vm423_vm0, %v3385_v22 }
 0x418   : > { %v3394_v37 = vmax.f32 %v1700_v26, 0.0  ;;  %v1703_v39 = vadd.f32 %v2565_v36, %v3306_v54  ;;  %v1694_v40 = vpop.f32.mrb[15].mxu1  ;;  %1757 = vst.msk [vmem:[#allocation4 + $0x78] sm:$0xff] (!%p2273_p10), %vm423_vm0, %v3388_v24 }
 0x419   : > { %v3397_v42 = vmax.f32 %v1692_v33, 0.0  ;;  %v1695_v43 = vadd.f32 %v3306_v54, %v1694_v40  ;;  %1755 = vst.msk [vmem:[#allocation4 + $0x68] sm:$0xff] (!%p2273_p10), %vm423_vm0, %v3391_v32 }
 0x41a   : > { %v3400_v46 = vmax.f32 %v1703_v39, 0.0  ;;  %1772 = vst.msk [vmem:[#allocation4 + $0xf0] sm:$0xff] (!%p2273_p10), %vm423_vm0, %v3394_v37 }
 0x41b   : > { %v3402_v27 = vmax.f32 %v1695_v43, 0.0  ;;  %1770 = vst.msk [vmem:[#allocation4 + $0xe0] sm:$0xff] (!%p2273_p10), %vm423_vm0, %v3397_v42 }
 0x41c   : > { %1773 = vst.msk [vmem:[#allocation4 + $0xf8] sm:$0xff] %vm423_vm0, %v3400_v46 }
 0x41d   : > { %1771 = vst.msk [vmem:[#allocation4 + $0xe8] sm:$0xff] %vm423_vm0, %v3402_v27 }
 0x41e PF: > { %p2274_p11 = scmp.le.s32.totalorder %s2662_s18, 0 }
 0x41f   : > { %v1779_v54 = vld [vmem:[#allocation4] sm:$0xff] (!%p2274_p11)  ;;  %v1780_v50 = vld [vmem:[#allocation4 + $0x8] sm:$0xff] (!%p2274_p11)  ;;  %v1781_v2 = vld [vmem:[#allocation4 + $0x10] sm:$0xff] (!%p2274_p11) }
 0x420   : > { %1777 = sbr.rel (%p2274_p11) target bundleno = 1074 (0x432), region = 64  ;;  %v1811_v45 = vadd.f32 (!%p2274_p11), %v1779_v54, %v3313_v3  ;;  %v1812_v52 = vadd.f32 (!%p2274_p11), %v1780_v50, %v3319_v10  ;;  %v1813_v51 = vadd.f32 (!%p2274_p11), %v1781_v2, %v3310_v63  ;;  %v1782_v56 = vld [vmem:[#allocation4 + $0x18] sm:$0xff] (!%p2274_p11)  ;;  %v1783_v7 = vld [vmem:[#allocation4 + $0x20] sm:$0xff] (!%p2274_p11)  ;;  %v1784_v34 = vld [vmem:[#allocation4 + $0x28] sm:$0xff] (!%p2274_p11) }
 0x421   : > { %v1814_v57 = vadd.f32 (!%p2274_p11), %v1782_v56, %v3316_v6  ;;  %v1815_v60 = vadd.f32 (!%p2274_p11), %v1783_v7, %v3337_v31  ;;  %v1816_v29 = vadd.f32 (!%p2274_p11), %v1784_v34, %v3343_v38  ;;  %v1785_v47 = vld [vmem:[#allocation4 + $0x30] sm:$0xff] (!%p2274_p11)  ;;  %v1786_v61 = vld [vmem:[#allocation4 + $0x38] sm:$0xff] (!%p2274_p11)  ;;  %v1787_v30 = vld [vmem:[#allocation4 + $0x40] sm:$0xff] (!%p2274_p11) }
 0x422   : > { %1843 = vst.msk [vmem:[#allocation4] sm:$0xff] (!%p2274_p11), %vm423_vm0, %v1811_v45  ;;  %1844 = vst.msk [vmem:[#allocation4 + $0x8] sm:$0xff] (!%p2274_p11), %vm423_vm0, %v1812_v52  ;;  %v1817_v1 = vadd.f32 (!%p2274_p11), %v1785_v47, %v3334_v25  ;;  %v1818_v8 = vadd.f32 (!%p2274_p11), %v1786_v61, %v3340_v35  ;;  %v1819_v9 = vadd.f32 (!%p2274_p11), %v1787_v30, %v3361_v55  ;;  %v1788_v13 = vld [vmem:[#allocation4 + $0x48] sm:$0xff] (!%p2274_p11)  ;;  %v1789_v14 = vld [vmem:[#allocation4 + $0x50] sm:$0xff] (!%p2274_p11) }
 0x423   : > { %1845 = vst.msk [vmem:[#allocation4 + $0x10] sm:$0xff] (!%p2274_p11), %vm423_vm0, %v1813_v51  ;;  %v1790_v16 = vld [vmem:[#allocation4 + $0x58] sm:$0xff] (!%p2274_p11)  ;;  %1846 = vst.msk [vmem:[#allocation4 + $0x18] sm:$0xff] (!%p2274_p11), %vm423_vm0, %v1814_v57  ;;  %v1820_v12 = vadd.f32 (!%p2274_p11), %v1788_v13, %v3367_v48  ;;  %v1821_v21 = vadd.f32 (!%p2274_p11), %v1789_v14, %v3358_v53  ;;  %v1791_v11 = vld [vmem:[#allocation4 + $0x60] sm:$0xff] (!%p2274_p11) }
 0x424   : > { %1847 = vst.msk [vmem:[#allocation4 + $0x20] sm:$0xff] (!%p2274_p11), %vm423_vm0, %v1815_v60  ;;  %1848 = vst.msk [vmem:[#allocation4 + $0x28] sm:$0xff] (!%p2274_p11), %vm423_vm0, %v1816_v29  ;;  %v1822_v23 = vadd.f32 (!%p2274_p11), %v1790_v16, %v3364_v58  ;;  %v1792_v26 = vld [vmem:[#allocation4 + $0x68] sm:$0xff] (!%p2274_p11)  ;;  %v1793_v28 = vld [vmem:[#allocation4 + $0x70] sm:$0xff] (!%p2274_p11)  ;;  %v1823_v33 = vadd.f32 (!%p2274_p11), %v1791_v11, %v3385_v22 }
 0x425   : > { %1849 = vst.msk [vmem:[#allocation4 + $0x30] sm:$0xff] (!%p2274_p11), %vm423_vm0, %v1817_v1  ;;  %1850 = vst.msk [vmem:[#allocation4 + $0x38] sm:$0xff] (!%p2274_p11), %vm423_vm0, %v1818_v8  ;;  %v1824_v36 = vadd.f32 (!%p2274_p11), %v1792_v26, %v3391_v32  ;;  %v1825_v39 = vadd.f32 (!%p2274_p11), %v1793_v28, %v3382_v17  ;;  %v1794_v40 = vld [vmem:[#allocation4 + $0x78] sm:$0xff] (!%p2274_p11)  ;;  %v1795_v43 = vld [vmem:[#allocation4 + $0x80] sm:$0xff] (!%p2274_p11) }
 0x426   : > { %1851 = vst.msk [vmem:[#allocation4 + $0x40] sm:$0xff] (!%p2274_p11), %vm423_vm0, %v1819_v9  ;;  %v1796_v54 = vld [vmem:[#allocation4 + $0x88] sm:$0xff] (!%p2274_p11)  ;;  %1852 = vst.msk [vmem:[#allocation4 + $0x48] sm:$0xff] (!%p2274_p11), %vm423_vm0, %v1820_v12  ;;  %v1826_v50 = vadd.f32 (!%p2274_p11), %v1794_v40, %v3388_v24  ;;  %v1827_v2 = vadd.f32 (!%p2274_p11), %v1795_v43, %v3325_v18  ;;  %v1797_v52 = vld [vmem:[#allocation4 + $0x90] sm:$0xff] (!%p2274_p11) }
 0x427   : > { %1853 = vst.msk [vmem:[#allocation4 + $0x50] sm:$0xff] %vm423_vm0, %v1821_v21  ;;  %1854 = vst.msk [vmem:[#allocation4 + $0x58] sm:$0xff] %vm423_vm0, %v1822_v23  ;;  %v1828_v45 = vadd.f32 %v1796_v54, %v3330_v20  ;;  %v1798_v51 = vld [vmem:[#allocation4 + $0x98] sm:$0xff]  ;;  %v1799_v56 = vld [vmem:[#allocation4 + $0xa0] sm:$0xff]  ;;  %v1829_v7 = vadd.f32 %v1797_v52, %v3322_v15 }
 0x428   : > { %1855 = vst.msk [vmem:[#allocation4 + $0x60] sm:$0xff] %vm423_vm0, %v1823_v33  ;;  %1856 = vst.msk [vmem:[#allocation4 + $0x68] sm:$0xff] %vm423_vm0, %v1824_v36  ;;  %v1830_v34 = vadd.f32 %v1798_v51, %v3328_v19  ;;  %v1831_v57 = vadd.f32 %v1799_v56, %v3349_v44  ;;  %v1800_v60 = vld [vmem:[#allocation4 + $0xa8] sm:$0xff]  ;;  %v1801_v29 = vld [vmem:[#allocation4 + $0xb0] sm:$0xff] }
 0x429   : > { %1857 = vst.msk [vmem:[#allocation4 + $0x70] sm:$0xff] %vm423_vm0, %v1825_v39  ;;  %v1802_v47 = vld [vmem:[#allocation4 + $0xb8] sm:$0xff]  ;;  %1858 = vst.msk [vmem:[#allocation4 + $0x78] sm:$0xff] %vm423_vm0, %v1826_v50  ;;  %v1832_v61 = vadd.f32 %v1800_v60, %v3354_v62  ;;  %v1833_v30 = vadd.f32 %v1801_v29, %v3346_v41  ;;  %v1803_v8 = vld [vmem:[#allocation4 + $0xc0] sm:$0xff] }
 0x42a   : > { %1859 = vst.msk [vmem:[#allocation4 + $0x80] sm:$0xff] %vm423_vm0, %v1827_v2  ;;  %1860 = vst.msk [vmem:[#allocation4 + $0x88] sm:$0xff] %vm423_vm0, %v1828_v45  ;;  %v1834_v1 = vadd.f32 %v1802_v47, %v3352_v49  ;;  %v1804_v9 = vld [vmem:[#allocation4 + $0xc8] sm:$0xff]  ;;  %v1805_v13 = vld [vmem:[#allocation4 + $0xd0] sm:$0xff]  ;;  %v1835_v14 = vadd.f32 %v1803_v8, %v3373_v0 }
 0x42b   : > { %1861 = vst.msk [vmem:[#allocation4 + $0x90] sm:$0xff] %vm423_vm0, %v1829_v7  ;;  %1862 = vst.msk [vmem:[#allocation4 + $0x98] sm:$0xff] %vm423_vm0, %v1830_v34  ;;  %v1836_v16 = vadd.f32 %v1804_v9, %v3378_v5  ;;  %v1837_v12 = vadd.f32 %v1805_v13, %v3370_v59  ;;  %v1806_v21 = vld [vmem:[#allocation4 + $0xd8] sm:$0xff]  ;;  %v1807_v23 = vld [vmem:[#allocation4 + $0xe0] sm:$0xff] }
 0x42c   : > { %1863 = vst.msk [vmem:[#allocation4 + $0xa0] sm:$0xff] %vm423_vm0, %v1831_v57  ;;  %v1808_v11 = vld [vmem:[#allocation4 + $0xe8] sm:$0xff]  ;;  %1864 = vst.msk [vmem:[#allocation4 + $0xa8] sm:$0xff] %vm423_vm0, %v1832_v61  ;;  %v1838_v26 = vadd.f32 %v1806_v21, %v3376_v4  ;;  %v1839_v28 = vadd.f32 %v1807_v23, %v3397_v42  ;;  %v1809_v36 = vld [vmem:[#allocation4 + $0xf0] sm:$0xff] }
 0x42d   : > { %1865 = vst.msk [vmem:[#allocation4 + $0xb0] sm:$0xff] %vm423_vm0, %v1833_v30  ;;  %1866 = vst.msk [vmem:[#allocation4 + $0xb8] sm:$0xff] %vm423_vm0, %v1834_v1  ;;  %v1840_v33 = vadd.f32 %v1808_v11, %v3402_v27  ;;  %v1810_v39 = vld [vmem:[#allocation4 + $0xf8] sm:$0xff]  ;;  %v1841_v40 = vadd.f32 %v1809_v36, %v3394_v37 }
 0x42e   : > { %1867 = vst.msk [vmem:[#allocation4 + $0xc0] sm:$0xff] %vm423_vm0, %v1835_v14  ;;  %1868 = vst.msk [vmem:[#allocation4 + $0xc8] sm:$0xff] %vm423_vm0, %v1836_v16  ;;  %v1842_v43 = vadd.f32 %v1810_v39, %v3400_v46 }
 0x42f   : > { %1869 = vst.msk [vmem:[#allocation4 + $0xd0] sm:$0xff] %vm423_vm0, %v1837_v12  ;;  %1870 = vst.msk [vmem:[#allocation4 + $0xd8] sm:$0xff] %vm423_vm0, %v1838_v26 }
 0x430   : > { %1871 = vst.msk [vmem:[#allocation4 + $0xe0] sm:$0xff] %vm423_vm0, %v1839_v28  ;;  %1872 = vst.msk [vmem:[#allocation4 + $0xe8] sm:$0xff] %vm423_vm0, %v1840_v33 }
 0x431   : > { %1873 = vst.msk [vmem:[#allocation4 + $0xf0] sm:$0xff] %vm423_vm0, %v1841_v40  ;;  %1874 = vst.msk [vmem:[#allocation4 + $0xf8] sm:$0xff] %vm423_vm0, %v1842_v43 }
 0x432 PF: > { %p2275_p12 = scmp.ge.s32.totalorder %s2662_s18, 1 }
 0x433   : > { %s1880_s8 = sshra.s32 (!%p2275_p12), %s2231_s9, 4  ;;  %s3539_s12 = sshra.s32 (!%p2275_p12), %s2235_s11, 4 }
 0x434   : > { %1878 = sbr.rel (%p2275_p12) target bundleno = 1125 (0x465), region = 68  ;;  %s2276_s30 = sshll.u32 (!%p2275_p12), %s1880_s8, 3 }
 0x435   : > { %s3541_s17 = scalar_lea.vmem (!%p2275_p12), [#allocation3], %s2276_s30  ;;  %s2277_s29 = sshll.u32 (!%p2275_p12), %s3539_s12, 3 }
 0x436   : > { %v1884_v54 = vld [vmem:[%s3541_s17] sm:$0xff] (!%p2275_p12)  ;;  %v1885_v50 = vld [vmem:[%s3541_s17 + $0x8] sm:$0xff] (!%p2275_p12)  ;;  %v1886_v2 = vld [vmem:[%s3541_s17 + $0x10] sm:$0xff] (!%p2275_p12)  ;;  %s3561_s9 = scalar_lea.vmem (!%p2275_p12), [#allocation3], %s2277_s29 }
 0x437   : > { %v1900_v45 = vunpack.c.l.bf16 (!%p2275_p12), %v1884_v54  ;;  %v1901_v52 = vunpack.c.h.bf16 (!%p2275_p12), %v1884_v54  ;;  %v1902_v51 = vunpack.c.l.bf16 (!%p2275_p12), %v1885_v50  ;;  %v1903_v56 = vunpack.c.h.bf16 (!%p2275_p12), %v1885_v50  ;;  %v1887_v7 = vld [vmem:[%s3541_s17 + $0x18] sm:$0xff] (!%p2275_p12)  ;;  %v1888_v47 = vld [vmem:[%s3541_s17 + $0x20] sm:$0xff] (!%p2275_p12)  ;;  %v1889_v9 = vld [vmem:[%s3541_s17 + $0x28] sm:$0xff] (!%p2275_p12) }
 0x438   : > { %v1904_v34 = vunpack.c.l.bf16 (!%p2275_p12), %v1886_v2  ;;  %v1905_v57 = vunpack.c.h.bf16 (!%p2275_p12), %v1886_v2  ;;  %v1906_v60 = vunpack.c.l.bf16 (!%p2275_p12), %v1887_v7  ;;  %v1907_v29 = vunpack.c.h.bf16 (!%p2275_p12), %v1887_v7  ;;  %v1890_v21 = vld [vmem:[%s3541_s17 + $0x30] sm:$0xff] (!%p2275_p12)  ;;  %v1892_v36 = vld [vmem:[%s3541_s17 + $0x40] sm:$0xff] (!%p2275_p12) }
 0x439   : > { %v1932_v61 = vadd.f32 (!%p2275_p12), %v1900_v45, %v3313_v3  ;;  %v1933_v30 = vadd.f32 (!%p2275_p12), %v1901_v52, %v3319_v10  ;;  %v1934_v1 = vadd.f32 (!%p2275_p12), %v1902_v51, %v3310_v63  ;;  %v1935_v8 = vadd.f32 (!%p2275_p12), %v1903_v56, %v3316_v6  ;;  %v1891_v10 = vld [vmem:[%s3541_s17 + $0x38] sm:$0xff] (!%p2275_p12) }
 0x43a   : > { %v1936_v13 = vadd.f32 (!%p2275_p12), %v1904_v34, %v3337_v31  ;;  %v1937_v14 = vadd.f32 (!%p2275_p12), %v1905_v57, %v3343_v38  ;;  %v1938_v16 = vadd.f32 (!%p2275_p12), %v1906_v60, %v3334_v25  ;;  %v1939_v12 = vadd.f32 (!%p2275_p12), %v1907_v29, %v3340_v35 }
 0x43b   : > { %v1964_v23 = vpack.c.bf16 %v1933_v30, %v1932_v61  ;;  %v1965_v11 = vpack.c.bf16 %v1935_v8, %v1934_v1  ;;  %v1908_v3 = vunpack.c.l.bf16 %v1888_v47  ;;  %v1909_v26 = vunpack.c.h.bf16 %v1888_v47 }
 0x43c   : > { %v1966_v28 = vpack.c.bf16 %v1937_v14, %v1936_v13  ;;  %v1967_v63 = vpack.c.bf16 %v1939_v12, %v1938_v16  ;;  %v1910_v33 = vunpack.c.l.bf16 %v1889_v9  ;;  %v1911_v6 = vunpack.c.h.bf16 %v1889_v9 }
 0x43d   : > { %1985 = vst.msk [vmem:[%s3561_s9] sm:$0xff] %vm423_vm0, %v1964_v23  ;;  %1986 = vst.msk [vmem:[%s3561_s9 + $0x8] sm:$0xff] %vm423_vm0, %v1965_v11  ;;  %v1940_v25 = vadd.f32 %v1908_v3, %v3361_v55  ;;  %v1941_v31 = vadd.f32 %v1909_v26, %v3367_v48  ;;  %v1912_v35 = vunpack.c.l.bf16 %v1890_v21  ;;  %v1913_v38 = vunpack.c.h.bf16 %v1890_v21 }
 0x43e   : > { %1987 = vst.msk [vmem:[%s3561_s9 + $0x10] sm:$0xff] %vm423_vm0, %v1966_v28  ;;  %1988 = vst.msk [vmem:[%s3561_s9 + $0x18] sm:$0xff] %vm423_vm0, %v1967_v63  ;;  %v1942_v39 = vadd.f32 %v1910_v33, %v3358_v53  ;;  %v1943_v40 = vadd.f32 %v1911_v6, %v3364_v58  ;;  %v1914_v43 = vunpack.c.l.bf16 %v1891_v10  ;;  %v1915_v54 = vunpack.c.h.bf16 %v1891_v10 }
 0x43f   : > { %v1968_v2 = vpack.c.bf16 %v1941_v31, %v1940_v25  ;;  %v1944_v55 = vadd.f32 %v1912_v35, %v3385_v22  ;;  %v1945_v48 = vadd.f32 %v1913_v38, %v3391_v32  ;;  %v1916_v45 = vunpack.c.l.bf16 %v1892_v36 }
 0x440   : > { %v1969_v51 = vpack.c.bf16 %v1943_v40, %v1942_v39  ;;  %v1946_v56 = vadd.f32 %v1914_v43, %v3382_v17  ;;  %v1947_v53 = vadd.f32 %v1915_v54, %v3388_v24  ;;  %v1917_v7 = vunpack.c.h.bf16 %v1892_v36 }
 0x441   : > { %v1970_v34 = vpack.c.bf16 %v1945_v48, %v1944_v55  ;;  %v1948_v57 = vadd.f32 %v1916_v45, %v3325_v18 }
 0x442   : > { %v1971_v29 = vpack.c.bf16 %v1947_v53, %v1946_v56  ;;  %v1949_v17 = vadd.f32 %v1917_v7, %v3330_v20 }
 0x444   : > { %v1972_v9 = vpack.c.bf16 %v1949_v17, %v1948_v57 }
 0x445   : > { %v1893_v50 = vld [vmem:[%s3541_s17 + $0x48] sm:$0xff]  ;;  %v1894_v52 = vld [vmem:[%s3541_s17 + $0x50] sm:$0xff]  ;;  %v1895_v58 = vld [vmem:[%s3541_s17 + $0x58] sm:$0xff] }
 0x446   : > { %1989 = vst.msk [vmem:[%s3561_s9 + $0x20] sm:$0xff] %vm423_vm0, %v1968_v2  ;;  %v1918_v22 = vunpack.c.l.bf16 %v1893_v50  ;;  %v1919_v60 = vunpack.c.h.bf16 %v1893_v50  ;;  %v1920_v47 = vunpack.c.l.bf16 %v1894_v52  ;;  %v1921_v24 = vunpack.c.h.bf16 %v1894_v52 }
 0x447   : > { %v1922_v18 = vunpack.c.l.bf16 %v1895_v58  ;;  %v1923_v1 = vunpack.c.h.bf16 %v1895_v58 }
 0x448   : > { %v1950_v61 = vadd.f32 %v1918_v22, %v3322_v15  ;;  %v1951_v30 = vadd.f32 %v1919_v60, %v3328_v19  ;;  %v1952_v13 = vadd.f32 %v1920_v47, %v3349_v44  ;;  %v1953_v20 = vadd.f32 %v1921_v24, %v3354_v62 }
 0x449   : > { %v1954_v15 = vadd.f32 %v1922_v18, %v3346_v41  ;;  %v1955_v21 = vadd.f32 %v1923_v1, %v3352_v49 }
 0x44a   : > { %v1973_v12 = vpack.c.bf16 %v1951_v30, %v1950_v61  ;;  %v1974_v11 = vpack.c.bf16 %v1953_v20, %v1952_v13 }
 0x44b   : > { %v1975_v62 = vpack.c.bf16 %v1955_v21, %v1954_v15 }
 0x44d   : > { %v1896_v32 = vld [vmem:[%s3541_s17 + $0x60] sm:$0xff] }
 0x44e   : > { %1990 = vst.msk [vmem:[%s3561_s9 + $0x28] sm:$0xff] %vm423_vm0, %v1969_v51  ;;  %1991 = vst.msk [vmem:[%s3561_s9 + $0x30] sm:$0xff] %vm423_vm0, %v1970_v34  ;;  %v1924_v14 = vunpack.c.l.bf16 %v1896_v32  ;;  %v1925_v19 = vunpack.c.h.bf16 %v1896_v32 }
 0x450   : > { %v1956_v3 = vadd.f32 %v1924_v14, %v3373_v0  ;;  %v1957_v10 = vadd.f32 %v1925_v19, %v3378_v5 }
 0x452   : > { %v1976_v6 = vpack.c.bf16 %v1957_v10, %v1956_v3 }
 0x455   : > { %v1897_v8 = vld [vmem:[%s3541_s17 + $0x68] sm:$0xff] }
 0x456   : > { %1992 = vst.msk [vmem:[%s3561_s9 + $0x38] sm:$0xff] %vm423_vm0, %v1971_v29  ;;  %v1926_v26 = vunpack.c.l.bf16 %v1897_v8  ;;  %v1927_v44 = vunpack.c.h.bf16 %v1897_v8 }
 0x458   : > { %v1958_v49 = vadd.f32 %v1926_v26, %v3370_v59  ;;  %v1959_v63 = vadd.f32 %v1927_v44, %v3376_v4 }
 0x45a   : > { %v1977_v25 = vpack.c.bf16 %v1959_v63, %v1958_v49 }
 0x45d   : > { %v1898_v16 = vld [vmem:[%s3541_s17 + $0x70] sm:$0xff]  ;;  %v1899_v23 = vld [vmem:[%s3541_s17 + $0x78] sm:$0xff] }
 0x45e   : > { %1993 = vst.msk [vmem:[%s3561_s9 + $0x40] sm:$0xff] %vm423_vm0, %v1972_v9  ;;  %1994 = vst.msk [vmem:[%s3561_s9 + $0x48] sm:$0xff] %vm423_vm0, %v1973_v12  ;;  %v1928_v28 = vunpack.c.l.bf16 %v1898_v16  ;;  %v1929_v41 = vunpack.c.h.bf16 %v1898_v16  ;;  %v1930_v0 = vunpack.c.l.bf16 %v1899_v23  ;;  %v1931_v33 = vunpack.c.h.bf16 %v1899_v23 }
 0x45f   : > { %1995 = vst.msk [vmem:[%s3561_s9 + $0x50] sm:$0xff] %vm423_vm0, %v1974_v11  ;;  %1996 = vst.msk [vmem:[%s3561_s9 + $0x58] sm:$0xff] %vm423_vm0, %v1975_v62 }
 0x460   : > { %v1960_v36 = vadd.f32 %v1928_v28, %v3397_v42  ;;  %v1961_v5 = vadd.f32 %v1929_v41, %v3402_v27  ;;  %v1962_v31 = vadd.f32 %v1930_v0, %v3394_v37  ;;  %v1963_v35 = vadd.f32 %v1931_v33, %v3400_v46  ;;  %1997 = vst.msk [vmem:[%s3561_s9 + $0x60] sm:$0xff] %vm423_vm0, %v1976_v6 }
 0x461   : > { %1998 = vst.msk [vmem:[%s3561_s9 + $0x68] sm:$0xff] %vm423_vm0, %v1977_v25 }
 0x462   : > { %v1978_v59 = vpack.c.bf16 %v1961_v5, %v1960_v36  ;;  %v1979_v4 = vpack.c.bf16 %v1963_v35, %v1962_v31 }
 0x464   : > { %1999 = vst.msk [vmem:[%s3561_s9 + $0x70] sm:$0xff] %vm423_vm0, %v1978_v59  ;;  %2000 = vst.msk [vmem:[%s3561_s9 + $0x78] sm:$0xff] %vm423_vm0, %v1979_v4 }
 0x465 PF: > { %p2278_p13 = scmp.ne.s32.totalorder %s2662_s18, 1 }
 0x466   : > { %v2006_v42 = vld [vmem:[#allocation4] sm:$0xff] (!%p2278_p13)  ;;  %v2007_v27 = vld [vmem:[#allocation4 + $0x8] sm:$0xff] (!%p2278_p13)  ;;  %v2008_v38 = vld [vmem:[#allocation4 + $0x10] sm:$0xff] (!%p2278_p13) }
 0x467   : > { %2004 = sbr.rel (%p2278_p13) target bundleno = 1143 (0x477), region = 72  ;;  %2038 = vst.msk [vmem:[%s3769_s5] sm:$0xff] (!%p2278_p13), %vm423_vm0, %v2006_v42  ;;  %2039 = vst.msk [vmem:[%s3769_s5 + $0x8] sm:$0xff] (!%p2278_p13), %vm423_vm0, %v2007_v27  ;;  %v2009_v37 = vld [vmem:[#allocation4 + $0x18] sm:$0xff] (!%p2278_p13)  ;;  %v2010_v46 = vld [vmem:[#allocation4 + $0x20] sm:$0xff] (!%p2278_p13) }
 0x468   : > { %2040 = vst.msk [vmem:[%s3769_s5 + $0x10] sm:$0xff] (!%p2278_p13), %vm423_vm0, %v2008_v38  ;;  %v2011_v39 = vld [vmem:[#allocation4 + $0x28] sm:$0xff] (!%p2278_p13)  ;;  %2041 = vst.msk [vmem:[%s3769_s5 + $0x18] sm:$0xff] (!%p2278_p13), %vm423_vm0, %v2009_v37  ;;  %v2012_v40 = vld [vmem:[#allocation4 + $0x30] sm:$0xff] (!%p2278_p13) }
 0x469   : > { %2042 = vst.msk [vmem:[%s3769_s5 + $0x20] sm:$0xff] (!%p2278_p13), %vm423_vm0, %v2010_v46  ;;  %2043 = vst.msk [vmem:[%s3769_s5 + $0x28] sm:$0xff] (!%p2278_p13), %vm423_vm0, %v2011_v39  ;;  %v2013_v43 = vld [vmem:[#allocation4 + $0x38] sm:$0xff] (!%p2278_p13)  ;;  %v2014_v54 = vld [vmem:[#allocation4 + $0x40] sm:$0xff] (!%p2278_p13) }
 0x46a   : > { %2044 = vst.msk [vmem:[%s3769_s5 + $0x30] sm:$0xff] (!%p2278_p13), %vm423_vm0, %v2012_v40  ;;  %2045 = vst.msk [vmem:[%s3769_s5 + $0x38] sm:$0xff] (!%p2278_p13), %vm423_vm0, %v2013_v43  ;;  %v2015_v50 = vld [vmem:[#allocation4 + $0x48] sm:$0xff] (!%p2278_p13)  ;;  %v2016_v2 = vld [vmem:[#allocation4 + $0x50] sm:$0xff] (!%p2278_p13) }
 0x46b   : > { %2046 = vst.msk [vmem:[%s3769_s5 + $0x40] sm:$0xff] (!%p2278_p13), %vm423_vm0, %v2014_v54  ;;  %v2017_v55 = vld [vmem:[#allocation4 + $0x58] sm:$0xff] (!%p2278_p13)  ;;  %2047 = vst.msk [vmem:[%s3769_s5 + $0x48] sm:$0xff] (!%p2278_p13), %vm423_vm0, %v2015_v50  ;;  %v2018_v48 = vld [vmem:[#allocation4 + $0x60] sm:$0xff] (!%p2278_p13) }
 0x46c   : > { %2048 = vst.msk [vmem:[%s3769_s5 + $0x50] sm:$0xff] (!%p2278_p13), %vm423_vm0, %v2016_v2  ;;  %2049 = vst.msk [vmem:[%s3769_s5 + $0x58] sm:$0xff] (!%p2278_p13), %vm423_vm0, %v2017_v55  ;;  %v2019_v45 = vld [vmem:[#allocation4 + $0x68] sm:$0xff] (!%p2278_p13)  ;;  %v2020_v52 = vld [vmem:[#allocation4 + $0x70] sm:$0xff] (!%p2278_p13) }
 0x46d   : > { %2050 = vst.msk [vmem:[%s3769_s5 + $0x60] sm:$0xff] (!%p2278_p13), %vm423_vm0, %v2018_v48  ;;  %2051 = vst.msk [vmem:[%s3769_s5 + $0x68] sm:$0xff] (!%p2278_p13), %vm423_vm0, %v2019_v45  ;;  %v2021_v51 = vld [vmem:[#allocation4 + $0x78] sm:$0xff] (!%p2278_p13)  ;;  %v2022_v56 = vld [vmem:[#allocation4 + $0x80] sm:$0xff] (!%p2278_p13) }
 0x46e   : > { %2052 = vst.msk [vmem:[%s3769_s5 + $0x70] sm:$0xff] %vm423_vm0, %v2020_v52  ;;  %v2023_v53 = vld [vmem:[#allocation4 + $0x88] sm:$0xff]  ;;  %2053 = vst.msk [vmem:[%s3769_s5 + $0x78] sm:$0xff] %vm423_vm0, %v2021_v51  ;;  %v2024_v7 = vld [vmem:[#allocation4 + $0x90] sm:$0xff] }
 0x46f   : > { %2054 = vst.msk [vmem:[%s3769_s5 + $0x80] sm:$0xff] %vm423_vm0, %v2022_v56  ;;  %2055 = vst.msk [vmem:[%s3769_s5 + $0x88] sm:$0xff] %vm423_vm0, %v2023_v53  ;;  %v2025_v58 = vld [vmem:[#allocation4 + $0x98] sm:$0xff]  ;;  %v2026_v34 = vld [vmem:[#allocation4 + $0xa0] sm:$0xff] }
 0x470   : > { %2056 = vst.msk [vmem:[%s3769_s5 + $0x90] sm:$0xff] %vm423_vm0, %v2024_v7  ;;  %2057 = vst.msk [vmem:[%s3769_s5 + $0x98] sm:$0xff] %vm423_vm0, %v2025_v58  ;;  %v2027_v57 = vld [vmem:[#allocation4 + $0xa8] sm:$0xff]  ;;  %v2028_v22 = vld [vmem:[#allocation4 + $0xb0] sm:$0xff] }
 0x471   : > { %2058 = vst.msk [vmem:[%s3769_s5 + $0xa0] sm:$0xff] %vm423_vm0, %v2026_v34  ;;  %v2029_v60 = vld [vmem:[#allocation4 + $0xb8] sm:$0xff]  ;;  %2059 = vst.msk [vmem:[%s3769_s5 + $0xa8] sm:$0xff] %vm423_vm0, %v2027_v57  ;;  %v2030_v32 = vld [vmem:[#allocation4 + $0xc0] sm:$0xff] }
 0x472   : > { %2060 = vst.msk [vmem:[%s3769_s5 + $0xb0] sm:$0xff] %vm423_vm0, %v2028_v22  ;;  %2061 = vst.msk [vmem:[%s3769_s5 + $0xb8] sm:$0xff] %vm423_vm0, %v2029_v60  ;;  %v2031_v29 = vld [vmem:[#allocation4 + $0xc8] sm:$0xff]  ;;  %v2032_v17 = vld [vmem:[#allocation4 + $0xd0] sm:$0xff] }
 0x473   : > { %2062 = vst.msk [vmem:[%s3769_s5 + $0xc0] sm:$0xff] %vm423_vm0, %v2030_v32  ;;  %2063 = vst.msk [vmem:[%s3769_s5 + $0xc8] sm:$0xff] %vm423_vm0, %v2031_v29  ;;  %v2033_v47 = vld [vmem:[#allocation4 + $0xd8] sm:$0xff]  ;;  %v2034_v24 = vld [vmem:[#allocation4 + $0xe0] sm:$0xff] }
 0x474   : > { %2064 = vst.msk [vmem:[%s3769_s5 + $0xd0] sm:$0xff] %vm423_vm0, %v2032_v17  ;;  %v2035_v61 = vld [vmem:[#allocation4 + $0xe8] sm:$0xff]  ;;  %2065 = vst.msk [vmem:[%s3769_s5 + $0xd8] sm:$0xff] %vm423_vm0, %v2033_v47  ;;  %v2036_v30 = vld [vmem:[#allocation4 + $0xf0] sm:$0xff] }
 0x475   : > { %2066 = vst.msk [vmem:[%s3769_s5 + $0xe0] sm:$0xff] %vm423_vm0, %v2034_v24  ;;  %2067 = vst.msk [vmem:[%s3769_s5 + $0xe8] sm:$0xff] %vm423_vm0, %v2035_v61  ;;  %v2037_v18 = vld [vmem:[#allocation4 + $0xf8] sm:$0xff] }
 0x476   : > { %2068 = vst.msk [vmem:[%s3769_s5 + $0xf0] sm:$0xff] %vm423_vm0, %v2036_v30  ;;  %2069 = vst.msk [vmem:[%s3769_s5 + $0xf8] sm:$0xff] %vm423_vm0, %v2037_v18 }
 0x477 PF: > { %s15_s20 = sadd.s32 1, %s2670_s20   ;;  %s3782_s18 = smov %s2666_s19 }
 0x478   : > { %p12_p0 = scmp.ge.s32.totalorder %s15_s20, 4   ;;  %s3783_s19 = smov %s3785_s21 }
 0x47a   :  { %14 = sbr.rel (!%p12_p0) target bundleno = 2 (0x2), region = 121 }

</bundles_post_ra>
